<compile_context>
chip_gen: v5e
topology: v5e:2x2
jax: 0.10.0
libtpu: 0.0.40
codegen_flags: <defaults>
</compile_context>

<pallas_src>
import functools
import math

import numpy as np
import jax
import jax.numpy as jnp
from jax import lax
from jax.experimental import pallas as pl
from jax.experimental.pallas import tpu as pltpu

_LANE = 128
# Additive mask bias. -1e30 behaves like -inf after softmax for partially
# masked rows; fully-masked rows return a uniform average over masked keys
# instead of the reference's NaN (deliberate, documented divergence).
_NEG_BIG = -1e30


# ---------------------------------------------------------------------------
# Fused Pallas kernel: QKV projection + multi-head attention + output proj
# ---------------------------------------------------------------------------

def _fused_particle_attention_kernel(*refs, n_head, mask_mode, approx_recip):
    """One batch *block* (B_blk elements) per grid step.

    refs (in order):
      x_ref    : (B_blk, Lq, C)       compute dtype (f32 or bf16)
      kv_ref   : (B_blk, Lk, C)       compute dtype
      [mask_ref]: 'key'  -> (B_blk, 1, Lk)  f32 additive bias
                  'full' -> (B_blk, Lq, Lk) bf16 additive bias
      wq_ref   : (C, C)   compute dtype, 1/sqrt(D) pre-folded
      wkv_ref  : (C, 2C)  compute dtype, [Wk | Wv] fused
      wp_ref   : (C, C)   compute dtype
      o_ref    : (B_blk, out_rows, out_last)  lane-dense output slab
    """
    if mask_mode == "none":
        x_ref, kv_ref, wq_ref, wkv_ref, wp_ref, o_ref = refs
        mask_ref = None
    else:
        x_ref, kv_ref, mask_ref, wq_ref, wkv_ref, wp_ref, o_ref = refs

    b_blk, lq, C = x_ref.shape
    lk = kv_ref.shape[1]
    D = C // n_head
    out_rows, out_last = o_ref.shape[1], o_ref.shape[2]

    # Merge leading dims (free reshape, lanes stay = C) -> long MXU M stream.
    x = x_ref[...].reshape(b_blk * lq, C)
    kv = kv_ref[...].reshape(b_blk * lk, C)
    cd = x.dtype                              # MXU operand dtype

    wq = wq_ref[...]
    wkv = wkv_ref[...]
    wp = wp_ref[...]

    # Projections on the MXU, f32 accumulation (scale already folded into Wq).
    q = jnp.dot(x, wq, preferred_element_type=jnp.float32)        # (B*Lq, C)
    kvp = jnp.dot(kv, wkv, preferred_element_type=jnp.float32)    # (B*Lk, 2C)
    k_all = kvp[:, :C]
    v_all = kvp[:, C:]

    for b in range(b_blk):                    # static unroll over batch block
        qb = q[b * lq:(b + 1) * lq]
        kb = k_all[b * lk:(b + 1) * lk]
        vb = v_all[b * lk:(b + 1) * lk]

        if mask_mode == "key":
            bias_b = mask_ref[b]                          # (1, Lk) f32
        elif mask_mode == "full":
            bias_b = mask_ref[b].astype(jnp.float32)      # (Lq, Lk), hoisted
        else:
            bias_b = None

        # Consecutive `acc += dot(...)` accumulation (MRB-friendly on v7x).
        y_acc = jnp.zeros((lq, C), jnp.float32)
        for h in range(n_head):               # static unroll over heads
            sl = slice(h * D, (h + 1) * D)
            # Casts are no-ops on the f32 path (v5e-friendly); bf16 only for
            # MXU operands on the bf16 path.
            qh = qb[:, sl].astype(cd)         # (Lq, D)
            kh = kb[:, sl].astype(cd)         # (Lk, D)
            vh = vb[:, sl].astype(cd)         # (Lk, D)

            # q @ k^T without materializing a transpose of k.
            s = lax.dot_general(qh, kh, (((1,), (1,)), ((), ())),
                                preferred_element_type=jnp.float32)  # (Lq, Lk)
            if bias_b is not None:
                s = s + bias_b                # additive masking

            m = jnp.max(s, axis=-1, keepdims=True)
            p = jnp.exp(s - m)
            l = jnp.sum(p, axis=-1, keepdims=True)

            # Deferred normalization: scale the (Lq, D) result, not (Lq, Lk) p.
            yh = jnp.dot(p.astype(cd), vh,
                         preferred_element_type=jnp.float32)         # (Lq, D)
            yh = yh * pl.reciprocal(l, approx=approx_recip)

            # Output projection fused per head: y @ Wp == sum_h y_h @ Wp[hD:,:]
            y_acc += jnp.dot(yh.astype(cd), wp[sl, :],
                             preferred_element_type=jnp.float32)     # (Lq, C)

        # Lane-dense store (reshape is identity when C % 128 == 0).
        o_ref[b] = y_acc.reshape(out_rows, out_last).astype(o_ref.dtype)


# ---------------------------------------------------------------------------
# Host-side weight prep (done once, outside the per-call jitted path)
# ---------------------------------------------------------------------------

def prepare_params(params, n_head, compute_dtype=jnp.float32):
    C = params['wq'].shape[0]
    D = C // n_head
    scale = 1.0 / math.sqrt(D)
    return {
        'wq': (params['wq'] * scale).astype(compute_dtype),   # scale folded in
        'wkv': jnp.concatenate([params['wk'], params['wv']], axis=1)
                 .astype(compute_dtype),                       # [Wk | Wv]
        'wp': params['wp'].astype(compute_dtype),
    }


# ---------------------------------------------------------------------------
# Module forward (wrapper glue around the fused Pallas kernel)
# ---------------------------------------------------------------------------

def particle_attention(x, prepared, n_head, c=None, mask=None, key_mask=None,
                       att_type='hybrid', b_blk=None, out_dtype=jnp.float32):
    """x: (B, N, T, C); c: (B, Nc, T, C).

    mask     : optional (B, Lq, Lk) bool, True = masked (general fallback).
    key_mask : optional (B, Lk)     bool, True = masked (compact fast path).
    """
    B, N, T, C = x.shape
    assert C % n_head == 0

    if att_type == 'hybrid':
        kv_in = jnp.concatenate([x, c], axis=1)
    elif att_type == 'cross':
        kv_in = c
    else:  # 'self'
        kv_in = x
    kvN = kv_in.shape[1]
    Lq, Lk = N * T, kvN * T

    cd = prepared['wq'].dtype
    approx_recip = (jnp.dtype(cd) == jnp.dtype(jnp.bfloat16))

    # Channels-last slabs; free reshapes only (no transposes).
    x3 = x.reshape(B, Lq, C).astype(cd)
    kv3 = kv_in.reshape(B, Lk, C).astype(cd)

    if b_blk is None:
        b_blk = min(B, 8)
        while B % b_blk:
            b_blk -= 1
    assert B % b_blk == 0
    grid = (B // b_blk,)

    # --- mask handling (no (B, Lq, Lk) f32 bias in HBM) ---------------------
    if key_mask is not None:
        mask_mode = 'key'
        mask_op = jnp.where(key_mask, jnp.float32(_NEG_BIG),
                            jnp.float32(0.0)).reshape(B, 1, Lk)
        mask_spec = pl.BlockSpec((b_blk, 1, Lk), lambda b: (b, 0, 0))
    elif mask is not None:
        mask_mode = 'full'
        mask_op = jnp.where(mask, jnp.float32(_NEG_BIG),
                            jnp.float32(0.0)).astype(jnp.bfloat16)
        mask_spec = pl.BlockSpec((b_blk, Lq, Lk), lambda b: (b, 0, 0))
    else:
        mask_mode = 'none'
        mask_op = None
        mask_spec = None

    # --- lane-dense output slab --------------------------------------------
    if C % _LANE == 0:
        out_rows, out_last = Lq, C
    elif (Lq * C) % _LANE == 0:
        out_rows, out_last = (Lq * C) // _LANE, _LANE
    else:
        out_rows, out_last = Lq, C   # fallback: masked stores

    kern = functools.partial(
        _fused_particle_attention_kernel,
        n_head=n_head, mask_mode=mask_mode, approx_recip=approx_recip)

    in_specs = [
        pl.BlockSpec((b_blk, Lq, C), lambda b: (b, 0, 0)),     # x
        pl.BlockSpec((b_blk, Lk, C), lambda b: (b, 0, 0)),     # kv input
    ]
    operands = [x3, kv3]
    if mask_op is not None:
        in_specs.append(mask_spec)
        operands.append(mask_op)
    in_specs += [
        pl.BlockSpec((C, C), lambda b: (0, 0)),                # Wq (scaled)
        pl.BlockSpec((C, 2 * C), lambda b: (0, 0)),            # [Wk|Wv]
        pl.BlockSpec((C, C), lambda b: (0, 0)),                # Wp
    ]
    operands += [prepared['wq'], prepared['wkv'], prepared['wp']]

    out = pl.pallas_call(
        kern,
        out_shape=jax.ShapeDtypeStruct((B, out_rows, out_last), out_dtype),
        grid=grid,
        in_specs=in_specs,
        out_specs=pl.BlockSpec((b_blk, out_rows, out_last), lambda b: (b, 0, 0)),
        compiler_params=pltpu.CompilerParams(
            # 'parallel' only shards across TCs on v7x; on v5e/v6e overlap
            # comes from grid depth + block size.
            dimension_semantics=("parallel",),
            # Explicit scoped-VMEM limit (v5e default 16 MiB, v6e/v7x 32 MiB).
            vmem_limit_bytes=64 * 1024 * 1024),
    )(*operands)

    return out.reshape(B, N, T, C)


# ---------------------------------------------------------------------------
# Pure-JAX reference (mirrors the PyTorch forward exactly, f32)
# ---------------------------------------------------------------------------

def particle_attention_ref(x, params, n_head, c=None, mask=None, att_type='hybrid'):
    B, N, T, C = x.shape
    D = C // n_head
    if att_type == 'hybrid':
        kv_in = jnp.concatenate([x, c], axis=1)
    elif att_type == 'cross':
        kv_in = c
    else:
        kv_in = x
    kvN = kv_in.shape[1]
    Lq, Lk = N * T, kvN * T

    q = (x.reshape(B, Lq, C) @ params['wq']).reshape(B, Lq, n_head, D).transpose(0, 2, 1, 3)
    k = (kv_in.reshape(B, Lk, C) @ params['wk']).reshape(B, Lk, n_head, D).transpose(0, 2, 1, 3)
    v = (kv_in.reshape(B, Lk, C) @ params['wv']).reshape(B, Lk, n_head, D).transpose(0, 2, 1, 3)

    att = jnp.einsum('bhqd,bhkd->bhqk', q, k) * (1.0 / math.sqrt(D))
    if mask is not None:
        att = jnp.where(mask[:, None, :, :], -jnp.inf, att)
    att = jax.nn.softmax(att, axis=-1)
    y = jnp.einsum('bhqk,bhkd->bhqd', att, v)
    y = y.transpose(0, 2, 1, 3).reshape(B, Lq, C)
    y = y @ params['wp']
    return y.reshape(B, N, T, C)


# ---------------------------------------------------------------------------
# Main
# ---------------------------------------------------------------------------

if __name__ == "__main__":
    # Small shapes consistent with the module's forward.  C=128 keeps the
    # output lane-dense and gives D=32 head slices instead of 8.
    B, N, Nc, T, C = 8, 2, 2, 8, 128      # x:(B,N,T,C), c:(B,Nc,T,C)
    n_head = 4
    att_type = 'hybrid'
    B_BLK = 4                             # batch elements per grid step

    key = jax.random.PRNGKey(0)
    kx, kc, k1, k2, k3, k4 = jax.random.split(key, 6)

    x = jax.random.normal(kx, (B, N, T, C), jnp.float32)
    c = jax.random.normal(kc, (B, Nc, T, C), jnp.float32)

    # Parameters stored as (in, out), used as x @ W (== PyTorch x @ W^T).
    params = {
        'wq': jax.random.normal(k1, (C, C), jnp.float32) * 0.05,
        'wk': jax.random.normal(k2, (C, C), jnp.float32) * 0.05,
        'wv': jax.random.normal(k3, (C, C), jnp.float32) * 0.05,
        'wp': jax.random.normal(k4, (C, C), jnp.float32) * 0.05,
    }

    Lq, Lk = N * T, (N + Nc) * T
    # Key-only mask (True = masked): mask out the last 4 key/value positions.
    key_mask = jnp.broadcast_to(jnp.arange(Lk) >= (Lk - 4), (B, Lk))
    mask_full = jnp.broadcast_to(key_mask[:, None, :], (B, Lq, Lk))

    fwd = jax.jit(particle_attention,
                  static_argnames=('n_head', 'att_type', 'b_blk', 'out_dtype'))

    ref_m = np.asarray(jax.block_until_ready(
        particle_attention_ref(x, params, n_head, c=c, mask=mask_full,
                               att_type=att_type)))
    ref_nm = np.asarray(jax.block_until_ready(
        particle_attention_ref(x, params, n_head, c=c, mask=None,
                               att_type=att_type)))

    prep_f32 = prepare_params(params, n_head, jnp.float32)
    prep_bf16 = prepare_params(params, n_head, jnp.bfloat16)

    # 1) f32 path with compact (B, Lk) key-mask (no (B,Lq,Lk) bias in HBM).
    out1 = jax.block_until_ready(
        fwd(x, prep_f32, n_head, c=c, key_mask=key_mask, att_type=att_type,
            b_blk=B_BLK))
    np.testing.assert_allclose(np.asarray(out1), ref_m, atol=2e-4, rtol=2e-4)

    # 2) f32 path, mask=None specialization (no mask operand, no bias add).
    out2 = jax.block_until_ready(
        fwd(x, prep_f32, n_head, c=c, att_type=att_type, b_blk=B_BLK))
    np.testing.assert_allclose(np.asarray(out2), ref_nm, atol=2e-4, rtol=2e-4)

    # 3) f32 path, general (B, Lq, Lk) mask fallback (bf16 additive bias).
    out3 = jax.block_until_ready(
        fwd(x, prep_f32, n_head, c=c, mask=mask_full, att_type=att_type,
            b_blk=B_BLK))
    np.testing.assert_allclose(np.asarray(out3), ref_m, atol=2e-4, rtol=2e-4)

    # 4) bf16 MXU fast path with bf16 output (f32 accumulation/softmax,
    #    approx reciprocal), looser tolerance.
    out4 = jax.block_until_ready(
        fwd(x, prep_bf16, n_head, c=c, key_mask=key_mask, att_type=att_type,
            b_blk=B_BLK, out_dtype=jnp.bfloat16))
    np.testing.assert_allclose(np.asarray(out4.astype(jnp.float32)), ref_m,
                               atol=5e-2, rtol=5e-2)

    print("KERNEL_OK")
</pallas_src>

<mosaic_0001>
module attributes {stable_mosaic.version = 11 : i64} {
  func.func @_fused_particle_attention_kernel(%arg0: i32, %arg1: memref<4x16x128xf32, #tpu.memory_space<vmem>>, %arg2: memref<4x32x128xf32, #tpu.memory_space<vmem>>, %arg3: memref<4x1x32xf32, #tpu.memory_space<vmem>>, %arg4: memref<128x128xf32, #tpu.memory_space<vmem>>, %arg5: memref<128x256xf32, #tpu.memory_space<vmem>>, %arg6: memref<128x128xf32, #tpu.memory_space<vmem>>, %arg7: memref<4x16x128xf32, #tpu.memory_space<vmem>>) attributes {dimension_semantics = [#tpu.dimension_semantics<parallel>], iteration_bounds = array<i64: 2>, scalar_prefetch = 0 : i64, scratch_operands = 0 : i64, tpu.core_type = #tpu.core_type<tc>, window_params = [{transform_indices = @transform_0, window_bounds = array<i64: 4, 16, 128>}, {transform_indices = @transform_1, window_bounds = array<i64: 4, 32, 128>}, {transform_indices = @transform_2, window_bounds = array<i64: 4, 1, 32>}, {pipeline_mode = #tpu.pipeline_mode<synchronous>, transform_indices = @transform_3, window_bounds = array<i64: 128, 128>}, {pipeline_mode = #tpu.pipeline_mode<synchronous>, transform_indices = @transform_4, window_bounds = array<i64: 128, 256>}, {pipeline_mode = #tpu.pipeline_mode<synchronous>, transform_indices = @transform_5, window_bounds = array<i64: 128, 128>}, {transform_indices = @transform_6, window_bounds = array<i64: 4, 16, 128>}]} {
    %c0 = arith.constant 0 : index
    %c0_0 = arith.constant 0 : index
    %c0_1 = arith.constant 0 : index
    %0 = vector.load %arg1[%c0, %c0_0, %c0_1] : memref<4x16x128xf32, #tpu.memory_space<vmem>>, vector<4x16x128xf32>
    %1 = vector.shape_cast %0 : vector<4x16x128xf32> to vector<64x128xf32>
    %c0_2 = arith.constant 0 : index
    %c0_3 = arith.constant 0 : index
    %c0_4 = arith.constant 0 : index
    %2 = vector.load %arg2[%c0_2, %c0_3, %c0_4] : memref<4x32x128xf32, #tpu.memory_space<vmem>>, vector<4x32x128xf32>
    %3 = vector.shape_cast %2 : vector<4x32x128xf32> to vector<128x128xf32>
    %c0_5 = arith.constant 0 : index
    %c0_6 = arith.constant 0 : index
    %4 = vector.load %arg4[%c0_5, %c0_6] : memref<128x128xf32, #tpu.memory_space<vmem>>, vector<128x128xf32>
    %c0_7 = arith.constant 0 : index
    %c0_8 = arith.constant 0 : index
    %5 = vector.load %arg5[%c0_7, %c0_8] : memref<128x256xf32, #tpu.memory_space<vmem>>, vector<128x256xf32>
    %c0_9 = arith.constant 0 : index
    %c0_10 = arith.constant 0 : index
    %6 = vector.load %arg6[%c0_9, %c0_10] : memref<128x128xf32, #tpu.memory_space<vmem>>, vector<128x128xf32>
    %cst = arith.constant dense<0.000000e+00> : vector<64x128xf32>
    %7 = tpu.matmul %1, %4, %cst {dimension_numbers = #tpu.dot_dimension_numbers<[1], [0], [0], [1], [0, 0, 1, 1], [], []>} : vector<64x128xf32>, vector<128x128xf32>, vector<64x128xf32> -> vector<64x128xf32>
    %cst_11 = arith.constant dense<0.000000e+00> : vector<128x256xf32>
    %8 = tpu.matmul %3, %5, %cst_11 {dimension_numbers = #tpu.dot_dimension_numbers<[1], [0], [0], [1], [0, 0, 1, 1], [], []>} : vector<128x128xf32>, vector<128x256xf32>, vector<128x256xf32> -> vector<128x256xf32>
    %9 = vector.extract_strided_slice %8 {offsets = [0, 0], sizes = [128, 128], strides = [1, 1]} : vector<128x256xf32> to vector<128x128xf32>
    %10 = vector.extract_strided_slice %8 {offsets = [0, 128], sizes = [128, 128], strides = [1, 1]} : vector<128x256xf32> to vector<128x128xf32>
    %11 = vector.extract_strided_slice %7 {offsets = [0, 0], sizes = [16, 128], strides = [1, 1]} : vector<64x128xf32> to vector<16x128xf32>
    %12 = vector.extract_strided_slice %9 {offsets = [0, 0], sizes = [32, 128], strides = [1, 1]} : vector<128x128xf32> to vector<32x128xf32>
    %13 = vector.extract_strided_slice %10 {offsets = [0, 0], sizes = [32, 128], strides = [1, 1]} : vector<128x128xf32> to vector<32x128xf32>
    %c0_12 = arith.constant 0 : index
    %c0_13 = arith.constant 0 : index
    %c0_14 = arith.constant 0 : index
    %14 = vector.load %arg3[%c0_12, %c0_13, %c0_14] : memref<4x1x32xf32, #tpu.memory_space<vmem>>, vector<1x1x32xf32>
    %15 = vector.shape_cast %14 : vector<1x1x32xf32> to vector<1x32xf32>
    %cst_15 = arith.constant 0.000000e+00 : f32
    %16 = vector.broadcast %cst_15 : f32 to vector<16x128xf32>
    %17 = vector.extract_strided_slice %11 {offsets = [0, 0], sizes = [16, 32], strides = [1, 1]} : vector<16x128xf32> to vector<16x32xf32>
    %18 = vector.extract_strided_slice %12 {offsets = [0, 0], sizes = [32, 32], strides = [1, 1]} : vector<32x128xf32> to vector<32x32xf32>
    %19 = vector.extract_strided_slice %13 {offsets = [0, 0], sizes = [32, 32], strides = [1, 1]} : vector<32x128xf32> to vector<32x32xf32>
    %cst_16 = arith.constant dense<0.000000e+00> : vector<16x32xf32>
    %20 = tpu.matmul %17, %18, %cst_16 {dimension_numbers = #tpu.dot_dimension_numbers<[1], [1], [0], [0], [0, 0, 1, 0], [], []>} : vector<16x32xf32>, vector<32x32xf32>, vector<16x32xf32> -> vector<16x32xf32>
    %21 = vector.broadcast %15 : vector<1x32xf32> to vector<16x32xf32>
    %22 = arith.addf %20, %21 : vector<16x32xf32>
    %cst_17 = arith.constant dense<0xFF800000> : vector<16xf32>
    %23 = vector.multi_reduction <maximumf>, %22, %cst_17 [1] : vector<16x32xf32> to vector<16xf32>
    %24 = vector.shape_cast %23 : vector<16xf32> to vector<16x1xf32>
    %25 = vector.broadcast %24 : vector<16x1xf32> to vector<16x32xf32>
    %26 = arith.subf %22, %25 : vector<16x32xf32>
    %27 = math.exp %26 : vector<16x32xf32>
    %cst_18 = arith.constant dense<0.000000e+00> : vector<16xf32>
    %28 = vector.multi_reduction <add>, %27, %cst_18 [1] : vector<16x32xf32> to vector<16xf32>
    %29 = vector.shape_cast %28 : vector<16xf32> to vector<16x1xf32>
    %cst_19 = arith.constant dense<0.000000e+00> : vector<16x32xf32>
    %30 = tpu.matmul %27, %19, %cst_19 {dimension_numbers = #tpu.dot_dimension_numbers<[1], [0], [0], [1], [0, 0, 1, 1], [], []>} : vector<16x32xf32>, vector<32x32xf32>, vector<16x32xf32> -> vector<16x32xf32>
    %31 = tpu.reciprocal %29 : vector<16x1xf32> -> vector<16x1xf32>
    %32 = vector.broadcast %31 : vector<16x1xf32> to vector<16x32xf32>
    %33 = arith.mulf %30, %32 : vector<16x32xf32>
    %34 = vector.extract_strided_slice %6 {offsets = [0, 0], sizes = [32, 128], strides = [1, 1]} : vector<128x128xf32> to vector<32x128xf32>
    %cst_20 = arith.constant dense<0.000000e+00> : vector<16x128xf32>
    %35 = tpu.matmul %33, %34, %cst_20 {dimension_numbers = #tpu.dot_dimension_numbers<[1], [0], [0], [1], [0, 0, 1, 1], [], []>} : vector<16x32xf32>, vector<32x128xf32>, vector<16x128xf32> -> vector<16x128xf32>
    %36 = arith.addf %16, %35 : vector<16x128xf32>
    %37 = vector.extract_strided_slice %11 {offsets = [0, 32], sizes = [16, 32], strides = [1, 1]} : vector<16x128xf32> to vector<16x32xf32>
    %38 = vector.extract_strided_slice %12 {offsets = [0, 32], sizes = [32, 32], strides = [1, 1]} : vector<32x128xf32> to vector<32x32xf32>
    %39 = vector.extract_strided_slice %13 {offsets = [0, 32], sizes = [32, 32], strides = [1, 1]} : vector<32x128xf32> to vector<32x32xf32>
    %cst_21 = arith.constant dense<0.000000e+00> : vector<16x32xf32>
    %40 = tpu.matmul %37, %38, %cst_21 {dimension_numbers = #tpu.dot_dimension_numbers<[1], [1], [0], [0], [0, 0, 1, 0], [], []>} : vector<16x32xf32>, vector<32x32xf32>, vector<16x32xf32> -> vector<16x32xf32>
    %41 = vector.broadcast %15 : vector<1x32xf32> to vector<16x32xf32>
    %42 = arith.addf %40, %41 : vector<16x32xf32>
    %cst_22 = arith.constant dense<0xFF800000> : vector<16xf32>
    %43 = vector.multi_reduction <maximumf>, %42, %cst_22 [1] : vector<16x32xf32> to vector<16xf32>
    %44 = vector.shape_cast %43 : vector<16xf32> to vector<16x1xf32>
    %45 = vector.broadcast %44 : vector<16x1xf32> to vector<16x32xf32>
    %46 = arith.subf %42, %45 : vector<16x32xf32>
    %47 = math.exp %46 : vector<16x32xf32>
    %cst_23 = arith.constant dense<0.000000e+00> : vector<16xf32>
    %48 = vector.multi_reduction <add>, %47, %cst_23 [1] : vector<16x32xf32> to vector<16xf32>
    %49 = vector.shape_cast %48 : vector<16xf32> to vector<16x1xf32>
    %cst_24 = arith.constant dense<0.000000e+00> : vector<16x32xf32>
    %50 = tpu.matmul %47, %39, %cst_24 {dimension_numbers = #tpu.dot_dimension_numbers<[1], [0], [0], [1], [0, 0, 1, 1], [], []>} : vector<16x32xf32>, vector<32x32xf32>, vector<16x32xf32> -> vector<16x32xf32>
    %51 = tpu.reciprocal %49 : vector<16x1xf32> -> vector<16x1xf32>
    %52 = vector.broadcast %51 : vector<16x1xf32> to vector<16x32xf32>
    %53 = arith.mulf %50, %52 : vector<16x32xf32>
    %54 = vector.extract_strided_slice %6 {offsets = [32, 0], sizes = [32, 128], strides = [1, 1]} : vector<128x128xf32> to vector<32x128xf32>
    %cst_25 = arith.constant dense<0.000000e+00> : vector<16x128xf32>
    %55 = tpu.matmul %53, %54, %cst_25 {dimension_numbers = #tpu.dot_dimension_numbers<[1], [0], [0], [1], [0, 0, 1, 1], [], []>} : vector<16x32xf32>, vector<32x128xf32>, vector<16x128xf32> -> vector<16x128xf32>
    %56 = arith.addf %36, %55 : vector<16x128xf32>
    %57 = vector.extract_strided_slice %11 {offsets = [0, 64], sizes = [16, 32], strides = [1, 1]} : vector<16x128xf32> to vector<16x32xf32>
    %58 = vector.extract_strided_slice %12 {offsets = [0, 64], sizes = [32, 32], strides = [1, 1]} : vector<32x128xf32> to vector<32x32xf32>
    %59 = vector.extract_strided_slice %13 {offsets = [0, 64], sizes = [32, 32], strides = [1, 1]} : vector<32x128xf32> to vector<32x32xf32>
    %cst_26 = arith.constant dense<0.000000e+00> : vector<16x32xf32>
    %60 = tpu.matmul %57, %58, %cst_26 {dimension_numbers = #tpu.dot_dimension_numbers<[1], [1], [0], [0], [0, 0, 1, 0], [], []>} : vector<16x32xf32>, vector<32x32xf32>, vector<16x32xf32> -> vector<16x32xf32>
    %61 = vector.broadcast %15 : vector<1x32xf32> to vector<16x32xf32>
    %62 = arith.addf %60, %61 : vector<16x32xf32>
    %cst_27 = arith.constant dense<0xFF800000> : vector<16xf32>
    %63 = vector.multi_reduction <maximumf>, %62, %cst_27 [1] : vector<16x32xf32> to vector<16xf32>
    %64 = vector.shape_cast %63 : vector<16xf32> to vector<16x1xf32>
    %65 = vector.broadcast %64 : vector<16x1xf32> to vector<16x32xf32>
    %66 = arith.subf %62, %65 : vector<16x32xf32>
    %67 = math.exp %66 : vector<16x32xf32>
    %cst_28 = arith.constant dense<0.000000e+00> : vector<16xf32>
    %68 = vector.multi_reduction <add>, %67, %cst_28 [1] : vector<16x32xf32> to vector<16xf32>
    %69 = vector.shape_cast %68 : vector<16xf32> to vector<16x1xf32>
    %cst_29 = arith.constant dense<0.000000e+00> : vector<16x32xf32>
    %70 = tpu.matmul %67, %59, %cst_29 {dimension_numbers = #tpu.dot_dimension_numbers<[1], [0], [0], [1], [0, 0, 1, 1], [], []>} : vector<16x32xf32>, vector<32x32xf32>, vector<16x32xf32> -> vector<16x32xf32>
    %71 = tpu.reciprocal %69 : vector<16x1xf32> -> vector<16x1xf32>
    %72 = vector.broadcast %71 : vector<16x1xf32> to vector<16x32xf32>
    %73 = arith.mulf %70, %72 : vector<16x32xf32>
    %74 = vector.extract_strided_slice %6 {offsets = [64, 0], sizes = [32, 128], strides = [1, 1]} : vector<128x128xf32> to vector<32x128xf32>
    %cst_30 = arith.constant dense<0.000000e+00> : vector<16x128xf32>
    %75 = tpu.matmul %73, %74, %cst_30 {dimension_numbers = #tpu.dot_dimension_numbers<[1], [0], [0], [1], [0, 0, 1, 1], [], []>} : vector<16x32xf32>, vector<32x128xf32>, vector<16x128xf32> -> vector<16x128xf32>
    %76 = arith.addf %56, %75 : vector<16x128xf32>
    %77 = vector.extract_strided_slice %11 {offsets = [0, 96], sizes = [16, 32], strides = [1, 1]} : vector<16x128xf32> to vector<16x32xf32>
    %78 = vector.extract_strided_slice %12 {offsets = [0, 96], sizes = [32, 32], strides = [1, 1]} : vector<32x128xf32> to vector<32x32xf32>
    %79 = vector.extract_strided_slice %13 {offsets = [0, 96], sizes = [32, 32], strides = [1, 1]} : vector<32x128xf32> to vector<32x32xf32>
    %cst_31 = arith.constant dense<0.000000e+00> : vector<16x32xf32>
    %80 = tpu.matmul %77, %78, %cst_31 {dimension_numbers = #tpu.dot_dimension_numbers<[1], [1], [0], [0], [0, 0, 1, 0], [], []>} : vector<16x32xf32>, vector<32x32xf32>, vector<16x32xf32> -> vector<16x32xf32>
    %81 = vector.broadcast %15 : vector<1x32xf32> to vector<16x32xf32>
    %82 = arith.addf %80, %81 : vector<16x32xf32>
    %cst_32 = arith.constant dense<0xFF800000> : vector<16xf32>
    %83 = vector.multi_reduction <maximumf>, %82, %cst_32 [1] : vector<16x32xf32> to vector<16xf32>
    %84 = vector.shape_cast %83 : vector<16xf32> to vector<16x1xf32>
    %85 = vector.broadcast %84 : vector<16x1xf32> to vector<16x32xf32>
    %86 = arith.subf %82, %85 : vector<16x32xf32>
    %87 = math.exp %86 : vector<16x32xf32>
    %cst_33 = arith.constant dense<0.000000e+00> : vector<16xf32>
    %88 = vector.multi_reduction <add>, %87, %cst_33 [1] : vector<16x32xf32> to vector<16xf32>
    %89 = vector.shape_cast %88 : vector<16xf32> to vector<16x1xf32>
    %cst_34 = arith.constant dense<0.000000e+00> : vector<16x32xf32>
    %90 = tpu.matmul %87, %79, %cst_34 {dimension_numbers = #tpu.dot_dimension_numbers<[1], [0], [0], [1], [0, 0, 1, 1], [], []>} : vector<16x32xf32>, vector<32x32xf32>, vector<16x32xf32> -> vector<16x32xf32>
    %91 = tpu.reciprocal %89 : vector<16x1xf32> -> vector<16x1xf32>
    %92 = vector.broadcast %91 : vector<16x1xf32> to vector<16x32xf32>
    %93 = arith.mulf %90, %92 : vector<16x32xf32>
    %94 = vector.extract_strided_slice %6 {offsets = [96, 0], sizes = [32, 128], strides = [1, 1]} : vector<128x128xf32> to vector<32x128xf32>
    %cst_35 = arith.constant dense<0.000000e+00> : vector<16x128xf32>
    %95 = tpu.matmul %93, %94, %cst_35 {dimension_numbers = #tpu.dot_dimension_numbers<[1], [0], [0], [1], [0, 0, 1, 1], [], []>} : vector<16x32xf32>, vector<32x128xf32>, vector<16x128xf32> -> vector<16x128xf32>
    %96 = arith.addf %76, %95 : vector<16x128xf32>
    %c0_36 = arith.constant 0 : index
    %c0_37 = arith.constant 0 : index
    %c0_38 = arith.constant 0 : index
    %97 = vector.load %arg7[%c0_36, %c0_37, %c0_38] : memref<4x16x128xf32, #tpu.memory_space<vmem>>, vector<1x16x128xf32>
    %98 = vector.shape_cast %97 : vector<1x16x128xf32> to vector<16x128xf32>
    %99 = vector.shape_cast %96 : vector<16x128xf32> to vector<1x16x128xf32>
    tpu.vector_store %arg7[%c0_36, %c0_37, %c0_38], %99 {strides = array<i32>} : memref<4x16x128xf32, #tpu.memory_space<vmem>>, vector<1x16x128xf32>,
    %100 = vector.extract_strided_slice %7 {offsets = [16, 0], sizes = [16, 128], strides = [1, 1]} : vector<64x128xf32> to vector<16x128xf32>
    %101 = vector.extract_strided_slice %9 {offsets = [32, 0], sizes = [32, 128], strides = [1, 1]} : vector<128x128xf32> to vector<32x128xf32>
    %102 = vector.extract_strided_slice %10 {offsets = [32, 0], sizes = [32, 128], strides = [1, 1]} : vector<128x128xf32> to vector<32x128xf32>
    %c1 = arith.constant 1 : index
    %c0_39 = arith.constant 0 : index
    %c0_40 = arith.constant 0 : index
    %103 = vector.load %arg3[%c1, %c0_39, %c0_40] : memref<4x1x32xf32, #tpu.memory_space<vmem>>, vector<1x1x32xf32>
    %104 = vector.shape_cast %103 : vector<1x1x32xf32> to vector<1x32xf32>
    %cst_41 = arith.constant 0.000000e+00 : f32
    %105 = vector.broadcast %cst_41 : f32 to vector<16x128xf32>
    %106 = vector.extract_strided_slice %100 {offsets = [0, 0], sizes = [16, 32], strides = [1, 1]} : vector<16x128xf32> to vector<16x32xf32>
    %107 = vector.extract_strided_slice %101 {offsets = [0, 0], sizes = [32, 32], strides = [1, 1]} : vector<32x128xf32> to vector<32x32xf32>
    %108 = vector.extract_strided_slice %102 {offsets = [0, 0], sizes = [32, 32], strides = [1, 1]} : vector<32x128xf32> to vector<32x32xf32>
    %cst_42 = arith.constant dense<0.000000e+00> : vector<16x32xf32>
    %109 = tpu.matmul %106, %107, %cst_42 {dimension_numbers = #tpu.dot_dimension_numbers<[1], [1], [0], [0], [0, 0, 1, 0], [], []>} : vector<16x32xf32>, vector<32x32xf32>, vector<16x32xf32> -> vector<16x32xf32>
    %110 = vector.broadcast %104 : vector<1x32xf32> to vector<16x32xf32>
    %111 = arith.addf %109, %110 : vector<16x32xf32>
    %cst_43 = arith.constant dense<0xFF800000> : vector<16xf32>
    %112 = vector.multi_reduction <maximumf>, %111, %cst_43 [1] : vector<16x32xf32> to vector<16xf32>
    %113 = vector.shape_cast %112 : vector<16xf32> to vector<16x1xf32>
    %114 = vector.broadcast %113 : vector<16x1xf32> to vector<16x32xf32>
    %115 = arith.subf %111, %114 : vector<16x32xf32>
    %116 = math.exp %115 : vector<16x32xf32>
    %cst_44 = arith.constant dense<0.000000e+00> : vector<16xf32>
    %117 = vector.multi_reduction <add>, %116, %cst_44 [1] : vector<16x32xf32> to vector<16xf32>
    %118 = vector.shape_cast %117 : vector<16xf32> to vector<16x1xf32>
    %cst_45 = arith.constant dense<0.000000e+00> : vector<16x32xf32>
    %119 = tpu.matmul %116, %108, %cst_45 {dimension_numbers = #tpu.dot_dimension_numbers<[1], [0], [0], [1], [0, 0, 1, 1], [], []>} : vector<16x32xf32>, vector<32x32xf32>, vector<16x32xf32> -> vector<16x32xf32>
    %120 = tpu.reciprocal %118 : vector<16x1xf32> -> vector<16x1xf32>
    %121 = vector.broadcast %120 : vector<16x1xf32> to vector<16x32xf32>
    %122 = arith.mulf %119, %121 : vector<16x32xf32>
    %123 = vector.extract_strided_slice %6 {offsets = [0, 0], sizes = [32, 128], strides = [1, 1]} : vector<128x128xf32> to vector<32x128xf32>
    %cst_46 = arith.constant dense<0.000000e+00> : vector<16x128xf32>
    %124 = tpu.matmul %122, %123, %cst_46 {dimension_numbers = #tpu.dot_dimension_numbers<[1], [0], [0], [1], [0, 0, 1, 1], [], []>} : vector<16x32xf32>, vector<32x128xf32>, vector<16x128xf32> -> vector<16x128xf32>
    %125 = arith.addf %105, %124 : vector<16x128xf32>
    %126 = vector.extract_strided_slice %100 {offsets = [0, 32], sizes = [16, 32], strides = [1, 1]} : vector<16x128xf32> to vector<16x32xf32>
    %127 = vector.extract_strided_slice %101 {offsets = [0, 32], sizes = [32, 32], strides = [1, 1]} : vector<32x128xf32> to vector<32x32xf32>
    %128 = vector.extract_strided_slice %102 {offsets = [0, 32], sizes = [32, 32], strides = [1, 1]} : vector<32x128xf32> to vector<32x32xf32>
    %cst_47 = arith.constant dense<0.000000e+00> : vector<16x32xf32>
    %129 = tpu.matmul %126, %127, %cst_47 {dimension_numbers = #tpu.dot_dimension_numbers<[1], [1], [0], [0], [0, 0, 1, 0], [], []>} : vector<16x32xf32>, vector<32x32xf32>, vector<16x32xf32> -> vector<16x32xf32>
    %130 = vector.broadcast %104 : vector<1x32xf32> to vector<16x32xf32>
    %131 = arith.addf %129, %130 : vector<16x32xf32>
    %cst_48 = arith.constant dense<0xFF800000> : vector<16xf32>
    %132 = vector.multi_reduction <maximumf>, %131, %cst_48 [1] : vector<16x32xf32> to vector<16xf32>
    %133 = vector.shape_cast %132 : vector<16xf32> to vector<16x1xf32>
    %134 = vector.broadcast %133 : vector<16x1xf32> to vector<16x32xf32>
    %135 = arith.subf %131, %134 : vector<16x32xf32>
    %136 = math.exp %135 : vector<16x32xf32>
    %cst_49 = arith.constant dense<0.000000e+00> : vector<16xf32>
    %137 = vector.multi_reduction <add>, %136, %cst_49 [1] : vector<16x32xf32> to vector<16xf32>
    %138 = vector.shape_cast %137 : vector<16xf32> to vector<16x1xf32>
    %cst_50 = arith.constant dense<0.000000e+00> : vector<16x32xf32>
    %139 = tpu.matmul %136, %128, %cst_50 {dimension_numbers = #tpu.dot_dimension_numbers<[1], [0], [0], [1], [0, 0, 1, 1], [], []>} : vector<16x32xf32>, vector<32x32xf32>, vector<16x32xf32> -> vector<16x32xf32>
    %140 = tpu.reciprocal %138 : vector<16x1xf32> -> vector<16x1xf32>
    %141 = vector.broadcast %140 : vector<16x1xf32> to vector<16x32xf32>
    %142 = arith.mulf %139, %141 : vector<16x32xf32>
    %143 = vector.extract_strided_slice %6 {offsets = [32, 0], sizes = [32, 128], strides = [1, 1]} : vector<128x128xf32> to vector<32x128xf32>
    %cst_51 = arith.constant dense<0.000000e+00> : vector<16x128xf32>
    %144 = tpu.matmul %142, %143, %cst_51 {dimension_numbers = #tpu.dot_dimension_numbers<[1], [0], [0], [1], [0, 0, 1, 1], [], []>} : vector<16x32xf32>, vector<32x128xf32>, vector<16x128xf32> -> vector<16x128xf32>
    %145 = arith.addf %125, %144 : vector<16x128xf32>
    %146 = vector.extract_strided_slice %100 {offsets = [0, 64], sizes = [16, 32], strides = [1, 1]} : vector<16x128xf32> to vector<16x32xf32>
    %147 = vector.extract_strided_slice %101 {offsets = [0, 64], sizes = [32, 32], strides = [1, 1]} : vector<32x128xf32> to vector<32x32xf32>
    %148 = vector.extract_strided_slice %102 {offsets = [0, 64], sizes = [32, 32], strides = [1, 1]} : vector<32x128xf32> to vector<32x32xf32>
    %cst_52 = arith.constant dense<0.000000e+00> : vector<16x32xf32>
    %149 = tpu.matmul %146, %147, %cst_52 {dimension_numbers = #tpu.dot_dimension_numbers<[1], [1], [0], [0], [0, 0, 1, 0], [], []>} : vector<16x32xf32>, vector<32x32xf32>, vector<16x32xf32> -> vector<16x32xf32>
    %150 = vector.broadcast %104 : vector<1x32xf32> to vector<16x32xf32>
    %151 = arith.addf %149, %150 : vector<16x32xf32>
    %cst_53 = arith.constant dense<0xFF800000> : vector<16xf32>
    %152 = vector.multi_reduction <maximumf>, %151, %cst_53 [1] : vector<16x32xf32> to vector<16xf32>
    %153 = vector.shape_cast %152 : vector<16xf32> to vector<16x1xf32>
    %154 = vector.broadcast %153 : vector<16x1xf32> to vector<16x32xf32>
    %155 = arith.subf %151, %154 : vector<16x32xf32>
    %156 = math.exp %155 : vector<16x32xf32>
    %cst_54 = arith.constant dense<0.000000e+00> : vector<16xf32>
    %157 = vector.multi_reduction <add>, %156, %cst_54 [1] : vector<16x32xf32> to vector<16xf32>
    %158 = vector.shape_cast %157 : vector<16xf32> to vector<16x1xf32>
    %cst_55 = arith.constant dense<0.000000e+00> : vector<16x32xf32>
    %159 = tpu.matmul %156, %148, %cst_55 {dimension_numbers = #tpu.dot_dimension_numbers<[1], [0], [0], [1], [0, 0, 1, 1], [], []>} : vector<16x32xf32>, vector<32x32xf32>, vector<16x32xf32> -> vector<16x32xf32>
    %160 = tpu.reciprocal %158 : vector<16x1xf32> -> vector<16x1xf32>
    %161 = vector.broadcast %160 : vector<16x1xf32> to vector<16x32xf32>
    %162 = arith.mulf %159, %161 : vector<16x32xf32>
    %163 = vector.extract_strided_slice %6 {offsets = [64, 0], sizes = [32, 128], strides = [1, 1]} : vector<128x128xf32> to vector<32x128xf32>
    %cst_56 = arith.constant dense<0.000000e+00> : vector<16x128xf32>
    %164 = tpu.matmul %162, %163, %cst_56 {dimension_numbers = #tpu.dot_dimension_numbers<[1], [0], [0], [1], [0, 0, 1, 1], [], []>} : vector<16x32xf32>, vector<32x128xf32>, vector<16x128xf32> -> vector<16x128xf32>
    %165 = arith.addf %145, %164 : vector<16x128xf32>
    %166 = vector.extract_strided_slice %100 {offsets = [0, 96], sizes = [16, 32], strides = [1, 1]} : vector<16x128xf32> to vector<16x32xf32>
    %167 = vector.extract_strided_slice %101 {offsets = [0, 96], sizes = [32, 32], strides = [1, 1]} : vector<32x128xf32> to vector<32x32xf32>
    %168 = vector.extract_strided_slice %102 {offsets = [0, 96], sizes = [32, 32], strides = [1, 1]} : vector<32x128xf32> to vector<32x32xf32>
    %cst_57 = arith.constant dense<0.000000e+00> : vector<16x32xf32>
    %169 = tpu.matmul %166, %167, %cst_57 {dimension_numbers = #tpu.dot_dimension_numbers<[1], [1], [0], [0], [0, 0, 1, 0], [], []>} : vector<16x32xf32>, vector<32x32xf32>, vector<16x32xf32> -> vector<16x32xf32>
    %170 = vector.broadcast %104 : vector<1x32xf32> to vector<16x32xf32>
    %171 = arith.addf %169, %170 : vector<16x32xf32>
    %cst_58 = arith.constant dense<0xFF800000> : vector<16xf32>
    %172 = vector.multi_reduction <maximumf>, %171, %cst_58 [1] : vector<16x32xf32> to vector<16xf32>
    %173 = vector.shape_cast %172 : vector<16xf32> to vector<16x1xf32>
    %174 = vector.broadcast %173 : vector<16x1xf32> to vector<16x32xf32>
    %175 = arith.subf %171, %174 : vector<16x32xf32>
    %176 = math.exp %175 : vector<16x32xf32>
    %cst_59 = arith.constant dense<0.000000e+00> : vector<16xf32>
    %177 = vector.multi_reduction <add>, %176, %cst_59 [1] : vector<16x32xf32> to vector<16xf32>
    %178 = vector.shape_cast %177 : vector<16xf32> to vector<16x1xf32>
    %cst_60 = arith.constant dense<0.000000e+00> : vector<16x32xf32>
    %179 = tpu.matmul %176, %168, %cst_60 {dimension_numbers = #tpu.dot_dimension_numbers<[1], [0], [0], [1], [0, 0, 1, 1], [], []>} : vector<16x32xf32>, vector<32x32xf32>, vector<16x32xf32> -> vector<16x32xf32>
    %180 = tpu.reciprocal %178 : vector<16x1xf32> -> vector<16x1xf32>
    %181 = vector.broadcast %180 : vector<16x1xf32> to vector<16x32xf32>
    %182 = arith.mulf %179, %181 : vector<16x32xf32>
    %183 = vector.extract_strided_slice %6 {offsets = [96, 0], sizes = [32, 128], strides = [1, 1]} : vector<128x128xf32> to vector<32x128xf32>
    %cst_61 = arith.constant dense<0.000000e+00> : vector<16x128xf32>
    %184 = tpu.matmul %182, %183, %cst_61 {dimension_numbers = #tpu.dot_dimension_numbers<[1], [0], [0], [1], [0, 0, 1, 1], [], []>} : vector<16x32xf32>, vector<32x128xf32>, vector<16x128xf32> -> vector<16x128xf32>
    %185 = arith.addf %165, %184 : vector<16x128xf32>
    %c1_62 = arith.constant 1 : index
    %c0_63 = arith.constant 0 : index
    %c0_64 = arith.constant 0 : index
    %186 = vector.load %arg7[%c1_62, %c0_63, %c0_64] : memref<4x16x128xf32, #tpu.memory_space<vmem>>, vector<1x16x128xf32>
    %187 = vector.shape_cast %186 : vector<1x16x128xf32> to vector<16x128xf32>
    %188 = vector.shape_cast %185 : vector<16x128xf32> to vector<1x16x128xf32>
    tpu.vector_store %arg7[%c1_62, %c0_63, %c0_64], %188 {strides = array<i32>} : memref<4x16x128xf32, #tpu.memory_space<vmem>>, vector<1x16x128xf32>,
    %189 = vector.extract_strided_slice %7 {offsets = [32, 0], sizes = [16, 128], strides = [1, 1]} : vector<64x128xf32> to vector<16x128xf32>
    %190 = vector.extract_strided_slice %9 {offsets = [64, 0], sizes = [32, 128], strides = [1, 1]} : vector<128x128xf32> to vector<32x128xf32>
    %191 = vector.extract_strided_slice %10 {offsets = [64, 0], sizes = [32, 128], strides = [1, 1]} : vector<128x128xf32> to vector<32x128xf32>
    %c2 = arith.constant 2 : index
    %c0_65 = arith.constant 0 : index
    %c0_66 = arith.constant 0 : index
    %192 = vector.load %arg3[%c2, %c0_65, %c0_66] : memref<4x1x32xf32, #tpu.memory_space<vmem>>, vector<1x1x32xf32>
    %193 = vector.shape_cast %192 : vector<1x1x32xf32> to vector<1x32xf32>
    %cst_67 = arith.constant 0.000000e+00 : f32
    %194 = vector.broadcast %cst_67 : f32 to vector<16x128xf32>
    %195 = vector.extract_strided_slice %189 {offsets = [0, 0], sizes = [16, 32], strides = [1, 1]} : vector<16x128xf32> to vector<16x32xf32>
    %196 = vector.extract_strided_slice %190 {offsets = [0, 0], sizes = [32, 32], strides = [1, 1]} : vector<32x128xf32> to vector<32x32xf32>
    %197 = vector.extract_strided_slice %191 {offsets = [0, 0], sizes = [32, 32], strides = [1, 1]} : vector<32x128xf32> to vector<32x32xf32>
    %cst_68 = arith.constant dense<0.000000e+00> : vector<16x32xf32>
    %198 = tpu.matmul %195, %196, %cst_68 {dimension_numbers = #tpu.dot_dimension_numbers<[1], [1], [0], [0], [0, 0, 1, 0], [], []>} : vector<16x32xf32>, vector<32x32xf32>, vector<16x32xf32> -> vector<16x32xf32>
    %199 = vector.broadcast %193 : vector<1x32xf32> to vector<16x32xf32>
    %200 = arith.addf %198, %199 : vector<16x32xf32>
    %cst_69 = arith.constant dense<0xFF800000> : vector<16xf32>
    %201 = vector.multi_reduction <maximumf>, %200, %cst_69 [1] : vector<16x32xf32> to vector<16xf32>
    %202 = vector.shape_cast %201 : vector<16xf32> to vector<16x1xf32>
    %203 = vector.broadcast %202 : vector<16x1xf32> to vector<16x32xf32>
    %204 = arith.subf %200, %203 : vector<16x32xf32>
    %205 = math.exp %204 : vector<16x32xf32>
    %cst_70 = arith.constant dense<0.000000e+00> : vector<16xf32>
    %206 = vector.multi_reduction <add>, %205, %cst_70 [1] : vector<16x32xf32> to vector<16xf32>
    %207 = vector.shape_cast %206 : vector<16xf32> to vector<16x1xf32>
    %cst_71 = arith.constant dense<0.000000e+00> : vector<16x32xf32>
    %208 = tpu.matmul %205, %197, %cst_71 {dimension_numbers = #tpu.dot_dimension_numbers<[1], [0], [0], [1], [0, 0, 1, 1], [], []>} : vector<16x32xf32>, vector<32x32xf32>, vector<16x32xf32> -> vector<16x32xf32>
    %209 = tpu.reciprocal %207 : vector<16x1xf32> -> vector<16x1xf32>
    %210 = vector.broadcast %209 : vector<16x1xf32> to vector<16x32xf32>
    %211 = arith.mulf %208, %210 : vector<16x32xf32>
    %212 = vector.extract_strided_slice %6 {offsets = [0, 0], sizes = [32, 128], strides = [1, 1]} : vector<128x128xf32> to vector<32x128xf32>
    %cst_72 = arith.constant dense<0.000000e+00> : vector<16x128xf32>
    %213 = tpu.matmul %211, %212, %cst_72 {dimension_numbers = #tpu.dot_dimension_numbers<[1], [0], [0], [1], [0, 0, 1, 1], [], []>} : vector<16x32xf32>, vector<32x128xf32>, vector<16x128xf32> -> vector<16x128xf32>
    %214 = arith.addf %194, %213 : vector<16x128xf32>
    %215 = vector.extract_strided_slice %189 {offsets = [0, 32], sizes = [16, 32], strides = [1, 1]} : vector<16x128xf32> to vector<16x32xf32>
    %216 = vector.extract_strided_slice %190 {offsets = [0, 32], sizes = [32, 32], strides = [1, 1]} : vector<32x128xf32> to vector<32x32xf32>
    %217 = vector.extract_strided_slice %191 {offsets = [0, 32], sizes = [32, 32], strides = [1, 1]} : vector<32x128xf32> to vector<32x32xf32>
    %cst_73 = arith.constant dense<0.000000e+00> : vector<16x32xf32>
    %218 = tpu.matmul %215, %216, %cst_73 {dimension_numbers = #tpu.dot_dimension_numbers<[1], [1], [0], [0], [0, 0, 1, 0], [], []>} : vector<16x32xf32>, vector<32x32xf32>, vector<16x32xf32> -> vector<16x32xf32>
    %219 = vector.broadcast %193 : vector<1x32xf32> to vector<16x32xf32>
    %220 = arith.addf %218, %219 : vector<16x32xf32>
    %cst_74 = arith.constant dense<0xFF800000> : vector<16xf32>
    %221 = vector.multi_reduction <maximumf>, %220, %cst_74 [1] : vector<16x32xf32> to vector<16xf32>
    %222 = vector.shape_cast %221 : vector<16xf32> to vector<16x1xf32>
    %223 = vector.broadcast %222 : vector<16x1xf32> to vector<16x32xf32>
    %224 = arith.subf %220, %223 : vector<16x32xf32>
    %225 = math.exp %224 : vector<16x32xf32>
    %cst_75 = arith.constant dense<0.000000e+00> : vector<16xf32>
    %226 = vector.multi_reduction <add>, %225, %cst_75 [1] : vector<16x32xf32> to vector<16xf32>
    %227 = vector.shape_cast %226 : vector<16xf32> to vector<16x1xf32>
    %cst_76 = arith.constant dense<0.000000e+00> : vector<16x32xf32>
    %228 = tpu.matmul %225, %217, %cst_76 {dimension_numbers = #tpu.dot_dimension_numbers<[1], [0], [0], [1], [0, 0, 1, 1], [], []>} : vector<16x32xf32>, vector<32x32xf32>, vector<16x32xf32> -> vector<16x32xf32>
    %229 = tpu.reciprocal %227 : vector<16x1xf32> -> vector<16x1xf32>
    %230 = vector.broadcast %229 : vector<16x1xf32> to vector<16x32xf32>
    %231 = arith.mulf %228, %230 : vector<16x32xf32>
    %232 = vector.extract_strided_slice %6 {offsets = [32, 0], sizes = [32, 128], strides = [1, 1]} : vector<128x128xf32> to vector<32x128xf32>
    %cst_77 = arith.constant dense<0.000000e+00> : vector<16x128xf32>
    %233 = tpu.matmul %231, %232, %cst_77 {dimension_numbers = #tpu.dot_dimension_numbers<[1], [0], [0], [1], [0, 0, 1, 1], [], []>} : vector<16x32xf32>, vector<32x128xf32>, vector<16x128xf32> -> vector<16x128xf32>
    %234 = arith.addf %214, %233 : vector<16x128xf32>
    %235 = vector.extract_strided_slice %189 {offsets = [0, 64], sizes = [16, 32], strides = [1, 1]} : vector<16x128xf32> to vector<16x32xf32>
    %236 = vector.extract_strided_slice %190 {offsets = [0, 64], sizes = [32, 32], strides = [1, 1]} : vector<32x128xf32> to vector<32x32xf32>
    %237 = vector.extract_strided_slice %191 {offsets = [0, 64], sizes = [32, 32], strides = [1, 1]} : vector<32x128xf32> to vector<32x32xf32>
    %cst_78 = arith.constant dense<0.000000e+00> : vector<16x32xf32>
    %238 = tpu.matmul %235, %236, %cst_78 {dimension_numbers = #tpu.dot_dimension_numbers<[1], [1], [0], [0], [0, 0, 1, 0], [], []>} : vector<16x32xf32>, vector<32x32xf32>, vector<16x32xf32> -> vector<16x32xf32>
    %239 = vector.broadcast %193 : vector<1x32xf32> to vector<16x32xf32>
    %240 = arith.addf %238, %239 : vector<16x32xf32>
    %cst_79 = arith.constant dense<0xFF800000> : vector<16xf32>
    %241 = vector.multi_reduction <maximumf>, %240, %cst_79 [1] : vector<16x32xf32> to vector<16xf32>
    %242 = vector.shape_cast %241 : vector<16xf32> to vector<16x1xf32>
    %243 = vector.broadcast %242 : vector<16x1xf32> to vector<16x32xf32>
    %244 = arith.subf %240, %243 : vector<16x32xf32>
    %245 = math.exp %244 : vector<16x32xf32>
    %cst_80 = arith.constant dense<0.000000e+00> : vector<16xf32>
    %246 = vector.multi_reduction <add>, %245, %cst_80 [1] : vector<16x32xf32> to vector<16xf32>
    %247 = vector.shape_cast %246 : vector<16xf32> to vector<16x1xf32>
    %cst_81 = arith.constant dense<0.000000e+00> : vector<16x32xf32>
    %248 = tpu.matmul %245, %237, %cst_81 {dimension_numbers = #tpu.dot_dimension_numbers<[1], [0], [0], [1], [0, 0, 1, 1], [], []>} : vector<16x32xf32>, vector<32x32xf32>, vector<16x32xf32> -> vector<16x32xf32>
    %249 = tpu.reciprocal %247 : vector<16x1xf32> -> vector<16x1xf32>
    %250 = vector.broadcast %249 : vector<16x1xf32> to vector<16x32xf32>
    %251 = arith.mulf %248, %250 : vector<16x32xf32>
    %252 = vector.extract_strided_slice %6 {offsets = [64, 0], sizes = [32, 128], strides = [1, 1]} : vector<128x128xf32> to vector<32x128xf32>
    %cst_82 = arith.constant dense<0.000000e+00> : vector<16x128xf32>
    %253 = tpu.matmul %251, %252, %cst_82 {dimension_numbers = #tpu.dot_dimension_numbers<[1], [0], [0], [1], [0, 0, 1, 1], [], []>} : vector<16x32xf32>, vector<32x128xf32>, vector<16x128xf32> -> vector<16x128xf32>
    %254 = arith.addf %234, %253 : vector<16x128xf32>
    %255 = vector.extract_strided_slice %189 {offsets = [0, 96], sizes = [16, 32], strides = [1, 1]} : vector<16x128xf32> to vector<16x32xf32>
    %256 = vector.extract_strided_slice %190 {offsets = [0, 96], sizes = [32, 32], strides = [1, 1]} : vector<32x128xf32> to vector<32x32xf32>
    %257 = vector.extract_strided_slice %191 {offsets = [0, 96], sizes = [32, 32], strides = [1, 1]} : vector<32x128xf32> to vector<32x32xf32>
    %cst_83 = arith.constant dense<0.000000e+00> : vector<16x32xf32>
    %258 = tpu.matmul %255, %256, %cst_83 {dimension_numbers = #tpu.dot_dimension_numbers<[1], [1], [0], [0], [0, 0, 1, 0], [], []>} : vector<16x32xf32>, vector<32x32xf32>, vector<16x32xf32> -> vector<16x32xf32>
    %259 = vector.broadcast %193 : vector<1x32xf32> to vector<16x32xf32>
    %260 = arith.addf %258, %259 : vector<16x32xf32>
    %cst_84 = arith.constant dense<0xFF800000> : vector<16xf32>
    %261 = vector.multi_reduction <maximumf>, %260, %cst_84 [1] : vector<16x32xf32> to vector<16xf32>
    %262 = vector.shape_cast %261 : vector<16xf32> to vector<16x1xf32>
    %263 = vector.broadcast %262 : vector<16x1xf32> to vector<16x32xf32>
    %264 = arith.subf %260, %263 : vector<16x32xf32>
    %265 = math.exp %264 : vector<16x32xf32>
    %cst_85 = arith.constant dense<0.000000e+00> : vector<16xf32>
    %266 = vector.multi_reduction <add>, %265, %cst_85 [1] : vector<16x32xf32> to vector<16xf32>
    %267 = vector.shape_cast %266 : vector<16xf32> to vector<16x1xf32>
    %cst_86 = arith.constant dense<0.000000e+00> : vector<16x32xf32>
    %268 = tpu.matmul %265, %257, %cst_86 {dimension_numbers = #tpu.dot_dimension_numbers<[1], [0], [0], [1], [0, 0, 1, 1], [], []>} : vector<16x32xf32>, vector<32x32xf32>, vector<16x32xf32> -> vector<16x32xf32>
    %269 = tpu.reciprocal %267 : vector<16x1xf32> -> vector<16x1xf32>
    %270 = vector.broadcast %269 : vector<16x1xf32> to vector<16x32xf32>
    %271 = arith.mulf %268, %270 : vector<16x32xf32>
    %272 = vector.extract_strided_slice %6 {offsets = [96, 0], sizes = [32, 128], strides = [1, 1]} : vector<128x128xf32> to vector<32x128xf32>
    %cst_87 = arith.constant dense<0.000000e+00> : vector<16x128xf32>
    %273 = tpu.matmul %271, %272, %cst_87 {dimension_numbers = #tpu.dot_dimension_numbers<[1], [0], [0], [1], [0, 0, 1, 1], [], []>} : vector<16x32xf32>, vector<32x128xf32>, vector<16x128xf32> -> vector<16x128xf32>
    %274 = arith.addf %254, %273 : vector<16x128xf32>
    %c2_88 = arith.constant 2 : index
    %c0_89 = arith.constant 0 : index
    %c0_90 = arith.constant 0 : index
    %275 = vector.load %arg7[%c2_88, %c0_89, %c0_90] : memref<4x16x128xf32, #tpu.memory_space<vmem>>, vector<1x16x128xf32>
    %276 = vector.shape_cast %275 : vector<1x16x128xf32> to vector<16x128xf32>
    %277 = vector.shape_cast %274 : vector<16x128xf32> to vector<1x16x128xf32>
    tpu.vector_store %arg7[%c2_88, %c0_89, %c0_90], %277 {strides = array<i32>} : memref<4x16x128xf32, #tpu.memory_space<vmem>>, vector<1x16x128xf32>,
    %278 = vector.extract_strided_slice %7 {offsets = [48, 0], sizes = [16, 128], strides = [1, 1]} : vector<64x128xf32> to vector<16x128xf32>
    %279 = vector.extract_strided_slice %9 {offsets = [96, 0], sizes = [32, 128], strides = [1, 1]} : vector<128x128xf32> to vector<32x128xf32>
    %280 = vector.extract_strided_slice %10 {offsets = [96, 0], sizes = [32, 128], strides = [1, 1]} : vector<128x128xf32> to vector<32x128xf32>
    %c3 = arith.constant 3 : index
    %c0_91 = arith.constant 0 : index
    %c0_92 = arith.constant 0 : index
    %281 = vector.load %arg3[%c3, %c0_91, %c0_92] : memref<4x1x32xf32, #tpu.memory_space<vmem>>, vector<1x1x32xf32>
    %282 = vector.shape_cast %281 : vector<1x1x32xf32> to vector<1x32xf32>
    %cst_93 = arith.constant 0.000000e+00 : f32
    %283 = vector.broadcast %cst_93 : f32 to vector<16x128xf32>
    %284 = vector.extract_strided_slice %278 {offsets = [0, 0], sizes = [16, 32], strides = [1, 1]} : vector<16x128xf32> to vector<16x32xf32>
    %285 = vector.extract_strided_slice %279 {offsets = [0, 0], sizes = [32, 32], strides = [1, 1]} : vector<32x128xf32> to vector<32x32xf32>
    %286 = vector.extract_strided_slice %280 {offsets = [0, 0], sizes = [32, 32], strides = [1, 1]} : vector<32x128xf32> to vector<32x32xf32>
    %cst_94 = arith.constant dense<0.000000e+00> : vector<16x32xf32>
    %287 = tpu.matmul %284, %285, %cst_94 {dimension_numbers = #tpu.dot_dimension_numbers<[1], [1], [0], [0], [0, 0, 1, 0], [], []>} : vector<16x32xf32>, vector<32x32xf32>, vector<16x32xf32> -> vector<16x32xf32>
    %288 = vector.broadcast %282 : vector<1x32xf32> to vector<16x32xf32>
    %289 = arith.addf %287, %288 : vector<16x32xf32>
    %cst_95 = arith.constant dense<0xFF800000> : vector<16xf32>
    %290 = vector.multi_reduction <maximumf>, %289, %cst_95 [1] : vector<16x32xf32> to vector<16xf32>
    %291 = vector.shape_cast %290 : vector<16xf32> to vector<16x1xf32>
    %292 = vector.broadcast %291 : vector<16x1xf32> to vector<16x32xf32>
    %293 = arith.subf %289, %292 : vector<16x32xf32>
    %294 = math.exp %293 : vector<16x32xf32>
    %cst_96 = arith.constant dense<0.000000e+00> : vector<16xf32>
    %295 = vector.multi_reduction <add>, %294, %cst_96 [1] : vector<16x32xf32> to vector<16xf32>
    %296 = vector.shape_cast %295 : vector<16xf32> to vector<16x1xf32>
    %cst_97 = arith.constant dense<0.000000e+00> : vector<16x32xf32>
    %297 = tpu.matmul %294, %286, %cst_97 {dimension_numbers = #tpu.dot_dimension_numbers<[1], [0], [0], [1], [0, 0, 1, 1], [], []>} : vector<16x32xf32>, vector<32x32xf32>, vector<16x32xf32> -> vector<16x32xf32>
    %298 = tpu.reciprocal %296 : vector<16x1xf32> -> vector<16x1xf32>
    %299 = vector.broadcast %298 : vector<16x1xf32> to vector<16x32xf32>
    %300 = arith.mulf %297, %299 : vector<16x32xf32>
    %301 = vector.extract_strided_slice %6 {offsets = [0, 0], sizes = [32, 128], strides = [1, 1]} : vector<128x128xf32> to vector<32x128xf32>
    %cst_98 = arith.constant dense<0.000000e+00> : vector<16x128xf32>
    %302 = tpu.matmul %300, %301, %cst_98 {dimension_numbers = #tpu.dot_dimension_numbers<[1], [0], [0], [1], [0, 0, 1, 1], [], []>} : vector<16x32xf32>, vector<32x128xf32>, vector<16x128xf32> -> vector<16x128xf32>
    %303 = arith.addf %283, %302 : vector<16x128xf32>
    %304 = vector.extract_strided_slice %278 {offsets = [0, 32], sizes = [16, 32], strides = [1, 1]} : vector<16x128xf32> to vector<16x32xf32>
    %305 = vector.extract_strided_slice %279 {offsets = [0, 32], sizes = [32, 32], strides = [1, 1]} : vector<32x128xf32> to vector<32x32xf32>
    %306 = vector.extract_strided_slice %280 {offsets = [0, 32], sizes = [32, 32], strides = [1, 1]} : vector<32x128xf32> to vector<32x32xf32>
    %cst_99 = arith.constant dense<0.000000e+00> : vector<16x32xf32>
    %307 = tpu.matmul %304, %305, %cst_99 {dimension_numbers = #tpu.dot_dimension_numbers<[1], [1], [0], [0], [0, 0, 1, 0], [], []>} : vector<16x32xf32>, vector<32x32xf32>, vector<16x32xf32> -> vector<16x32xf32>
    %308 = vector.broadcast %282 : vector<1x32xf32> to vector<16x32xf32>
    %309 = arith.addf %307, %308 : vector<16x32xf32>
    %cst_100 = arith.constant dense<0xFF800000> : vector<16xf32>
    %310 = vector.multi_reduction <maximumf>, %309, %cst_100 [1] : vector<16x32xf32> to vector<16xf32>
    %311 = vector.shape_cast %310 : vector<16xf32> to vector<16x1xf32>
    %312 = vector.broadcast %311 : vector<16x1xf32> to vector<16x32xf32>
    %313 = arith.subf %309, %312 : vector<16x32xf32>
    %314 = math.exp %313 : vector<16x32xf32>
    %cst_101 = arith.constant dense<0.000000e+00> : vector<16xf32>
    %315 = vector.multi_reduction <add>, %314, %cst_101 [1] : vector<16x32xf32> to vector<16xf32>
    %316 = vector.shape_cast %315 : vector<16xf32> to vector<16x1xf32>
    %cst_102 = arith.constant dense<0.000000e+00> : vector<16x32xf32>
    %317 = tpu.matmul %314, %306, %cst_102 {dimension_numbers = #tpu.dot_dimension_numbers<[1], [0], [0], [1], [0, 0, 1, 1], [], []>} : vector<16x32xf32>, vector<32x32xf32>, vector<16x32xf32> -> vector<16x32xf32>
    %318 = tpu.reciprocal %316 : vector<16x1xf32> -> vector<16x1xf32>
    %319 = vector.broadcast %318 : vector<16x1xf32> to vector<16x32xf32>
    %320 = arith.mulf %317, %319 : vector<16x32xf32>
    %321 = vector.extract_strided_slice %6 {offsets = [32, 0], sizes = [32, 128], strides = [1, 1]} : vector<128x128xf32> to vector<32x128xf32>
    %cst_103 = arith.constant dense<0.000000e+00> : vector<16x128xf32>
    %322 = tpu.matmul %320, %321, %cst_103 {dimension_numbers = #tpu.dot_dimension_numbers<[1], [0], [0], [1], [0, 0, 1, 1], [], []>} : vector<16x32xf32>, vector<32x128xf32>, vector<16x128xf32> -> vector<16x128xf32>
    %323 = arith.addf %303, %322 : vector<16x128xf32>
    %324 = vector.extract_strided_slice %278 {offsets = [0, 64], sizes = [16, 32], strides = [1, 1]} : vector<16x128xf32> to vector<16x32xf32>
    %325 = vector.extract_strided_slice %279 {offsets = [0, 64], sizes = [32, 32], strides = [1, 1]} : vector<32x128xf32> to vector<32x32xf32>
    %326 = vector.extract_strided_slice %280 {offsets = [0, 64], sizes = [32, 32], strides = [1, 1]} : vector<32x128xf32> to vector<32x32xf32>
    %cst_104 = arith.constant dense<0.000000e+00> : vector<16x32xf32>
    %327 = tpu.matmul %324, %325, %cst_104 {dimension_numbers = #tpu.dot_dimension_numbers<[1], [1], [0], [0], [0, 0, 1, 0], [], []>} : vector<16x32xf32>, vector<32x32xf32>, vector<16x32xf32> -> vector<16x32xf32>
    %328 = vector.broadcast %282 : vector<1x32xf32> to vector<16x32xf32>
    %329 = arith.addf %327, %328 : vector<16x32xf32>
    %cst_105 = arith.constant dense<0xFF800000> : vector<16xf32>
    %330 = vector.multi_reduction <maximumf>, %329, %cst_105 [1] : vector<16x32xf32> to vector<16xf32>
    %331 = vector.shape_cast %330 : vector<16xf32> to vector<16x1xf32>
    %332 = vector.broadcast %331 : vector<16x1xf32> to vector<16x32xf32>
    %333 = arith.subf %329, %332 : vector<16x32xf32>
    %334 = math.exp %333 : vector<16x32xf32>
    %cst_106 = arith.constant dense<0.000000e+00> : vector<16xf32>
    %335 = vector.multi_reduction <add>, %334, %cst_106 [1] : vector<16x32xf32> to vector<16xf32>
    %336 = vector.shape_cast %335 : vector<16xf32> to vector<16x1xf32>
    %cst_107 = arith.constant dense<0.000000e+00> : vector<16x32xf32>
    %337 = tpu.matmul %334, %326, %cst_107 {dimension_numbers = #tpu.dot_dimension_numbers<[1], [0], [0], [1], [0, 0, 1, 1], [], []>} : vector<16x32xf32>, vector<32x32xf32>, vector<16x32xf32> -> vector<16x32xf32>
    %338 = tpu.reciprocal %336 : vector<16x1xf32> -> vector<16x1xf32>
    %339 = vector.broadcast %338 : vector<16x1xf32> to vector<16x32xf32>
    %340 = arith.mulf %337, %339 : vector<16x32xf32>
    %341 = vector.extract_strided_slice %6 {offsets = [64, 0], sizes = [32, 128], strides = [1, 1]} : vector<128x128xf32> to vector<32x128xf32>
    %cst_108 = arith.constant dense<0.000000e+00> : vector<16x128xf32>
    %342 = tpu.matmul %340, %341, %cst_108 {dimension_numbers = #tpu.dot_dimension_numbers<[1], [0], [0], [1], [0, 0, 1, 1], [], []>} : vector<16x32xf32>, vector<32x128xf32>, vector<16x128xf32> -> vector<16x128xf32>
    %343 = arith.addf %323, %342 : vector<16x128xf32>
    %344 = vector.extract_strided_slice %278 {offsets = [0, 96], sizes = [16, 32], strides = [1, 1]} : vector<16x128xf32> to vector<16x32xf32>
    %345 = vector.extract_strided_slice %279 {offsets = [0, 96], sizes = [32, 32], strides = [1, 1]} : vector<32x128xf32> to vector<32x32xf32>
    %346 = vector.extract_strided_slice %280 {offsets = [0, 96], sizes = [32, 32], strides = [1, 1]} : vector<32x128xf32> to vector<32x32xf32>
    %cst_109 = arith.constant dense<0.000000e+00> : vector<16x32xf32>
    %347 = tpu.matmul %344, %345, %cst_109 {dimension_numbers = #tpu.dot_dimension_numbers<[1], [1], [0], [0], [0, 0, 1, 0], [], []>} : vector<16x32xf32>, vector<32x32xf32>, vector<16x32xf32> -> vector<16x32xf32>
    %348 = vector.broadcast %282 : vector<1x32xf32> to vector<16x32xf32>
    %349 = arith.addf %347, %348 : vector<16x32xf32>
    %cst_110 = arith.constant dense<0xFF800000> : vector<16xf32>
    %350 = vector.multi_reduction <maximumf>, %349, %cst_110 [1] : vector<16x32xf32> to vector<16xf32>
    %351 = vector.shape_cast %350 : vector<16xf32> to vector<16x1xf32>
    %352 = vector.broadcast %351 : vector<16x1xf32> to vector<16x32xf32>
    %353 = arith.subf %349, %352 : vector<16x32xf32>
    %354 = math.exp %353 : vector<16x32xf32>
    %cst_111 = arith.constant dense<0.000000e+00> : vector<16xf32>
    %355 = vector.multi_reduction <add>, %354, %cst_111 [1] : vector<16x32xf32> to vector<16xf32>
    %356 = vector.shape_cast %355 : vector<16xf32> to vector<16x1xf32>
    %cst_112 = arith.constant dense<0.000000e+00> : vector<16x32xf32>
    %357 = tpu.matmul %354, %346, %cst_112 {dimension_numbers = #tpu.dot_dimension_numbers<[1], [0], [0], [1], [0, 0, 1, 1], [], []>} : vector<16x32xf32>, vector<32x32xf32>, vector<16x32xf32> -> vector<16x32xf32>
    %358 = tpu.reciprocal %356 : vector<16x1xf32> -> vector<16x1xf32>
    %359 = vector.broadcast %358 : vector<16x1xf32> to vector<16x32xf32>
    %360 = arith.mulf %357, %359 : vector<16x32xf32>
    %361 = vector.extract_strided_slice %6 {offsets = [96, 0], sizes = [32, 128], strides = [1, 1]} : vector<128x128xf32> to vector<32x128xf32>
    %cst_113 = arith.constant dense<0.000000e+00> : vector<16x128xf32>
    %362 = tpu.matmul %360, %361, %cst_113 {dimension_numbers = #tpu.dot_dimension_numbers<[1], [0], [0], [1], [0, 0, 1, 1], [], []>} : vector<16x32xf32>, vector<32x128xf32>, vector<16x128xf32> -> vector<16x128xf32>
    %363 = arith.addf %343, %362 : vector<16x128xf32>
    %c3_114 = arith.constant 3 : index
    %c0_115 = arith.constant 0 : index
    %c0_116 = arith.constant 0 : index
    %364 = vector.load %arg7[%c3_114, %c0_115, %c0_116] : memref<4x16x128xf32, #tpu.memory_space<vmem>>, vector<1x16x128xf32>
    %365 = vector.shape_cast %364 : vector<1x16x128xf32> to vector<16x128xf32>
    %366 = vector.shape_cast %363 : vector<16x128xf32> to vector<1x16x128xf32>
    tpu.vector_store %arg7[%c3_114, %c0_115, %c0_116], %366 {strides = array<i32>} : memref<4x16x128xf32, #tpu.memory_space<vmem>>, vector<1x16x128xf32>,
    return
  }
  func.func @transform_0(%arg0: i32) -> (i32, i32, i32) {
    %c0_i32 = arith.constant 0 : i32
    %c0_i32_0 = arith.constant 0 : i32
    %c0_i32_1 = arith.constant 0 : i32
    return %arg0, %c0_i32, %c0_i32_0 : i32, i32, i32
  }
  func.func @transform_1(%arg0: i32) -> (i32, i32, i32) {
    %c0_i32 = arith.constant 0 : i32
    %c0_i32_0 = arith.constant 0 : i32
    %c0_i32_1 = arith.constant 0 : i32
    return %arg0, %c0_i32, %c0_i32_0 : i32, i32, i32
  }
  func.func @transform_2(%arg0: i32) -> (i32, i32, i32) {
    %c0_i32 = arith.constant 0 : i32
    %c0_i32_0 = arith.constant 0 : i32
    %c0_i32_1 = arith.constant 0 : i32
    return %arg0, %c0_i32, %c0_i32_0 : i32, i32, i32
  }
  func.func @transform_3(%arg0: i32) -> (i32, i32) {
    %c0_i32 = arith.constant 0 : i32
    %c0_i32_0 = arith.constant 0 : i32
    %c0_i32_1 = arith.constant 0 : i32
    return %c0_i32, %c0_i32_0 : i32, i32
  }
  func.func @transform_4(%arg0: i32) -> (i32, i32) {
    %c0_i32 = arith.constant 0 : i32
    %c0_i32_0 = arith.constant 0 : i32
    %c0_i32_1 = arith.constant 0 : i32
    return %c0_i32, %c0_i32_0 : i32, i32
  }
  func.func @transform_5(%arg0: i32) -> (i32, i32) {
    %c0_i32 = arith.constant 0 : i32
    %c0_i32_0 = arith.constant 0 : i32
    %c0_i32_1 = arith.constant 0 : i32
    return %c0_i32, %c0_i32_0 : i32, i32
  }
  func.func @transform_6(%arg0: i32) -> (i32, i32, i32) {
    %c0_i32 = arith.constant 0 : i32
    %c0_i32_0 = arith.constant 0 : i32
    %c0_i32_1 = arith.constant 0 : i32
    return %arg0, %c0_i32, %c0_i32_0 : i32, i32, i32
  }
}

</mosaic_0001>

<bundles_post_ra>
// kernel: particle_attention.1
= control target key start
LH: loop header
LB: loop body
LE: loop exit
PB: predicated region body
PF: predicated region fallthrough
CT: control target
= control target key end

     0   :  { %11 = vsyncpa [#allocation3], 0  ;;  %s5090_s0 = inlined_call_operand.vmem [shape: f32[8,16,128], index: 0, kind: input, shape index: {}]   ;;  %s5091_s1 = inlined_call_operand.vmem [shape: f32[8,32,128], index: 1, kind: input, shape index: {}]   ;;  %s5092_s2 = inlined_call_operand.vmem [shape: f32[8,1,32], index: 2, kind: input, shape index: {}]   ;;  %s5093_s3 = inlined_call_operand.vmem [shape: f32[128,128], index: 3, kind: input, shape index: {}]   ;;  %s5094_s4 = inlined_call_operand.vmem [shape: f32[128,256], index: 4, kind: input, shape index: {}]   ;;  %s5095_s5 = inlined_call_operand.hbm [shape: f32[128,128], index: 5, kind: input, shape index: {}]   ;;  %s5096_s6 = inlined_call_operand.hbm [shape: f32[8,16,128], index: 6, kind: output, shape index: {}]  }
   0x1   :  { %12 = vsyncpa [#allocation4], 0 }
   0x2   :  { %14 = vsyncpa [#allocation4 + $0x1], 0  ;;  %s3982_s21 = smov 0   ;;  %s3984_s22 = smov 0  }
   0x3   :  { %s3986_s23 = smov 0   ;;  %s3988_s24 = smov 0  }
   0x4 LB: > { %s4003_s25 = sadd.s32 4294967295, %s3937_s24   ;;  %s3319_s26 = sadd.s32 4294967294, %s3937_s24   ;;  %s3937_s24 = sphi %s3988_s24, %s5102_s24   ;;  %s3933_s23 = sphi %s3986_s23, %s5101_s23   ;;  %s3929_s22 = sphi %s3984_s22, %s5100_s22   ;;  %s3925_s21 = sphi %s3982_s21, %s5099_s21  }
   0x5   : > { %s4007_s27 = sadd.s32 1, %s3937_s24   ;;  %s168_s28 = sadd.s32 1, %s3933_s23 }
   0x6   : > { %s165_s29 = ssub.s32 %s3937_s24, %s4007_s27  ;;  %p178_p0 = scmp.ne.s32.totalorder %s3933_s23, %s3929_s22 }
   0x7   : > { %p166_p1 = scmp.eq.s32.totalorder %s165_s29, 0  ;;  %p179_p2 = scmp.eq.s32.totalorder %s4003_s25, 1 }
   0x8   : > { %p184_p3 = scmp.ne.s32.totalorder %s3929_s22, %s3925_s21  ;;  %p185_p4 = scmp.eq.s32.totalorder %s3319_s26, 1 }
   0x9   : > { %s4018_s30 = scalar_select %p166_p1, %s3933_s23, %s168_s28  }
   0xa   : > { %p4020_p5 = por %p179_p2, %p178_p0  ;;  %p4024_p6 = por %p185_p4, %p184_p3 }
   0xb   : > { %p3320_p7 = scmp.ge.s32.totalorder %s3937_s24, 1  ;;  %p192_p8 = scmp.lt.s32.totalorder %s3937_s24, 3 }
   0xc   : > { %p3530_p9 = scmp.eq.s32.totalorder %s4003_s25, 0  ;;  %s209_s11 = sshll.u32 %s5095_s5, 4  ;;  %s210_s11 = int_to_ptr.hbm [resolvable:$true] %s209_s11 }
   0xd   : > { %p193_p10 = pnand %p3320_p7, %p192_p8  ;;  %s3939_s12 = smov [#allocation2]  }
   0xe   : > { %s211_s13 = sshll.u32 %s3939_s12, 4  ;;  %s3940_s14 = smov 128   ;;  %s212_s13 = int_to_ptr.vmem [resolvable:$true] %s211_s13 }
   0xf   : > { %p3522_p11 = pneg %p193_p10  ;;  %s3941_s15 = smov 8  }
  0x10   : > { %255 = sbr.rel (%p193_p10) target bundleno = 3828 (0xef4), region = 44 }
  0x11   : > { %p3523_p12 = pnand %p3530_p9, %p3522_p11 }
  0x13   : > { %3525 = dma.hbm_to_vmem [thread:$0]  (!%p3523_p12), %s210_s11, 2048, %s212_s13, [#allocation3], %s3940_s14, %s3940_s14, %s3941_s15  }
  0x15   : > { %3916 = dma.done.wait (%p3530_p9), [#allocation3], 2048  }
  0x16   : > { %3918 = vsyncadd (%p3530_p9), [#allocation3], 4294965248  ;;  %v387_v0 = vld [vmem:[%s5094_s4 + $0xf0] sm:$0xff]  ;;  %v385_v1 = vld [vmem:[%s5094_s4 + $0xe0] sm:$0xff]  ;;  %s3326_s10 = sshll.u32 %s4003_s25, 2  ;;  %s3942_s13 = smov 96  }
  0x17   : > { %446 = vmatpush.msra.mxu1 %v387_v0  ;;  %v383_v2 = vld [vmem:[%s5094_s4 + $0xd0] sm:$0xff]  ;;  %v381_v3 = vld [vmem:[%s5094_s4 + $0xc0] sm:$0xff]  ;;  %v356_v4 = vld [vmem:[%s5093_s3 + $0x78] sm:$0xff]  ;;  %p298_p13 = scmp.lt.s32.totalorder %s3326_s10, 7  ;;  %vm580_vm0 = vcmask 261120  }
  0x18   : > { %v379_v5 = vld [vmem:[%s5094_s4 + $0xb0] sm:$0xff]  ;;  %405 = vmatpush.msra.mxu0 %v356_v4  ;;  %v377_v6 = vld [vmem:[%s5094_s4 + $0xa0] sm:$0xff]  ;;  %v354_v8 = vld [vmem:[%s5093_s3 + $0x68] sm:$0xff] }
  0x19   : > { %447 = vmatpush.msra.mxu1 %v385_v1  ;;  %v355_v7 = vld [vmem:[%s5093_s3 + $0x70] sm:$0xff]  ;;  %v353_v10 = vld [vmem:[%s5093_s3 + $0x60] sm:$0xff]  ;;  %v352_v12 = vld [vmem:[%s5093_s3 + $0x58] sm:$0xff]  ;;  %s5104_s10 = smov (!%p298_p13, %s3326_s10), 7 }
  0x1a   : > { %406 = vmatpush.msra.mxu0 %v355_v7  ;;  %v375_v9 = vld [vmem:[%s5094_s4 + $0x90] sm:$0xff]  ;;  %v373_v11 = vld [vmem:[%s5094_s4 + $0x80] sm:$0xff]  ;;  %v350_v16 = vld [vmem:[%s5093_s3 + $0x48] sm:$0xff]  ;;  %s3509_s17 = sshll.u32 %s5104_s10, 5  ;;  %s3508_s11 = sshll.u32 %s5104_s10, 4 }
  0x1b   : > { %448 = vmatpush.msra.mxu1 %v383_v2  ;;  %v371_v13 = vld [vmem:[%s5094_s4 + $0x70] sm:$0xff]  ;;  %v369_v14 = vld [vmem:[%s5094_s4 + $0x60] sm:$0xff]  ;;  %v348_v20 = vld [vmem:[%s5093_s3 + $0x38] sm:$0xff]  ;;  %s4125_s14 = scalar_lea.vmem %s5091_s1, %s3509_s17  ;;  %s4159_s17 = scalar_lea.vmem %s5090_s0, %s3508_s11 }
  0x1c   : > { %407 = vmatpush.msra.mxu0 %v354_v8  ;;  %v351_v15 = vld [vmem:[%s5093_s3 + $0x50] sm:$0xff]  ;;  %v349_v18 = vld [vmem:[%s5093_s3 + $0x40] sm:$0xff]  ;;  %v346_v24 = vld [vmem:[%s5093_s3 + $0x28] sm:$0xff]  ;;  %s4241_s18 = scalar_lea.vmem %s5092_s2, %s5104_s10  ;;  %s3943_s10 = smov 64  }
  0x1d   : > { %449 = vmatpush.msra.mxu1 %v381_v3  ;;  %v367_v17 = vld [vmem:[%s5094_s4 + $0x50] sm:$0xff]  ;;  %v365_v19 = vld [vmem:[%s5094_s4 + $0x40] sm:$0xff]  ;;  %v388_v27 = vld [vmem:[%s5094_s4 + $0xf8] sm:$0xff]  ;;  %s3944_s11 = smov 32  }
  0x1e   : > { %408 = vmatpush.msra.mxu0 %v353_v10  ;;  %v363_v21 = vld [vmem:[%s5094_s4 + $0x30] sm:$0xff]  ;;  %v361_v22 = vld [vmem:[%s5094_s4 + $0x20] sm:$0xff]  ;;  %v386_v28 = vld [vmem:[%s5094_s4 + $0xe8] sm:$0xff]  ;;  %511 = vmatpush.msra.mxu2 %v388_v27 }
  0x1f   : > { %450 = vmatpush.msra.mxu1 %v379_v5  ;;  %v347_v23 = vld [vmem:[%s5093_s3 + $0x30] sm:$0xff]  ;;  %v345_v26 = vld [vmem:[%s5093_s3 + $0x20] sm:$0xff]  ;;  %v344_v30 = vld [vmem:[%s5093_s3 + $0x18] sm:$0xff] }
  0x20   : > { %409 = vmatpush.msra.mxu0 %v352_v12  ;;  %v359_v25 = vld [vmem:[%s5094_s4 + $0x10] sm:$0xff]  ;;  %v357_v29 = vld [vmem:[%s5094_s4] sm:$0xff]  ;;  %v384_v32 = vld [vmem:[%s5094_s4 + $0xd8] sm:$0xff]  ;;  %512 = vmatpush.msra.mxu2 %v386_v28 }
  0x21   : > { %451 = vmatpush.msra.mxu1 %v377_v6  ;;  %v325_v31 = vld [vmem:[%s4125_s14] sm:$0xff]  ;;  %v343_v33 = vld [vmem:[%s5093_s3 + $0x10] sm:$0xff]  ;;  %v382_v34 = vld [vmem:[%s5094_s4 + $0xc8] sm:$0xff] }
  0x22   : > { %410 = vmatpush.msra.mxu0 %v351_v15  ;;  %v342_v35 = vld [vmem:[%s5093_s3 + $0x8] sm:$0xff]  ;;  %513 = vmatpush.msra.mxu2 %v384_v32  ;;  %v380_v36 = vld [vmem:[%s5094_s4 + $0xb8] sm:$0xff]  ;;  %v341_v37 = vld [vmem:[%s5093_s3] sm:$0xff] }
  0x23   : > { %452 = vmatpush.msra.mxu1 %v375_v9  ;;  %v317_v38 = vld [vmem:[%s4159_s17] sm:$0xff]  ;;  %v378_v39 = vld [vmem:[%s5094_s4 + $0xa8] sm:$0xff]  ;;  %v376_v41 = vld [vmem:[%s5094_s4 + $0x98] sm:$0xff] }
  0x24   : > { %411 = vmatpush.msra.mxu0 %v350_v16  ;;  %514 = vmatpush.msra.mxu2 %v382_v34  ;;  %v326_v40 = vld [vmem:[%s4125_s14 + $0x8] sm:$0xff]  ;;  %v372_v43 = vld [vmem:[%s5094_s4 + $0x78] sm:$0xff]  ;;  %v327_v46 = vld [vmem:[%s4125_s14 + $0x10] sm:$0xff] }
  0x25   : > { %453 = vmatpush.msra.mxu1 %v373_v11  ;;  %v374_v42 = vld [vmem:[%s5094_s4 + $0x88] sm:$0xff]  ;;  %v368_v47 = vld [vmem:[%s5094_s4 + $0x58] sm:$0xff]  ;;  %v4250_v4 = vld [vmem:[%s4241_s18] ss:$0 sm:$0xff] }
  0x26   : > { %412 = vmatpush.msra.mxu0 %v349_v18  ;;  %515 = vmatpush.msra.mxu2 %v380_v36  ;;  %v318_v44 = vld [vmem:[%s4159_s17 + $0x8] sm:$0xff]  ;;  %v364_v49 = vld [vmem:[%s5094_s4 + $0x38] sm:$0xff] }
  0x27   : > { %454 = vmatpush.msra.mxu1 %v371_v13  ;;  %v370_v45 = vld [vmem:[%s5094_s4 + $0x68] sm:$0xff]  ;;  %v328_v51 = vld [vmem:[%s4125_s14 + $0x18] sm:$0xff] }
  0x28   : > { %413 = vmatpush.msra.mxu0 %v348_v20  ;;  %516 = vmatpush.msra.mxu2 %v378_v39  ;;  %v366_v48 = vld [vmem:[%s5094_s4 + $0x48] sm:$0xff]  ;;  %v360_v52 = vld [vmem:[%s5094_s4 + $0x18] sm:$0xff] }
  0x29   : > { %455 = vmatpush.msra.mxu1 %v369_v14  ;;  %v362_v50 = vld [vmem:[%s5094_s4 + $0x28] sm:$0xff] }
  0x2a   : > { %414 = vmatpush.msra.mxu0 %v347_v23  ;;  %517 = vmatpush.msra.mxu2 %v376_v41  ;;  %v358_v53 = vld [vmem:[%s5094_s4 + $0x8] sm:$0xff] }
  0x2b   : > { %456 = vmatpush.msra.mxu1 %v367_v17  ;;  %v4295_v39 = vld [vmem:[#allocation2 + $0x28] sm:$0xff] }
  0x2c   : > { %415 = vmatpush.msra.mxu0 %v346_v24  ;;  %518 = vmatpush.msra.mxu2 %v374_v42 }
  0x2d   : > { %457 = vmatpush.msra.mxu1 %v365_v19 }
  0x2e   : > { %416 = vmatpush.msra.mxu0 %v345_v26  ;;  %519 = vmatpush.msra.mxu2 %v372_v43 }
  0x2f   : > { %458 = vmatpush.msra.mxu1 %v363_v21 }
  0x30   : > { %417 = vmatpush.msra.mxu0 %v344_v30  ;;  %520 = vmatpush.msra.mxu2 %v370_v45 }
  0x31   : > { %459 = vmatpush.msra.mxu1 %v361_v22 }
  0x32   : > { %418 = vmatpush.msra.mxu0 %v343_v33  ;;  %521 = vmatpush.msra.mxu2 %v368_v47 }
  0x33   : > { %460 = vmatpush.msra.mxu1 %v359_v25 }
  0x34   : > { %419 = vmatpush.msra.mxu0 %v342_v35  ;;  %522 = vmatpush.msra.mxu2 %v366_v48 }
  0x35   : > { %461 = vmatpush.msra.mxu1 %v357_v29 }
  0x36   : > { %462 = vmatmul.f32.vlgmr.msra.gmra.mxu1 %v325_v31  ;;  %420 = vmatpush.msra.mxu0 %v341_v37  ;;  %v4289_v37 = vld [vmem:[#allocation2 + $0x38] sm:$0xff] }
  0x37   : > { %421 = vmatmul.f32.vlgmr.msra.gmra.mxu0 %v317_v38  ;;  %523 = vmatpush.msra.mxu2 %v364_v49  ;;  %v4292_v38 = vld [vmem:[#allocation2 + $0x30] sm:$0xff] }
  0x39   : > { %524 = vmatpush.msra.mxu2 %v362_v50 }
  0x3b   : > { %525 = vmatpush.msra.mxu2 %v360_v52 }
  0x3d   : > { %526 = vmatpush.msra.mxu2 %v358_v53 }
  0x3e   : > { %465 = vmatmul.f32.gmra.mxu1 %v326_v40  ;;  %527 = vmatmul.f32.vlgmr.msra.gmra.mxu2 %v325_v31 }
  0x3f   : > { %424 = vmatmul.f32.gmra.mxu0 %v318_v44 }
  0x46   : > { %468 = vmatmul.f32.gmra.mxu1 %v327_v46  ;;  %530 = vmatmul.f32.gmra.mxu2 %v326_v40  ;;  %v4298_v40 = vld [vmem:[#allocation2 + $0x20] sm:$0xff] }
  0x4e   : > { %471 = vmatmul.f32.gmra.mxu1 %v328_v51  ;;  %533 = vmatmul.f32.gmra.mxu2 %v327_v46 }
  0x56   : > { %536 = vmatmul.f32.gmra.mxu2 %v328_v51 }
  0xb3   : > { %v4205_v54 = vpop.f32.mrf.mxu1 }
  0xb4   : > { %v4221_v58 = vpop.f32.mrf.mxu0 }
  0xbb   : > { %v4207_v55 = vpop.f32.mrf.mxu1 }
  0xbc   : > { %705 = vrot.lane.b32.xlu2 %v4207_v55, %s3942_s13  ;;  %v4231_v59 = vpop.f32.mrf.mxu0 }
  0xc1   : > { %v528_v60 = vpop.f32.mrf.mxu2 }
  0xc3   : > { %v4211_v56 = vpop.f32.mrf.mxu1 }
  0xc4   : > { %703 = vrot.lane.b32.xlu2 %v4205_v54, %s3942_s13 }
  0xc9   : > { %v531_v61 = vpop.f32.mrf.mxu2 }
  0xca   : > { %v4262_v12 = vpack.i.bf16 %v528_v60, %v531_v61 }
  0xcb   : > { %v4215_v57 = vpop.f32.mrf.mxu1 }
  0xcc   : > { %709 = vrot.lane.b32.xlu1 %v4215_v57, %s3942_s13  ;;  %3333 = vmatpush.xpose.msk.msra.mxu3 %vm580_vm0, %v4215_v57 }
  0xd0   : > { %3334 = vmatpush.xpose.msk.msra.mxu3 %vm580_vm0, %v4211_v56 }
  0xd1   : > { %v534_v62 = vpop.f32.mrf.mxu2 }
  0xd4   : > { %707 = vrot.lane.b32.xlu1 %v4211_v56, %s3942_s13  ;;  %3335 = vmatpush.xpose.msk.msra.mxu3 %vm580_vm0, %v4207_v55 }
  0xd8   : > { %3336 = vmatpush.xpose.msk.msra.mxu3 %vm580_vm0, %v4205_v54 }
  0xd9   : > { %v537_v63 = vpop.f32.mrf.mxu2 }
  0xda   : > { %v4252_v6 = vpack.i.bf16 %v534_v62, %v537_v63 }
  0xdb   : > { %3337 = vmatmul.msk.f32.vlgmr.msra.gmra.mxu3 %vm580_vm0, %v4221_v58 }
  0xdc   : > { %701 = vrot.lane.b32.xlu1 %v4231_v59, %s3942_s13  ;;  %658 = vmatpush.msrb.mxu3 %v537_v63 }
  0xde   : > { %659 = vmatpush.msrb.mxu3 %v534_v62 }
  0xe0   : > { %660 = vmatpush.msrb.mxu3 %v531_v61 }
  0xe2   : > { %661 = vmatpush.msrb.mxu3 %v528_v60 }
  0xe3   : > { %3338 = vmatmul.msk.f32.gmra.mxu3 %vm580_vm0, %v4231_v59 }
  0xe4   : > { %3574 = vrot.lane.b32.xlu1 %v4252_v6, %s3942_s13 }
 0x116   : > { %v706_v1 = vpop.permute.xlu2 %705 }
 0x11e   : > { %v704_v3 = vpop.permute.xlu2 %703 }
 0x13e   : > { %v710_v0 = vpop.permute.xlu1 %709 }
 0x13f   : > { %3341 = vmatpush.xpose.msk.msra.mxu3 %vm580_vm0, %v710_v0 }
 0x146   : > { %v708_v2 = vpop.permute.xlu1 %707 }
 0x147   : > { %3342 = vmatpush.xpose.msk.msra.mxu3 %vm580_vm0, %v708_v2 }
 0x14b   : > { %3343 = vmatpush.xpose.msk.msra.mxu3 %vm580_vm0, %v706_v1 }
 0x14e   : > { %v702_v13 = vpop.permute.xlu1 %701 }
 0x14f   : > { %3344 = vmatpush.xpose.msk.msra.mxu3 %vm580_vm0, %v704_v3 }
 0x156   : > { %v3575_v17 = vpop.permute.xlu1 %3574 }
 0x157   : > { %v3576_v20 = vunpack.i.l.bf16 %v3575_v17  ;;  %v3577_v23 = vunpack.i.h.bf16 %v3575_v17 }
 0x15e   : > { %v616_v5 = vpop.f32.mrf.mxu3 }
 0x15f   : > { %v617_v7 = vadd.f32 %v4250_v4, %v616_v5 }
 0x161   : > { %v622_v8 = vsel %vm580_vm0, %v617_v7, -inf }
 0x162   : > { %623 = vmax.xlane.f32.xlu0 %v622_v8 }
 0x166   : > { %v619_v9 = vpop.f32.mrf.mxu3 }
 0x167   : > { %v620_v10 = vadd.f32 %v4250_v4, %v619_v9 }
 0x169   : > { %v625_v11 = vsel %vm580_vm0, %v620_v10, -inf }
 0x16a   : > { %626 = vmax.xlane.f32.xlu0 %v625_v11 }
 0x17e   : > { %699 = vrot.lane.b32.xlu0 %v4221_v58, %s3942_s13 }
 0x186   : > { %3579 = vrot.lane.b32.xlu0 %v4262_v12, %s3942_s13 }
 0x1d5   : > { %v624_v14 = vpop.xlane.xlu0 %623 }
 0x1d6   : > { %v628_v15 = vsub.f32 %v617_v7, %v624_v14 }
 0x1d8   : > { %v630_v16 = vmul.f32 1.442695, %v628_v15 }
 0x1da   : > { %3697 = vpow2.f32 %v630_v16  ;;  %v320_v16 = vld [vmem:[%s4159_s17 + $0x18] sm:$0xff] }
 0x1dd   : > { %v627_v18 = vpop.xlane.xlu0 %626 }
 0x1de   : > { %v629_v19 = vsub.f32 %v620_v10, %v627_v18 }
 0x1e0   : > { %v4266_v21 = vpop.eup %3697  ;;  %v632_v22 = vmul.f32 1.442695, %v629_v19 }
 0x1e1   : > { %3339 = vmatmul.msk.f32.vlgmr.msrb.gmra.mxu3 %vm580_vm0, %v4266_v21  ;;  %v634_v60 = vsel %vm580_vm0, %v4266_v21, 0.0 }
 0x1e2   : > { %3699 = vpow2.f32 %v632_v22  ;;  %798 = vmatpush.msrb.mxu3 %v3576_v20 }
 0x1e4   : > { %799 = vmatpush.msrb.mxu3 %v3577_v23 }
 0x1e8   : > { %v3700_v24 = vpop.eup %3699 }
 0x1e9   : > { %3340 = vmatmul.msk.f32.gmra.mxu3 %vm580_vm0, %v3700_v24  ;;  %v637_v53 = vsel %vm580_vm0, %v3700_v24, 0.0 }
 0x1f0   : > { %v700_v25 = vpop.permute.xlu0 %699 }
 0x1f1   : > { %3345 = vmatmul.msk.f32.vlgmr.msra.gmra.mxu3 %vm580_vm0, %v700_v25 }
 0x1f8   : > { %v3580_v26 = vpop.permute.xlu0 %3579 }
 0x1f9   : > { %3346 = vmatmul.msk.f32.gmra.mxu3 %vm580_vm0, %v702_v13  ;;  %v3582_v27 = vunpack.i.h.bf16 %v3580_v26  ;;  %v3581_v28 = vunpack.i.l.bf16 %v3580_v26 }
 0x1fb   : > { %800 = vmatpush.msrb.mxu3 %v3581_v28 }
 0x1fd   : > { %801 = vmatpush.msrb.mxu3 %v3582_v27  ;;  %v321_v27 = vld [vmem:[%s4159_s17 + $0x20] sm:$0xff] }
 0x1ff   : > { %857 = vmatpush.msra.mxu3 %v4289_v37 }
 0x201   : > { %858 = vmatpush.msra.mxu3 %v4292_v38 }
 0x203   : > { %859 = vmatpush.msra.mxu3 %v4295_v39 }
 0x205   : > { %860 = vmatpush.msra.mxu3 %v4298_v40 }
 0x264   : > { %v4273_v29 = vpop.f32.mrf.mxu3 }
 0x26c   : > { %v4275_v30 = vpop.f32.mrf.mxu3 }
 0x274   : > { %v740_v31 = vpop.f32.mrf.mxu3 }
 0x275   : > { %v741_v32 = vadd.f32 %v4250_v4, %v740_v31  ;;  %v322_v31 = vld [vmem:[%s4159_s17 + $0x28] sm:$0xff] }
 0x277   : > { %v746_v33 = vsel %vm580_vm0, %v741_v32, -inf }
 0x278   : > { %747 = vmax.xlane.f32.xlu2 %v746_v33  ;;  %v323_v33 = vld [vmem:[%s4159_s17 + $0x30] sm:$0xff] }
 0x27c   : > { %v743_v34 = vpop.f32.mrf.mxu3 }
 0x27d   : > { %v744_v35 = vadd.f32 %v4250_v4, %v743_v34  ;;  %v4333_v34 = vld [vmem:[#allocation2 + $0x18] sm:$0xff] }
 0x27e   : > { %886 = vmatpush.msrb.mxu0 %v4333_v34 }
 0x27f   : > { %v749_v36 = vsel %vm580_vm0, %v744_v35, -inf }
 0x280   : > { %750 = vmax.xlane.f32.xlu1 %v749_v36  ;;  %v4339_v36 = vld [vmem:[#allocation2 + $0x8] sm:$0xff] }
 0x290   : > { %907 = vrot.lane.b32.xlu2 %v4215_v57, %s3943_s10 }
 0x298   : > { %901 = vrot.lane.b32.xlu2 %v4205_v54, %s3943_s10 }
 0x299   : > { %905 = vrot.lane.b32.xlu1 %v4211_v56, %s3943_s10 }
 0x2a1   : > { %899 = vrot.lane.b32.xlu1 %v4231_v59, %s3943_s10 }
 0x2eb   : > { %v748_v41 = vpop.xlane.xlu2 %747 }
 0x2ec   : > { %v752_v42 = vsub.f32 %v741_v32, %v748_v41  ;;  %v4342_v41 = vld [vmem:[#allocation2] sm:$0xff] }
 0x2ee   : > { %v754_v43 = vmul.f32 1.442695, %v752_v42  ;;  %v4344_v42 = vld [vmem:[#allocation2 + $0x58] sm:$0xff] }
 0x2f0   : > { %3701 = vpow2.f32 %v754_v43  ;;  %v324_v43 = vld [vmem:[%s4159_s17 + $0x38] sm:$0xff] }
 0x2f3   : > { %v751_v44 = vpop.xlane.xlu1 %750  ;;  %v908_v48 = vpop.permute.xlu2 %907 }
 0x2f4   : > { %v753_v45 = vsub.f32 %v744_v35, %v751_v44  ;;  %v4336_v35 = vld [vmem:[#allocation2 + $0x10] sm:$0xff] }
 0x2f5   : > { %887 = vmatpush.msrb.mxu0 %v4336_v35  ;;  %v4349_v44 = vld [vmem:[#allocation2 + $0x50] sm:$0xff] }
 0x2f6   : > { %v3702_v46 = vpop.eup %3701  ;;  %v756_v47 = vmul.f32 1.442695, %v753_v45  ;;  %v4352_v45 = vld [vmem:[#allocation2 + $0x48] sm:$0xff] }
 0x2f7   : > { %3347 = vmatmul.msk.f32.vlgmr.msrb.gmra.mxu3 %vm580_vm0, %v3702_v46  ;;  %v758_v49 = vsel %vm580_vm0, %v3702_v46, 0.0  ;;  %888 = vmatpush.msrb.mxu0 %v4339_v36  ;;  %v4355_v46 = vld [vmem:[#allocation2 + $0x40] sm:$0xff] }
 0x2f8   : > { %3703 = vpow2.f32 %v756_v47  ;;  %3353 = vmatpush.xpose.msk.msrb.mxu3 %vm580_vm0, %v908_v48  ;;  %759 = vadd.xlane.f32.xlu0 %v758_v49 }
 0x2f9   : > { %889 = vmatpush.msrb.mxu0 %v4342_v41 }
 0x2fb   : > { %v902_v61 = vpop.permute.xlu2 %901 }
 0x2fe   : > { %v3704_v50 = vpop.eup %3703 }
 0x2ff   : > { %3348 = vmatmul.msk.f32.gmra.mxu3 %vm580_vm0, %v3704_v50  ;;  %v761_v51 = vsel %vm580_vm0, %v3704_v50, 0.0 }
 0x300   : > { %762 = vadd.xlane.f32.xlu2 %v761_v51 }
 0x30b   : > { %v906_v52 = vpop.permute.xlu1 %905 }
 0x30c   : > { %903 = vrot.lane.b32.xlu0 %v4207_v55, %s3943_s10  ;;  %3354 = vmatpush.xpose.msk.msrb.mxu3 %vm580_vm0, %v906_v52 }
 0x313   : > { %v900_v32 = vpop.permute.xlu1 %899 }
 0x318   : > { %897 = vrot.lane.b32.xlu2 %v4221_v58, %s3943_s10 }
 0x336   : > { %638 = vadd.xlane.f32.xlu0 %v637_v53 }
 0x341   : > { %635 = vadd.xlane.f32.xlu2 %v634_v60 }
 0x359   : > { %3584 = vrot.lane.b32.xlu2 %v4252_v6, %s3943_s10 }
 0x361   : > { %1074 = vrot.lane.b32.xlu2 %v4215_v57, %s3944_s11  ;;  %v319_v57 = vld [vmem:[%s4159_s17 + $0x10] sm:$0xff]  ;;  %s294_s17 = sand.u32 1, %s3929_s22  }
 0x362   : > { %427 = vmatmul.f32.gmra.mxu0 %v319_v57  ;;  %s3325_s19 = sshll.u32 %s294_s17, 6 }
 0x363   : > { %s4541_s20 = scalar_lea.vmem [#allocation5], %s3325_s19 }
 0x364   : > { %s3221_s9 = sshll.u32 %s4541_s20, 4  ;;  %s3222_s9 = int_to_ptr.vmem [resolvable:$true] %s3221_s9 }
 0x369   : > { %1068 = vrot.lane.b32.xlu2 %v4205_v54, %s3944_s11 }
 0x36a   : > { %430 = vmatmul.f32.gmra.mxu0 %v320_v16 }
 0x36b   : > { %v760_v62 = vpop.xlane.xlu0 %759 }
 0x36c   : > { %3705 = vrcp.f32 %v760_v62  ;;  %v820_v3 = vand.u32 2147483648, %v760_v62  ;;  %v818_v7 = vand.u32 2147483647, %v760_v62  ;;  %vm814_vm2 = vweird.f32 %v760_v62 }
 0x36e   : > { %v821_v10 = vor.u32 1.1754944e-38, %v820_v3  ;;  %vm819_vm4 = vcmp.eq.f32.partialorder %v818_v7, 8.507059e+37 }
 0x371   : > { %1066 = vrot.lane.b32.xlu2 %v4231_v59, %s3944_s11 }
 0x372   : > { %v3706_v63 = vpop.eup %3705  ;;  %433 = vmatmul.f32.gmra.mxu0 %v321_v27 }
 0x373   : > { %v810_v0 = vmul.f32 %v3706_v63, %v760_v62  ;;  %v763_v1 = vpop.xlane.xlu2 %762  ;;  %vm815_vm1 = vweird.f32 %v3706_v63 }
 0x374   : > { %3707 = vrcp.f32 %v763_v1  ;;  %vm816_vm3 = vmor %vm814_vm2, %vm815_vm1  ;;  %v834_v18 = vand.u32 2147483648, %v763_v1  ;;  %v832_v20 = vand.u32 2147483647, %v763_v1  ;;  %vm828_vm6 = vweird.f32 %v763_v1 }
 0x375   : > { %v811_v2 = vsub.f32 1.0, %v810_v0 }
 0x376   : > { %v835_v22 = vor.u32 1.1754944e-38, %v834_v18  ;;  %vm833_vm8 = vcmp.eq.f32.partialorder %v832_v20, 8.507059e+37 }
 0x377   : > { %v812_v5 = vmul.f32 %v3706_v63, %v811_v2 }
 0x379   : > { %v813_v8 = vadd.f32 %v3706_v63, %v812_v5 }
 0x37a   : > { %v3708_v54 = vpop.eup %3707  ;;  %v803_v9 = vpop.f32.mrf.mxu3  ;;  %436 = vmatmul.f32.gmra.mxu0 %v322_v31 }
 0x37b   : > { %v824_v11 = vmul.f32 %v3708_v54, %v763_v1  ;;  %v817_v59 = vsel %vm816_vm3, %v3706_v63, %v813_v8  ;;  %vm829_vm5 = vweird.f32 %v3708_v54  ;;  %v898_v28 = vpop.permute.xlu2 %897 }
 0x37c   : > { %v822_v13 = vsel %vm819_vm4, %v821_v10, %v817_v59  ;;  %vm830_vm7 = vmor %vm828_vm6, %vm829_vm5 }
 0x37d   : > { %v825_v14 = vsub.f32 1.0, %v824_v11  ;;  %v837_v15 = vmul.f32 %v822_v13, %v803_v9 }
 0x37e   : > { %v904_v17 = vpop.permute.xlu0 %903 }
 0x37f   : > { %v826_v19 = vmul.f32 %v3708_v54, %v825_v14  ;;  %3349 = vmatmul.msk.f32.vlgmr.msra.gmra.mxu3 %vm580_vm0, %v837_v15 }
 0x380   : > { %3355 = vmatpush.xpose.msk.msrb.mxu3 %vm580_vm0, %v904_v17 }
 0x381   : > { %v827_v21 = vadd.f32 %v3708_v54, %v826_v19 }
 0x382   : > { %v806_v24 = vpop.f32.mrf.mxu3  ;;  %439 = vmatmul.f32.gmra.mxu0 %v323_v33 }
 0x383   : > { %v831_v23 = vsel %vm830_vm7, %v3708_v54, %v827_v21 }
 0x384   : > { %v836_v25 = vsel %vm833_vm8, %v835_v22, %v831_v23  ;;  %3356 = vmatpush.xpose.msk.msrb.mxu3 %vm580_vm0, %v902_v61 }
 0x385   : > { %v838_v26 = vmul.f32 %v836_v25, %v806_v24 }
 0x387   : > { %3350 = vmatmul.msk.f32.gmra.mxu3 %vm580_vm0, %v838_v26 }
 0x388   : > { %1051 = vmatpush.msra.mxu3 %v4344_v42 }
 0x38a   : > { %442 = vmatmul.f32.gmra.mxu0 %v324_v43  ;;  %1052 = vmatpush.msra.mxu3 %v4349_v44 }
 0x38c   : > { %1053 = vmatpush.msra.mxu3 %v4352_v45 }
 0x38e   : > { %1054 = vmatpush.msra.mxu3 %v4355_v46 }
 0x38f   : > { %3357 = vmatmul.msk.f32.vlgmr.msrb.gmra.mxu3 %vm580_vm0, %v898_v28 }
 0x397   : > { %3358 = vmatmul.msk.f32.gmra.mxu3 %vm580_vm0, %v900_v32 }
 0x3a9   : > { %v639_v47 = vpop.xlane.xlu0 %638 }
 0x3aa   : > { %3709 = vrcp.f32 %v639_v47  ;;  %v694_v10 = vand.u32 2147483648, %v639_v47  ;;  %vm688_vm14 = vweird.f32 %v639_v47  ;;  %v692_v59 = vand.u32 2147483647, %v639_v47 }
 0x3ac   : > { %v695_v14 = vor.u32 1.1754944e-38, %v694_v10  ;;  %vm693_vm1 = vcmp.eq.f32.partialorder %v692_v59, 8.507059e+37 }
 0x3b0   : > { %v3710_v49 = vpop.eup %3709 }
 0x3b1   : > { %v684_v50 = vmul.f32 %v3710_v49, %v639_v47  ;;  %vm689_vm13 = vweird.f32 %v3710_v49 }
 0x3b2   : > { %vm690_vm15 = vmor %vm688_vm14, %vm689_vm13 }
 0x3b3   : > { %v685_v52 = vsub.f32 1.0, %v684_v50 }
 0x3b4   : > { %v636_v48 = vpop.xlane.xlu2 %635 }
 0x3b5   : > { %3711 = vrcp.f32 %v636_v48  ;;  %v680_v63 = vand.u32 2147483648, %v636_v48  ;;  %v678_v2 = vand.u32 2147483647, %v636_v48  ;;  %v686_v3 = vmul.f32 %v3710_v49, %v685_v52 }
 0x3b6   : > { %vm674_vm10 = vweird.f32 %v636_v48 }
 0x3b7   : > { %v681_v7 = vor.u32 1.1754944e-38, %v680_v63  ;;  %vm679_vm12 = vcmp.eq.f32.partialorder %v678_v2, 8.507059e+37  ;;  %v687_v54 = vadd.f32 %v3710_v49, %v686_v3  ;;  %v329_v2 = vld [vmem:[%s4125_s14 + $0x20] sm:$0xff] }
 0x3b8   : > { %474 = vmatmul.f32.gmra.mxu1 %v329_v2  ;;  %539 = vmatmul.f32.gmra.mxu2 %v329_v2 }
 0x3b9   : > { %v691_v13 = vsel %vm690_vm15, %v3710_v49, %v687_v54  ;;  %v330_v54 = vld [vmem:[%s4125_s14 + $0x28] sm:$0xff] }
 0x3ba   : > { %v696_v15 = vsel %vm693_vm1, %v695_v14, %v691_v13 }
 0x3bb   : > { %v3712_v51 = vpop.eup %3711  ;;  %v698_v16 = vmul.f32 %v696_v15, %v4275_v30 }
 0x3bc   : > { %v670_v53 = vmul.f32 %v3712_v51, %v636_v48  ;;  %v3585_v60 = vpop.permute.xlu2 %3584  ;;  %vm675_vm9 = vweird.f32 %v3712_v51 }
 0x3bd   : > { %v3586_v61 = vunpack.i.l.bf16 %v3585_v60  ;;  %v3587_v0 = vunpack.i.h.bf16 %v3585_v60  ;;  %vm676_vm11 = vmor %vm674_vm10, %vm675_vm9 }
 0x3be   : > { %v671_v62 = vsub.f32 1.0, %v670_v53 }
 0x3bf   : > { %992 = vmatpush.msra.mxu0 %v3586_v61 }
 0x3c0   : > { %v672_v1 = vmul.f32 %v3712_v51, %v671_v62  ;;  %477 = vmatmul.f32.gmra.mxu1 %v330_v54  ;;  %542 = vmatmul.f32.gmra.mxu2 %v330_v54 }
 0x3c1   : > { %993 = vmatpush.msra.mxu0 %v3587_v0 }
 0x3c2   : > { %v673_v5 = vadd.f32 %v3712_v51, %v672_v1 }
 0x3c4   : > { %v1075_v57 = vpop.permute.xlu2 %1074  ;;  %v677_v8 = vsel %vm676_vm11, %v3712_v51, %v673_v5 }
 0x3c5   : > { %3512 = vmatpush.xpose.msk.msrb.mxu3 %vm580_vm0, %v1075_v57  ;;  %v682_v9 = vsel %vm679_vm12, %v681_v7, %v677_v8 }
 0x3c6   : > { %v697_v11 = vmul.f32 %v682_v9, %v4273_v29 }
 0x3c8   : > { %3351 = vmatmul.msk.f32.vlgmr.msrb.gmra.mxu0 %vm580_vm0, %v697_v11 }
 0x3d0   : > { %3352 = vmatmul.msk.f32.gmra.mxu0 %vm580_vm0, %v698_v16 }
 0x402   : > { %v4363_v17 = vpop.f32.mrf.mxu3 }
 0x40a   : > { %v4365_v18 = vpop.f32.mrf.mxu3 }
 0x412   : > { %v938_v19 = vpop.f32.mrf.mxu3 }
 0x413   : > { %v939_v29 = vadd.f32 %v4250_v4, %v938_v19 }
 0x415   : > { %v944_v20 = vsel %vm580_vm0, %v939_v29, -inf }
 0x416   : > { %945 = vmax.xlane.f32.xlu1 %v944_v20 }
 0x41a   : > { %v941_v21 = vpop.f32.mrf.mxu3 }
 0x41b   : > { %v942_v22 = vadd.f32 %v4250_v4, %v941_v21  ;;  %v331_v21 = vld [vmem:[%s4125_s14 + $0x30] sm:$0xff] }
 0x41c   : > { %480 = vmatmul.f32.gmra.mxu1 %v331_v21  ;;  %545 = vmatmul.f32.gmra.mxu2 %v331_v21 }
 0x41d   : > { %v947_v23 = vsel %vm580_vm0, %v942_v22, -inf }
 0x41e   : > { %948 = vmax.xlane.f32.xlu0 %v947_v23 }
 0x42f   : > { %3589 = vrot.lane.b32.xlu1 %v4262_v12, %s3943_s10 }
 0x437   : > { %1070 = vrot.lane.b32.xlu1 %v4207_v55, %s3944_s11 }
 0x43f   : > { %1064 = vrot.lane.b32.xlu1 %v4221_v58, %s3944_s11  ;;  %v4388_v58 = vpop.f32.mrf.mxu0 }
 0x447   : > { %v4390_v49 = vpop.f32.mrf.mxu0 }
 0x44f   : > { %v4392_v50 = vpop.f32.mrf.mxu0 }
 0x457   : > { %v4394_v51 = vpop.f32.mrf.mxu0 }
 0x45f   : > { %v4396_v52 = vpop.f32.mrf.mxu0 }
 0x467   : > { %v4398_v53 = vpop.f32.mrf.mxu0 }
 0x46f   : > { %v4400_v62 = vpop.f32.mrf.mxu0 }
 0x477   : > { %v4403_v3 = vpop.f32.mrf.mxu0 }
 0x489   : > { %v946_v30 = vpop.xlane.xlu1 %945 }
 0x48a   : > { %v950_v24 = vsub.f32 %v939_v29, %v946_v30  ;;  %v1069_v30 = vpop.permute.xlu2 %1068 }
 0x48c   : > { %v952_v25 = vmul.f32 1.442695, %v950_v24 }
 0x48e   : > { %3713 = vpow2.f32 %v952_v25 }
 0x491   : > { %v949_v26 = vpop.xlane.xlu0 %948 }
 0x492   : > { %v951_v27 = vsub.f32 %v942_v22, %v949_v26 }
 0x494   : > { %v3714_v28 = vpop.eup %3713  ;;  %v954_v31 = vmul.f32 1.442695, %v951_v27 }
 0x495   : > { %v956_v32 = vsel %vm580_vm0, %v3714_v28, 0.0 }
 0x496   : > { %3715 = vpow2.f32 %v954_v31  ;;  %957 = vadd.xlane.f32.xlu0 %v956_v32 }
 0x49c   : > { %v3716_v33 = vpop.eup %3715 }
 0x49d   : > { %v959_v43 = vsel %vm580_vm0, %v3716_v33, 0.0 }
 0x49e   : > { %960 = vadd.xlane.f32.xlu0 %v959_v43 }
 0x4a1   : > { %v3590_v55 = vpop.permute.xlu1 %3589 }
 0x4a2   : > { %v3591_v47 = vunpack.i.l.bf16 %v3590_v55  ;;  %v3592_v48 = vunpack.i.h.bf16 %v3590_v55 }
 0x4a4   : > { %994 = vmatpush.msra.mxu0 %v3591_v47  ;;  %v1067_v47 = vpop.permute.xlu2 %1066 }
 0x4a6   : > { %995 = vmatpush.msra.mxu0 %v3592_v48 }
 0x4a7   : > { %3359 = vmatmul.msk.f32.vlgmr.msra.gmra.mxu0 %vm580_vm0, %v3714_v28 }
 0x4a8   : > { %3363 = vmatpush.xpose.msk.msrb.mxu0 %vm580_vm0, %v1075_v57 }
 0x4a9   : > { %v1071_v15 = vpop.permute.xlu1 %1070 }
 0x4af   : > { %3360 = vmatmul.msk.f32.gmra.mxu0 %vm580_vm0, %v3716_v33  ;;  %v332_v33 = vld [vmem:[%s4125_s14 + $0x38] sm:$0xff] }
 0x4b0   : > { %483 = vmatmul.f32.gmra.mxu1 %v332_v33  ;;  %548 = vmatmul.f32.gmra.mxu2 %v332_v33 }
 0x4b1   : > { %v1065_v31 = vpop.permute.xlu1 %1064 }
 0x4b2   : > { %1072 = vrot.lane.b32.xlu0 %v4211_v56, %s3944_s11 }
 0x4ba   : > { %3594 = vrot.lane.b32.xlu0 %v4252_v6, %s3944_s11 }
 0x4c2   : > { %3599 = vrot.lane.b32.xlu0 %v4262_v12, %s3944_s11 }
 0x509   : > { %v958_v56 = vpop.xlane.xlu0 %957 }
 0x50a   : > { %3717 = vrcp.f32 %v958_v56  ;;  %v1014_v57 = vand.u32 2147483648, %v958_v56  ;;  %vm1008_vm3 = vweird.f32 %v958_v56  ;;  %v1012_v8 = vand.u32 2147483647, %v958_v56 }
 0x50c   : > { %v1015_v11 = vor.u32 1.1754944e-38, %v1014_v57  ;;  %vm1013_vm5 = vcmp.eq.f32.partialorder %v1012_v8, 8.507059e+37 }
 0x510   : > { %v3718_v60 = vpop.eup %3717 }
 0x511   : > { %v1004_v6 = vmul.f32 %v3718_v60, %v958_v56  ;;  %v961_v61 = vpop.xlane.xlu0 %960  ;;  %vm1009_vm2 = vweird.f32 %v3718_v60  ;;  %v4418_v56 = vpop.f32.mrf.mxu1 }
 0x512   : > { %3719 = vrcp.f32 %v961_v61  ;;  %vm1010_vm4 = vmor %vm1008_vm3, %vm1009_vm2  ;;  %v1028_v29 = vand.u32 2147483648, %v961_v61  ;;  %vm1022_vm7 = vweird.f32 %v961_v61  ;;  %v1026_v20 = vand.u32 2147483647, %v961_v61 }
 0x513   : > { %v1005_v12 = vsub.f32 1.0, %v1004_v6 }
 0x514   : > { %v1029_v23 = vor.u32 1.1754944e-38, %v1028_v29  ;;  %vm1027_vm9 = vcmp.eq.f32.partialorder %v1026_v20, 8.507059e+37 }
 0x515   : > { %v1006_v1 = vmul.f32 %v3718_v60, %v1005_v12 }
 0x517   : > { %v1007_v7 = vadd.f32 %v3718_v60, %v1006_v1 }
 0x518   : > { %v3720_v63 = vpop.eup %3719 }
 0x519   : > { %v1018_v0 = vmul.f32 %v3720_v63, %v961_v61  ;;  %v1011_v9 = vsel %vm1010_vm4, %v3718_v60, %v1007_v7  ;;  %vm1023_vm6 = vweird.f32 %v3720_v63  ;;  %v4420_v60 = vpop.f32.mrf.mxu1 }
 0x51a   : > { %v1016_v14 = vsel %vm1013_vm5, %v1015_v11, %v1011_v9  ;;  %vm1024_vm8 = vmor %vm1022_vm7, %vm1023_vm6 }
 0x51b   : > { %v1019_v5 = vsub.f32 1.0, %v1018_v0 }
 0x51d   : > { %v1020_v10 = vmul.f32 %v3720_v63, %v1019_v5 }
 0x51f   : > { %v1021_v19 = vadd.f32 %v3720_v63, %v1020_v10 }
 0x521   : > { %v1025_v22 = vsel %vm1024_vm8, %v3720_v63, %v1021_v19  ;;  %v4425_v63 = vpop.f32.mrf.mxu1 }
 0x522   : > { %v1030_v26 = vsel %vm1027_vm9, %v1029_v23, %v1025_v22 }
 0x524   : > { %v1073_v59 = vpop.permute.xlu0 %1072  ;;  %v997_v13 = vpop.f32.mrf.mxu0 }
 0x525   : > { %v1031_v16 = vmul.f32 %v1016_v14, %v997_v13  ;;  %3364 = vmatpush.xpose.msk.msrb.mxu0 %vm580_vm0, %v1073_v59  ;;  %3513 = vmatpush.xpose.msk.msrb.mxu3 %vm580_vm0, %v1073_v59 }
 0x527   : > { %3361 = vmatmul.msk.f32.vlgmr.msra.gmra.mxu3 %vm580_vm0, %v1031_v16 }
 0x529   : > { %3365 = vmatpush.xpose.msk.msrb.mxu0 %vm580_vm0, %v1071_v15  ;;  %3514 = vmatpush.xpose.msk.msrb.mxu3 %vm580_vm0, %v1071_v15 }
 0x52c   : > { %v3595_v24 = vpop.permute.xlu0 %3594  ;;  %v1000_v25 = vpop.f32.mrf.mxu0 }
 0x52d   : > { %v3596_v27 = vunpack.i.l.bf16 %v3595_v24  ;;  %v1032_v28 = vmul.f32 %v1030_v26, %v1000_v25  ;;  %3366 = vmatpush.xpose.msk.msrb.mxu0 %vm580_vm0, %v1069_v30  ;;  %3515 = vmatpush.xpose.msk.msrb.mxu3 %vm580_vm0, %v1069_v30  ;;  %v3597_v32 = vunpack.i.h.bf16 %v3595_v24  ;;  %v4430_v2 = vpop.f32.mrf.mxu1 }
 0x52f   : > { %3362 = vmatmul.msk.f32.gmra.mxu3 %vm580_vm0, %v1032_v28 }
 0x530   : > { %3367 = vmatmul.msk.f32.vlgmr.msrb.gmra.mxu0 %vm580_vm0, %v1065_v31 }
 0x531   : > { %1159 = vmatpush.msra.mxu3 %v3596_v27 }
 0x533   : > { %1160 = vmatpush.msra.mxu3 %v3597_v32 }
 0x534   : > { %v3600_v43 = vpop.permute.xlu0 %3599 }
 0x535   : > { %v3601_v55 = vunpack.i.l.bf16 %v3600_v43  ;;  %v3602_v48 = vunpack.i.h.bf16 %v3600_v43 }
 0x537   : > { %3368 = vmatmul.msk.f32.vlgmr.msrb.gmra.mxu3 %vm580_vm0, %v1067_v47 }
 0x538   : > { %1161 = vmatpush.msra.mxu3 %v3601_v55 }
 0x53a   : > { %1162 = vmatpush.msra.mxu3 %v3602_v48 }
 0x53c   : > { %3374 = vmatpush.xpose.msk.msrb.mxu3 %vm580_vm0, %v4430_v2 }
 0x540   : > { %3375 = vmatpush.xpose.msk.msrb.mxu3 %vm580_vm0, %v4425_v63 }
 0x544   : > { %3376 = vmatpush.xpose.msk.msrb.mxu3 %vm580_vm0, %v4420_v60 }
 0x548   : > { %3377 = vmatpush.xpose.msk.msrb.mxu3 %vm580_vm0, %v4418_v56 }
 0x5aa   : > { %v4422_v6 = vpop.f32.mrf.mxu3 }
 0x5ad   : > { %v1105_v61 = vpop.f32.mrf.mxu0 }
 0x5ae   : > { %v1106_v12 = vadd.f32 %v4250_v4, %v1105_v61 }
 0x5b0   : > { %v1111_v0 = vsel %vm580_vm0, %v1106_v12, -inf }
 0x5b1   : > { %1112 = vmax.xlane.f32.xlu1 %v1111_v0  ;;  %v4491_v0 = vld [vmem:[%s4241_s18 + $0x1] ss:$0 sm:$0xff] }
 0x5b2   : > { %v4428_v1 = vpop.f32.mrf.mxu3 }
 0x5ba   : > { %v1108_v5 = vpop.f32.mrf.mxu3 }
 0x5bb   : > { %v1109_v7 = vadd.f32 %v4250_v4, %v1108_v5 }
 0x5bd   : > { %v1114_v57 = vsel %vm580_vm0, %v1109_v7, -inf }
 0x5be   : > { %1115 = vmax.xlane.f32.xlu2 %v1114_v57 }
 0x624   : > { %v1113_v8 = vpop.xlane.xlu1 %1112 }
 0x625   : > { %v1117_v54 = vsub.f32 %v1106_v12, %v1113_v8 }
 0x627   : > { %v1119_v9 = vmul.f32 1.442695, %v1117_v54 }
 0x629   : > { %3721 = vpow2.f32 %v1119_v9 }
 0x62f   : > { %v3722_v10 = vpop.eup %3721 }
 0x630   : > { %3369 = vmatmul.msk.f32.vlgmr.msra.gmra.mxu3 %vm580_vm0, %v3722_v10  ;;  %v1123_v4 = vsel %vm580_vm0, %v3722_v10, 0.0  ;;  %v333_v10 = vld [vmem:[%s4125_s14 + $0x40] sm:$0xff] }
 0x631   : > { %1124 = vadd.xlane.f32.xlu0 %v1123_v4  ;;  %v1116_v11 = vpop.xlane.xlu2 %1115  ;;  %1514 = vmatpush.msra.mxu3 %v4289_v37  ;;  %v4476_v37 = vld [vmem:[#allocation2 + $0x78] sm:$0xff]  ;;  %v334_v4 = vld [vmem:[%s4125_s14 + $0x48] sm:$0xff] }
 0x632   : > { %v1118_v59 = vsub.f32 %v1109_v7, %v1116_v11  ;;  %1218 = vmatpush.msra.mxu0 %v4476_v37  ;;  %486 = vmatmul.f32.gmra.mxu1 %v333_v10  ;;  %v4512_v11 = vpop.f32.mrf.mxu2 }
 0x633   : > { %1515 = vmatpush.msra.mxu3 %v4292_v38  ;;  %v4479_v38 = vld [vmem:[#allocation2 + $0x70] sm:$0xff]  ;;  %551 = vmatmul.f32.gmra.mxu2 %v333_v10 }
 0x634   : > { %v1121_v13 = vmul.f32 1.442695, %v1118_v59  ;;  %1219 = vmatpush.msra.mxu0 %v4479_v38  ;;  %v335_v59 = vld [vmem:[%s4125_s14 + $0x50] sm:$0xff] }
 0x635   : > { %1516 = vmatpush.msra.mxu3 %v4295_v39  ;;  %v4482_v39 = vld [vmem:[#allocation2 + $0x68] sm:$0xff] }
 0x636   : > { %3723 = vpow2.f32 %v1121_v13  ;;  %1220 = vmatpush.msra.mxu0 %v4482_v39 }
 0x637   : > { %1517 = vmatpush.msra.mxu3 %v4298_v40  ;;  %v4485_v40 = vld [vmem:[#allocation2 + $0x60] sm:$0xff] }
 0x638   : > { %1221 = vmatpush.msra.mxu0 %v4485_v40 }
 0x63a   : > { %489 = vmatmul.f32.gmra.mxu1 %v334_v4 }
 0x63b   : > { %554 = vmatmul.f32.gmra.mxu2 %v334_v4 }
 0x63c   : > { %v3724_v14 = vpop.eup %3723 }
 0x63d   : > { %3370 = vmatmul.msk.f32.gmra.mxu3 %vm580_vm0, %v3724_v14  ;;  %v1126_v15 = vsel %vm580_vm0, %v3724_v14, 0.0  ;;  %v336_v14 = vld [vmem:[%s4125_s14 + $0x58] sm:$0xff] }
 0x63e   : > { %1127 = vadd.xlane.f32.xlu1 %v1126_v15  ;;  %v892_v15 = vadd.f32 %v4400_v62, %v4363_v17 }
 0x642   : > { %492 = vmatmul.f32.gmra.mxu1 %v335_v59 }
 0x643   : > { %557 = vmatmul.f32.gmra.mxu2 %v335_v59 }
 0x645   : > { %1364 = vrot.lane.b32.xlu0 %v4425_v63, %s3942_s13  ;;  %3378 = vmatmul.msk.f32.vlgmr.msrb.gmra.mxu3 %vm580_vm0, %v4388_v58 }
 0x646   : > { %1708 = vmatpush.msrb.mxu3 %v4344_v42 }
 0x648   : > { %1709 = vmatpush.msrb.mxu3 %v4349_v44 }
 0x64a   : > { %1710 = vmatpush.msrb.mxu3 %v4352_v45  ;;  %495 = vmatmul.f32.gmra.mxu1 %v336_v14 }
 0x64b   : > { %560 = vmatmul.f32.gmra.mxu2 %v336_v14 }
 0x64c   : > { %1711 = vmatpush.msrb.mxu3 %v4355_v46 }
 0x64d   : > { %1360 = vrot.lane.b32.xlu0 %v4418_v56, %s3942_s13  ;;  %3379 = vmatmul.msk.f32.gmra.mxu3 %vm580_vm0, %v4390_v49 }
 0x655   : > { %1356 = vrot.lane.b32.xlu0 %v4388_v58, %s3942_s13 }
 0x65d   : > { %1562 = vrot.lane.b32.xlu0 %v4425_v63, %s3943_s10 }
 0x665   : > { %1560 = vrot.lane.b32.xlu0 %v4420_v60, %s3943_s10 }
 0x66d   : > { %1558 = vrot.lane.b32.xlu0 %v4418_v56, %s3943_s10 }
 0x675   : > { %1727 = vrot.lane.b32.xlu0 %v4420_v60, %s3944_s11 }
 0x67d   : > { %1556 = vrot.lane.b32.xlu0 %v4390_v49, %s3943_s10 }
 0x685   : > { %1723 = vrot.lane.b32.xlu0 %v4390_v49, %s3944_s11 }
 0x6a4   : > { %v1125_v42 = vpop.xlane.xlu0 %1124 }
 0x6a5   : > { %3725 = vrcp.f32 %v1125_v42  ;;  %v1181_v16 = vand.u32 2147483648, %v1125_v42  ;;  %v1179_v29 = vand.u32 2147483647, %v1125_v42  ;;  %vm1175_vm11 = vweird.f32 %v1125_v42 }
 0x6a7   : > { %v1182_v22 = vor.u32 1.1754944e-38, %v1181_v16  ;;  %vm1180_vm13 = vcmp.eq.f32.partialorder %v1179_v29, 8.507059e+37 }
 0x6ab   : > { %v3726_v44 = vpop.eup %3725 }
 0x6ac   : > { %v1171_v45 = vmul.f32 %v3726_v44, %v1125_v42  ;;  %vm1176_vm10 = vweird.f32 %v3726_v44  ;;  %v1062_v42 = vadd.f32 %v4422_v6, %v892_v15 }
 0x6ad   : > { %vm1177_vm12 = vmor %vm1175_vm11, %vm1176_vm10 }
 0x6ae   : > { %v1172_v46 = vsub.f32 1.0, %v1171_v45 }
 0x6b0   : > { %v1173_v19 = vmul.f32 %v3726_v44, %v1172_v46 }
 0x6b1   : > { %v1128_v20 = vpop.xlane.xlu1 %1127 }
 0x6b2   : > { %3727 = vrcp.f32 %v1128_v20  ;;  %v1174_v21 = vadd.f32 %v3726_v44, %v1173_v19  ;;  %v1195_v31 = vand.u32 2147483648, %v1128_v20  ;;  %v1193_v33 = vand.u32 2147483647, %v1128_v20 }
 0x6b3   : > { %v1164_v30 = vpop.f32.mrf.mxu3  ;;  %vm1189_vm15 = vweird.f32 %v1128_v20 }
 0x6b4   : > { %v1178_v23 = vsel %vm1177_vm12, %v3726_v44, %v1174_v21  ;;  %v1196_v47 = vor.u32 1.1754944e-38, %v1195_v31  ;;  %vm1194_vm2 = vcmp.eq.f32.partialorder %v1193_v33, 8.507059e+37 }
 0x6b5   : > { %v1183_v24 = vsel %vm1180_vm13, %v1182_v22, %v1178_v23 }
 0x6b6   : > { %v1198_v25 = vmul.f32 %v1183_v24, %v1164_v30 }
 0x6b7   : > { %v1365_v6 = vpop.permute.xlu0 %1364 }
 0x6b8   : > { %v3728_v26 = vpop.eup %3727  ;;  %3371 = vmatmul.msk.f32.vlgmr.msra.gmra.mxu0 %vm580_vm0, %v1198_v25 }
 0x6b9   : > { %v1185_v27 = vmul.f32 %v3728_v26, %v1128_v20  ;;  %vm1190_vm14 = vweird.f32 %v3728_v26 }
 0x6ba   : > { %vm1191_vm1 = vmor %vm1189_vm15, %vm1190_vm14 }
 0x6bb   : > { %v1186_v28 = vsub.f32 1.0, %v1185_v27 }
 0x6bd   : > { %v1187_v32 = vmul.f32 %v3728_v26, %v1186_v28 }
 0x6bf   : > { %v1188_v43 = vadd.f32 %v3728_v26, %v1187_v32 }
 0x6c0   : > { %v1167_v55 = vpop.f32.mrf.mxu3 }
 0x6c1   : > { %v1192_v48 = vsel %vm1191_vm1, %v3728_v26, %v1188_v43 }
 0x6c2   : > { %v1197_v61 = vsel %vm1194_vm2, %v1196_v47, %v1192_v48  ;;  %v4585_v47 = vpop.f32.mrf.mxu1 }
 0x6c3   : > { %v1199_v12 = vmul.f32 %v1197_v61, %v1167_v55 }
 0x6c5   : > { %3372 = vmatmul.msk.f32.gmra.mxu0 %vm580_vm0, %v1199_v12 }
 0x6c8   : > { %v1273_v5 = vpop.f32.mrf.mxu3 }
 0x6c9   : > { %v1274_v7 = vadd.f32 %v4491_v0, %v1273_v5 }
 0x6ca   : > { %v4587_v48 = vpop.f32.mrf.mxu1 }
 0x6cb   : > { %v1279_v57 = vsel %vm580_vm0, %v1274_v7, -inf }
 0x6cc   : > { %1280 = vmax.xlane.f32.xlu2 %v1279_v57 }
 0x6d0   : > { %v1276_v8 = vpop.f32.mrf.mxu3 }
 0x6d1   : > { %v4496_v54 = vadd.f32 %v4491_v0, %v1276_v8 }
 0x6d2   : > { %v4589_v61 = vpop.f32.mrf.mxu1 }
 0x6d3   : > { %v1282_v9 = vsel %vm580_vm0, %v4496_v54, -inf }
 0x6d4   : > { %1283 = vmax.xlane.f32.xlu1 %v1282_v9 }
 0x6da   : > { %v4591_v12 = vpop.f32.mrf.mxu1 }
 0x6e4   : > { %1366 = vrot.lane.b32.xlu2 %v4430_v2, %s3942_s13 }
 0x6ed   : > { %1362 = vrot.lane.b32.xlu1 %v4420_v60, %s3942_s13  ;;  %v4516_v60 = vpop.f32.mrf.mxu2 }
 0x6f5   : > { %1564 = vrot.lane.b32.xlu1 %v4430_v2, %s3943_s10  ;;  %v4519_v13 = vpop.f32.mrf.mxu2 }
 0x6fd   : > { %1358 = vrot.lane.b32.xlu1 %v4390_v49, %s3942_s13  ;;  %v4522_v49 = vpop.f32.mrf.mxu2 }
 0x6fe   : > { %1315 = vmatpush.msrb.mxu0 %v4522_v49 }
 0x700   : > { %1316 = vmatpush.msrb.mxu0 %v4519_v13 }
 0x702   : > { %1317 = vmatpush.msrb.mxu0 %v4516_v60 }
 0x704   : > { %1318 = vmatpush.msrb.mxu0 %v4512_v11 }
 0x705   : > { %1731 = vrot.lane.b32.xlu1 %v4430_v2, %s3944_s11  ;;  %v337_v2 = vld [vmem:[%s4125_s14 + $0x60] sm:$0xff] }
 0x706   : > { %498 = vmatmul.f32.gmra.mxu1 %v337_v2  ;;  %563 = vmatmul.f32.gmra.mxu2 %v337_v2 }
 0x707   : > { %1543 = vmatpush.msra.mxu0 %v4333_v34  ;;  %v339_v34 = vld [vmem:[%s4125_s14 + $0x70] sm:$0xff] }
 0x709   : > { %1544 = vmatpush.msra.mxu0 %v4336_v35  ;;  %v340_v35 = vld [vmem:[%s4125_s14 + $0x78] sm:$0xff] }
 0x70b   : > { %1545 = vmatpush.msra.mxu0 %v4339_v36  ;;  %v895_v36 = vadd.f32 %v4403_v3, %v4365_v18 }
 0x70d   : > { %1729 = vrot.lane.b32.xlu1 %v4425_v63, %s3944_s11  ;;  %v338_v63 = vld [vmem:[%s4125_s14 + $0x68] sm:$0xff]  ;;  %1546 = vmatpush.msra.mxu0 %v4342_v41  ;;  %v1063_v41 = vadd.f32 %v4428_v1, %v895_v36  ;;  %v1361_v1 = vpop.permute.xlu0 %1360  ;;  %s3511_s14 = sshll.u32 %s4003_s25, 6  ;;  %s3208_s25 = scalar_lea.sflag [#allocation4], %s294_s17 }
 0x70e   : > { %501 = vmatmul.f32.gmra.mxu1 %v338_v63  ;;  %566 = vmatmul.f32.gmra.mxu2 %v338_v63  ;;  %s3220_s29 = scalar_lea.hbm %s5096_s6, %s3511_s14 }
 0x70f   : > { %s3223_s12 = sshll.u32 %s3220_s29, 4  ;;  %s3224_s12 = int_to_ptr.hbm [resolvable:$true] %s3223_s12 }
 0x715   : > { %v1357_v24 = vpop.permute.xlu0 %1356 }
 0x716   : > { %504 = vmatmul.f32.gmra.mxu1 %v339_v34  ;;  %569 = vmatmul.f32.gmra.mxu2 %v339_v34 }
 0x71d   : > { %v1563_v26 = vpop.permute.xlu0 %1562 }
 0x71e   : > { %507 = vmatmul.f32.gmra.mxu1 %v340_v35  ;;  %572 = vmatmul.f32.gmra.mxu2 %v340_v35 }
 0x725   : > { %v1561_v28 = vpop.permute.xlu0 %1560 }
 0x72d   : > { %v1559_v32 = vpop.permute.xlu0 %1558 }
 0x735   : > { %v1223_v44 = vpop.f32.mrf.mxu0  ;;  %v1728_v55 = vpop.permute.xlu0 %1727 }
 0x736   : > { %v1229_v45 = vadd.f32 %v1223_v44, %v1062_v42 }
 0x738   : > { %1231 = vst [vmem:[%s4541_s20] sm:$0xff] %v1229_v45 }
 0x73f   : > { %v1281_v17 = vpop.xlane.xlu2 %1280 }
 0x740   : > { %v1285_v62 = vsub.f32 %v1274_v7, %v1281_v17 }
 0x742   : > { %v1287_v46 = vmul.f32 1.442695, %v1285_v62  ;;  %v1226_v16 = vpop.f32.mrf.mxu0 }
 0x743   : > { %v1230_v19 = vadd.f32 %v1226_v16, %v1063_v41  ;;  %v1557_v41 = vpop.permute.xlu0 %1556 }
 0x744   : > { %3729 = vpow2.f32 %v1287_v46 }
 0x745   : > { %1232 = vst [vmem:[%s4541_s20 + $0x8] sm:$0xff] %v1230_v19 }
 0x747   : > { %v1367_v29 = vpop.permute.xlu2 %1366  ;;  %v1284_v20 = vpop.xlane.xlu1 %1283 }
 0x748   : > { %v1286_v21 = vsub.f32 %v4496_v54, %v1284_v20  ;;  %3382 = vmatpush.xpose.msk.msrb.mxu1 %vm580_vm0, %v1367_v29 }
 0x74a   : > { %v3730_v22 = vpop.eup %3729  ;;  %v1289_v18 = vmul.f32 1.442695, %v1286_v21 }
 0x74b   : > { %3380 = vmatmul.msk.f32.vlgmr.msrb.gmra.mxu0 %vm580_vm0, %v3730_v22  ;;  %v1291_v3 = vsel %vm580_vm0, %v3730_v22, 0.0 }
 0x74c   : > { %3731 = vpow2.f32 %v1289_v18  ;;  %3383 = vmatpush.xpose.msk.msrb.mxu1 %vm580_vm0, %v1365_v6  ;;  %1292 = vadd.xlane.f32.xlu1 %v1291_v3 }
 0x752   : > { %v3732_v23 = vpop.eup %3731 }
 0x753   : > { %3381 = vmatmul.msk.f32.gmra.mxu0 %vm580_vm0, %v3732_v23  ;;  %v1294_v30 = vsel %vm580_vm0, %v3732_v23, 0.0 }
 0x754   : > { %1295 = vadd.xlane.f32.xlu2 %v1294_v30 }
 0x75f   : > { %v1363_v25 = vpop.permute.xlu1 %1362 }
 0x760   : > { %3384 = vmatpush.xpose.msk.msrb.mxu1 %vm580_vm0, %v1363_v25 }
 0x764   : > { %3385 = vmatpush.xpose.msk.msrb.mxu1 %vm580_vm0, %v1361_v1 }
 0x765   : > { %1725 = vrot.lane.b32.xlu1 %v4418_v56, %s3944_s11  ;;  %v4570_v56 = vpack.i.bf16 %v4519_v13, %v4522_v49 }
 0x767   : > { %3386 = vmatmul.msk.f32.vlgmr.msrb.gmra.mxu1 %vm580_vm0, %v1357_v24  ;;  %v1565_v27 = vpop.permute.xlu1 %1564 }
 0x768   : > { %3394 = vmatpush.xpose.msk.msra.mxu1 %vm580_vm0, %v1565_v27 }
 0x76c   : > { %1554 = vrot.lane.b32.xlu2 %v4388_v58, %s3943_s10  ;;  %3395 = vmatpush.xpose.msk.msra.mxu1 %vm580_vm0, %v1563_v26 }
 0x76d   : > { %1721 = vrot.lane.b32.xlu1 %v4388_v58, %s3944_s11  ;;  %v4579_v58 = vpack.i.bf16 %v4512_v11, %v4516_v60 }
 0x76f   : > { %v1359_v31 = vpop.permute.xlu1 %1358 }
 0x770   : > { %3387 = vmatmul.msk.f32.gmra.mxu1 %vm580_vm0, %v1359_v31 }
 0x771   : > { %3396 = vmatpush.xpose.msk.msra.mxu1 %vm580_vm0, %v1561_v28  ;;  %v1724_v28 = vpop.permute.xlu0 %1723 }
 0x774   : > { %3604 = vrot.lane.b32.xlu2 %v4570_v56, %s3942_s13 }
 0x775   : > { %3397 = vmatpush.xpose.msk.msra.mxu1 %vm580_vm0, %v1559_v32 }
 0x777   : > { %v1732_v33 = vpop.permute.xlu1 %1731 }
 0x778   : > { %3404 = vmatpush.xpose.msk.msrb.mxu0 %vm580_vm0, %v1732_v33 }
 0x77c   : > { %3609 = vrot.lane.b32.xlu2 %v4579_v58, %s3942_s13 }
 0x77f   : > { %v1730_v43 = vpop.permute.xlu1 %1729 }
 0x780   : > { %3405 = vmatpush.xpose.msk.msrb.mxu0 %vm580_vm0, %v1730_v43 }
 0x783   : > { %v4593_v5 = vpop.f32.mrf.mxu1 }
 0x784   : > { %3406 = vmatpush.xpose.msk.msrb.mxu0 %vm580_vm0, %v1728_v55 }
 0x78b   : > { %v4595_v8 = vpop.f32.mrf.mxu1 }
 0x793   : > { %v4598_v44 = vpop.f32.mrf.mxu1 }
 0x79b   : > { %v4603_v3 = vpop.f32.mrf.mxu1 }
 0x7bf   : > { %v1293_v7 = vpop.xlane.xlu1 %1292 }
 0x7c0   : > { %3733 = vrcp.f32 %v1293_v7  ;;  %v1337_v4 = vand.u32 2147483648, %v1293_v7  ;;  %v1335_v60 = vand.u32 2147483647, %v1293_v7  ;;  %vm1331_vm4 = vweird.f32 %v1293_v7 }
 0x7c2   : > { %v1338_v49 = vor.u32 1.1754944e-38, %v1337_v4  ;;  %vm1336_vm6 = vcmp.eq.f32.partialorder %v1335_v60, 8.507059e+37 }
 0x7c6   : > { %v3734_v57 = vpop.eup %3733 }
 0x7c7   : > { %v1327_v54 = vmul.f32 %v3734_v57, %v1293_v7  ;;  %v1296_v9 = vpop.xlane.xlu2 %1295  ;;  %vm1332_vm3 = vweird.f32 %v3734_v57 }
 0x7c8   : > { %3735 = vrcp.f32 %v1296_v9  ;;  %v1320_v14 = vpop.f32.mrf.mxu0  ;;  %vm1333_vm5 = vmor %vm1331_vm4, %vm1332_vm3  ;;  %v1351_v35 = vand.u32 2147483648, %v1296_v9  ;;  %v1349_v17 = vand.u32 2147483647, %v1296_v9  ;;  %vm1345_vm8 = vweird.f32 %v1296_v9 }
 0x7c9   : > { %v1328_v10 = vsub.f32 1.0, %v1327_v54 }
 0x7ca   : > { %v1352_v6 = vor.u32 1.1754944e-38, %v1351_v35  ;;  %vm1350_vm10 = vcmp.eq.f32.partialorder %v1349_v17, 8.507059e+37 }
 0x7cb   : > { %v1329_v11 = vmul.f32 %v3734_v57, %v1328_v10 }
 0x7cd   : > { %v1330_v59 = vadd.f32 %v3734_v57, %v1329_v11 }
 0x7ce   : > { %v3736_v13 = vpop.eup %3735 }
 0x7cf   : > { %v1341_v2 = vmul.f32 %v3736_v13, %v1296_v9  ;;  %v1334_v63 = vsel %vm1333_vm5, %v3734_v57, %v1330_v59  ;;  %v1555_v15 = vpop.permute.xlu2 %1554  ;;  %vm1346_vm7 = vweird.f32 %v3736_v13 }
 0x7d0   : > { %v1339_v42 = vsel %vm1336_vm6, %v1338_v49, %v1334_v63  ;;  %3398 = vmatmul.msk.f32.vlgmr.msra.gmra.mxu1 %vm580_vm0, %v1555_v15  ;;  %vm1347_vm9 = vmor %vm1345_vm8, %vm1346_vm7  ;;  %v1323_v29 = vpop.f32.mrf.mxu0 }
 0x7d1   : > { %v1342_v34 = vsub.f32 1.0, %v1341_v2  ;;  %v1354_v45 = vmul.f32 %v1339_v42, %v1320_v14 }
 0x7d3   : > { %v1343_v36 = vmul.f32 %v3736_v13, %v1342_v34  ;;  %3392 = vmatmul.msk.f32.vlgmr.msra.gmra.mxu0 %vm580_vm0, %v1354_v45 }
 0x7d5   : > { %v1344_v62 = vadd.f32 %v3736_v13, %v1343_v36 }
 0x7d7   : > { %v1348_v46 = vsel %vm1347_vm9, %v3736_v13, %v1344_v62  ;;  %v1726_v16 = vpop.permute.xlu1 %1725  ;;  %v3605_v19 = vpop.permute.xlu2 %3604 }
 0x7d8   : > { %v1353_v20 = vsel %vm1350_vm10, %v1352_v6, %v1348_v46  ;;  %3399 = vmatmul.msk.f32.gmra.mxu1 %vm580_vm0, %v1557_v41  ;;  %3407 = vmatpush.xpose.msk.msrb.mxu0 %vm580_vm0, %v1726_v16  ;;  %v3606_v21 = vunpack.i.l.bf16 %v3605_v19  ;;  %v3607_v22 = vunpack.i.h.bf16 %v3605_v19  ;;  %v4676_v6 = vld [vmem:[#allocation2 + $0x18] sm:$0xff]  ;;  %v4679_v46 = vld [vmem:[#allocation2 + $0x10] sm:$0xff]  ;;  %v4682_v16 = vld [vmem:[#allocation2 + $0x8] sm:$0xff] }
 0x7d9   : > { %v1355_v18 = vmul.f32 %v1353_v20, %v1323_v29  ;;  %v4685_v19 = vld [vmem:[#allocation2] sm:$0xff] }
 0x7da   : > { %1455 = vmatpush.msrb.mxu2 %v3606_v21 }
 0x7db   : > { %3393 = vmatmul.msk.f32.gmra.mxu0 %vm580_vm0, %v1355_v18 }
 0x7dc   : > { %1456 = vmatpush.msrb.mxu2 %v3607_v22 }
 0x7df   : > { %v3610_v1 = vpop.permute.xlu2 %3609  ;;  %v1722_v24 = vpop.permute.xlu1 %1721 }
 0x7e0   : > { %v3611_v23 = vunpack.i.l.bf16 %v3610_v1  ;;  %v3612_v30 = vunpack.i.h.bf16 %v3610_v1 }
 0x7e2   : > { %1457 = vmatpush.msrb.mxu2 %v3611_v23 }
 0x7e3   : > { %3408 = vmatmul.msk.f32.vlgmr.msrb.gmra.mxu0 %vm580_vm0, %v1722_v24 }
 0x7e4   : > { %v1397_v25 = vpop.f32.mrf.mxu1  ;;  %1458 = vmatpush.msrb.mxu2 %v3612_v30 }
 0x7e5   : > { %v1398_v26 = vadd.f32 %v4491_v0, %v1397_v25 }
 0x7e7   : > { %v1403_v27 = vsel %vm580_vm0, %v1398_v26, -inf }
 0x7e8   : > { %1404 = vmax.xlane.f32.xlu1 %v1403_v27 }
 0x7eb   : > { %3409 = vmatmul.msk.f32.gmra.mxu0 %vm580_vm0, %v1724_v28 }
 0x7ed   : > { %v1400_v31 = vpop.f32.mrf.mxu1 }
 0x7ee   : > { %v1401_v32 = vadd.f32 %v4491_v0, %v1400_v31 }
 0x7f0   : > { %v1406_v33 = vsel %vm580_vm0, %v1401_v32, -inf }
 0x7f1   : > { %1407 = vmax.xlane.f32.xlu0 %v1406_v33 }
 0x801   : > { %3614 = vrot.lane.b32.xlu1 %v4570_v56, %s3943_s10 }
 0x84d   : > { %v1595_v43 = vpop.f32.mrf.mxu1 }
 0x84e   : > { %v4615_v55 = vadd.f32 %v4491_v0, %v1595_v43 }
 0x850   : > { %v4617_v7 = vpop.f32.mrf.mxu0  ;;  %v1601_v57 = vsel %vm580_vm0, %v4615_v55, -inf }
 0x851   : > { %1602 = vmax.xlane.f32.xlu2 %v1601_v57 }
 0x855   : > { %v1598_v54 = vpop.f32.mrf.mxu1 }
 0x856   : > { %v4622_v9 = vadd.f32 %v4491_v0, %v1598_v54 }
 0x858   : > { %v4624_v10 = vpop.f32.mrf.mxu0  ;;  %v1604_v4 = vsel %vm580_vm0, %v4622_v9, -inf }
 0x859   : > { %1605 = vmax.xlane.f32.xlu0 %v1604_v4 }
 0x85b   : > { %v1405_v11 = vpop.xlane.xlu1 %1404 }
 0x85c   : > { %v1409_v60 = vsub.f32 %v1398_v26, %v1405_v11 }
 0x85e   : > { %v1411_v59 = vmul.f32 1.442695, %v1409_v60 }
 0x860   : > { %3737 = vpow2.f32 %v1411_v59  ;;  %v1762_v13 = vpop.f32.mrf.mxu0 }
 0x861   : > { %v1763_v29 = vadd.f32 %v4491_v0, %v1762_v13 }
 0x863   : > { %v1768_v20 = vsel %vm580_vm0, %v1763_v29, -inf }
 0x864   : > { %v1408_v14 = vpop.xlane.xlu0 %1407 }
 0x865   : > { %v1410_v49 = vsub.f32 %v1401_v32, %v1408_v14 }
 0x866   : > { %v4628_v2 = vpop.eup %3737 }
 0x867   : > { %v1413_v63 = vmul.f32 1.442695, %v1410_v49  ;;  %3388 = vmatmul.msk.f32.vlgmr.msrb.gmra.mxu2 %vm580_vm0, %v4628_v2  ;;  %v1415_v13 = vsel %vm580_vm0, %v4628_v2, 0.0 }
 0x868   : > { %v1765_v15 = vpop.f32.mrf.mxu0 }
 0x869   : > { %3739 = vpow2.f32 %v1413_v63  ;;  %v4633_v42 = vadd.f32 %v4491_v0, %v1765_v15  ;;  %3619 = vrot.lane.b32.xlu2 %v4579_v58, %s3943_s10 }
 0x86b   : > { %v1771_v34 = vsel %vm580_vm0, %v4633_v42, -inf }
 0x86c   : > { %1772 = vmax.xlane.f32.xlu1 %v1771_v34 }
 0x86d   : > { %3624 = vrot.lane.b32.xlu0 %v4570_v56, %s3944_s11  ;;  %v4652_v56 = vpop.f32.mrf.mxu2 }
 0x86f   : > { %v3740_v45 = vpop.eup %3739 }
 0x870   : > { %3389 = vmatmul.msk.f32.gmra.mxu2 %vm580_vm0, %v3740_v45  ;;  %v1418_v21 = vsel %vm580_vm0, %v3740_v45, 0.0 }
 0x871   : > { %2024 = vrot.lane.b32.xlu2 %v4591_v12, %s3942_s13 }
 0x873   : > { %v3615_v35 = vpop.permute.xlu1 %3614 }
 0x874   : > { %v3616_v36 = vunpack.i.l.bf16 %v3615_v35  ;;  %v3617_v17 = vunpack.i.h.bf16 %v3615_v35 }
 0x875   : > { %3629 = vrot.lane.b32.xlu0 %v4579_v58, %s3944_s11  ;;  %v4662_v58 = vpop.f32.mrf.mxu2 }
 0x876   : > { %1649 = vmatpush.msra.mxu2 %v3616_v36 }
 0x878   : > { %1650 = vmatpush.msra.mxu2 %v3617_v17 }
 0x879   : > { %2020 = vrot.lane.b32.xlu2 %v4587_v48, %s3942_s13 }
 0x87d   : > { %2022 = vrot.lane.b32.xlu0 %v4589_v61, %s3942_s13  ;;  %v4666_v62 = vpop.f32.mrf.mxu2 }
 0x881   : > { %2014 = vrot.lane.b32.xlu2 %v4392_v50, %s3942_s13 }
 0x885   : > { %2018 = vrot.lane.b32.xlu0 %v4585_v47, %s3942_s13  ;;  %2016 = vrot.lane.b32.xlu1 %v4394_v51, %s3942_s13  ;;  %v4670_v41 = vpop.f32.mrf.mxu2 }
 0x886   : > { %1973 = vmatpush.msra.mxu0 %v4670_v41 }
 0x888   : > { %1974 = vmatpush.msra.mxu0 %v4666_v62 }
 0x889   : > { %2220 = vrot.lane.b32.xlu2 %v4589_v61, %s3943_s10 }
 0x88a   : > { %1975 = vmatpush.msra.mxu0 %v4662_v58 }
 0x88c   : > { %1976 = vmatpush.msra.mxu0 %v4652_v56 }
 0x88d   : > { %2222 = vrot.lane.b32.xlu0 %v4591_v12, %s3943_s10 }
 0x88e   : > { %2201 = vmatpush.msrb.mxu0 %v4676_v6 }
 0x890   : > { %2202 = vmatpush.msrb.mxu0 %v4679_v46 }
 0x891   : > { %2216 = vrot.lane.b32.xlu2 %v4585_v47, %s3943_s10 }
 0x892   : > { %2203 = vmatpush.msrb.mxu0 %v4682_v16 }
 0x894   : > { %2204 = vmatpush.msrb.mxu0 %v4685_v19 }
 0x899   : > { %2214 = vrot.lane.b32.xlu2 %v4394_v51, %s3943_s10 }
 0x8b7   : > { %1769 = vmax.xlane.f32.xlu0 %v1768_v20 }
 0x8c2   : > { %1419 = vadd.xlane.f32.xlu2 %v1418_v21  ;;  %v4728_v21 = vpop.f32.mrf.mxu2 }
 0x8c4   : > { %v1603_v22 = vpop.xlane.xlu2 %1602 }
 0x8c5   : > { %v1607_v18 = vsub.f32 %v4615_v55, %v1603_v22 }
 0x8c7   : > { %v1609_v1 = vmul.f32 1.442695, %v1607_v18  ;;  %v4732_v18 = vpack.i.bf16 %v4666_v62, %v4670_v41 }
 0x8c9   : > { %3741 = vpow2.f32 %v1609_v1 }
 0x8cb   : > { %2218 = vrot.lane.b32.xlu0 %v4587_v48, %s3943_s10 }
 0x8cc   : > { %v3620_v23 = vpop.permute.xlu2 %3619  ;;  %v1606_v30 = vpop.xlane.xlu0 %1605 }
 0x8cd   : > { %v3621_v24 = vunpack.i.l.bf16 %v3620_v23  ;;  %v1608_v25 = vsub.f32 %v4622_v9, %v1606_v30  ;;  %v3622_v26 = vunpack.i.h.bf16 %v3620_v23 }
 0x8cf   : > { %v3742_v0 = vpop.eup %3741  ;;  %v1611_v27 = vmul.f32 1.442695, %v1608_v25  ;;  %1651 = vmatpush.msra.mxu2 %v3621_v24 }
 0x8d0   : > { %v1613_v28 = vsel %vm580_vm0, %v3742_v0, 0.0 }
 0x8d1   : > { %1614 = vadd.xlane.f32.xlu1 %v1613_v28  ;;  %1652 = vmatpush.msra.mxu2 %v3622_v26  ;;  %3743 = vpow2.f32 %v1611_v27 }
 0x8d2   : > { %3400 = vmatmul.msk.f32.vlgmr.msra.gmra.mxu2 %vm580_vm0, %v3742_v0 }
 0x8d3   : > { %2212 = vrot.lane.b32.xlu0 %v4392_v50, %s3943_s10  ;;  %1875 = vmatpush.msrb.mxu2 %v4476_v37 }
 0x8d4   : > { %v2025_v4 = vpop.permute.xlu2 %2024 }
 0x8d5   : > { %1876 = vmatpush.msrb.mxu2 %v4479_v38 }
 0x8d7   : > { %1877 = vmatpush.msrb.mxu2 %v4482_v39  ;;  %v3744_v31 = vpop.eup %3743 }
 0x8d8   : > { %v1616_v14 = vsel %vm580_vm0, %v3744_v31, 0.0 }
 0x8d9   : > { %1878 = vmatpush.msrb.mxu2 %v4485_v40 }
 0x8da   : > { %3401 = vmatmul.msk.f32.gmra.mxu2 %vm580_vm0, %v3744_v31 }
 0x8dc   : > { %v2021_v60 = vpop.permute.xlu2 %2020 }
 0x8df   : > { %v3625_v32 = vpop.permute.xlu0 %3624  ;;  %v1773_v33 = vpop.xlane.xlu1 %1772 }
 0x8e0   : > { %v3626_v43 = vunpack.i.l.bf16 %v3625_v32  ;;  %v1775_v55 = vsub.f32 %v4633_v42, %v1773_v33  ;;  %v3627_v57 = vunpack.i.h.bf16 %v3625_v32 }
 0x8e2   : > { %v1778_v54 = vmul.f32 1.442695, %v1775_v55  ;;  %1816 = vmatpush.msrb.mxu1 %v3626_v43 }
 0x8e4   : > { %3745 = vpow2.f32 %v1778_v54  ;;  %1817 = vmatpush.msrb.mxu1 %v3627_v57  ;;  %v2015_v34 = vpop.permute.xlu2 %2014 }
 0x8e7   : > { %v3630_v37 = vpop.permute.xlu0 %3629 }
 0x8e8   : > { %v3631_v9 = vunpack.i.l.bf16 %v3630_v37  ;;  %v3632_v39 = vunpack.i.h.bf16 %v3630_v37 }
 0x8ea   : > { %v3746_v38 = vpop.eup %3745  ;;  %1818 = vmatpush.msrb.mxu1 %v3631_v9 }
 0x8eb   : > { %v1783_v40 = vsel %vm580_vm0, %v3746_v38, 0.0 }
 0x8ec   : > { %1819 = vmatpush.msrb.mxu1 %v3632_v39  ;;  %1784 = vadd.xlane.f32.xlu1 %v1783_v40  ;;  %v2221_v36 = vpop.permute.xlu2 %2220 }
 0x8ee   : > { %3425 = vmatpush.xpose.msk.msra.mxu1 %vm580_vm0, %v2025_v4 }
 0x8ef   : > { %v2023_v11 = vpop.permute.xlu0 %2022 }
 0x8f2   : > { %3426 = vmatpush.xpose.msk.msra.mxu1 %vm580_vm0, %v2023_v11 }
 0x8f4   : > { %v2217_v17 = vpop.permute.xlu2 %2216 }
 0x8f6   : > { %3427 = vmatpush.xpose.msk.msra.mxu1 %vm580_vm0, %v2021_v60 }
 0x8f7   : > { %v2019_v59 = vpop.permute.xlu0 %2018  ;;  %v2017_v20 = vpop.permute.xlu1 %2016 }
 0x8fa   : > { %3428 = vmatpush.xpose.msk.msra.mxu1 %vm580_vm0, %v2019_v59 }
 0x8fd   : > { %1416 = vadd.xlane.f32.xlu0 %v1415_v13 }
 0x8ff   : > { %v2223_v49 = vpop.permute.xlu0 %2222 }
 0x905   : > { %1617 = vadd.xlane.f32.xlu0 %v1616_v14 }
 0x92a   : > { %v1770_v63 = vpop.xlane.xlu0 %1769 }
 0x92b   : > { %v1774_v15 = vsub.f32 %v1763_v29, %v1770_v63  ;;  %v4723_v29 = vpack.i.bf16 %v4652_v56, %v4662_v58  ;;  %v2215_v56 = vpop.permute.xlu2 %2214  ;;  %v4738_v58 = vpop.f32.mrf.mxu2 }
 0x92d   : > { %v1776_v42 = vmul.f32 1.442695, %v1774_v15  ;;  %3639 = vrot.lane.b32.xlu0 %v4723_v29, %s3942_s13 }
 0x92f   : > { %3747 = vpow2.f32 %v1776_v42 }
 0x933   : > { %v4740_v23 = vpop.f32.mrf.mxu2 }
 0x935   : > { %v3748_v45 = vpop.eup %3747  ;;  %v1420_v1 = vpop.xlane.xlu2 %1419 }
 0x936   : > { %3410 = vmatmul.msk.f32.vlgmr.msrb.gmra.mxu1 %vm580_vm0, %v3748_v45  ;;  %v1780_v35 = vsel %vm580_vm0, %v3748_v45, 0.0  ;;  %3749 = vrcp.f32 %v1420_v1  ;;  %v1491_v60 = vand.u32 2147483648, %v1420_v1  ;;  %vm1485_vm1 = vweird.f32 %v1420_v1 }
 0x937   : > { %3437 = vmatpush.xpose.msk.msrb.mxu1 %vm580_vm0, %v2223_v49  ;;  %1781 = vadd.xlane.f32.xlu2 %v1780_v35  ;;  %v1489_v14 = vand.u32 2147483647, %v1420_v1 }
 0x938   : > { %v1492_v42 = vor.u32 1.1754944e-38, %v1491_v60 }
 0x939   : > { %vm1490_vm3 = vcmp.eq.f32.partialorder %v1489_v14, 8.507059e+37 }
 0x93b   : > { %3438 = vmatpush.xpose.msk.msrb.mxu1 %vm580_vm0, %v2221_v36  ;;  %v4742_v62 = vpop.f32.mrf.mxu2 }
 0x93c   : > { %v3750_v30 = vpop.eup %3749 }
 0x93d   : > { %v2219_v2 = vpop.permute.xlu0 %2218  ;;  %v1481_v41 = vmul.f32 %v3750_v30, %v1420_v1  ;;  %vm1486_vm14 = vweird.f32 %v3750_v30 }
 0x93e   : > { %3411 = vmatmul.msk.f32.gmra.mxu1 %vm580_vm0, %v3746_v38  ;;  %vm1487_vm2 = vmor %vm1485_vm1, %vm1486_vm14 }
 0x93f   : > { %3439 = vmatpush.xpose.msk.msrb.mxu1 %vm580_vm0, %v2219_v2  ;;  %v1482_v26 = vsub.f32 1.0, %v1481_v41 }
 0x941   : > { %v1483_v33 = vmul.f32 %v3750_v30, %v1482_v26 }
 0x943   : > { %3440 = vmatpush.xpose.msk.msrb.mxu1 %vm580_vm0, %v2217_v17  ;;  %v1460_v37 = vpop.f32.mrf.mxu2  ;;  %v1484_v40 = vadd.f32 %v3750_v30, %v1483_v33 }
 0x944   : > { %v1615_v24 = vpop.xlane.xlu1 %1614 }
 0x945   : > { %v2213_v22 = vpop.permute.xlu0 %2212  ;;  %v1488_v15 = vsel %vm1487_vm2, %v3750_v30, %v1484_v40  ;;  %v1671_v2 = vand.u32 2147483648, %v1615_v24  ;;  %vm1665_vm5 = vweird.f32 %v1615_v24  ;;  %v1669_v17 = vand.u32 2147483647, %v1615_v24  ;;  %v4786_v40 = vld [vmem:[#allocation2 + $0x40] sm:$0xff] }
 0x946   : > { %3429 = vmatmul.msk.f32.vlgmr.msra.gmra.mxu1 %vm580_vm0, %v2015_v34  ;;  %v1493_v45 = vsel %vm1490_vm3, %v1492_v42, %v1488_v15 }
 0x947   : > { %v1672_v1 = vor.u32 1.1754944e-38, %v1671_v2  ;;  %vm1670_vm7 = vcmp.eq.f32.partialorder %v1669_v17, 8.507059e+37 }
 0x94b   : > { %v1463_v34 = vpop.f32.mrf.mxu2 }
 0x94e   : > { %3430 = vmatmul.msk.f32.gmra.mxu1 %vm580_vm0, %v2017_v20  ;;  %v1495_v20 = vmul.f32 %v1493_v45, %v1463_v34 }
 0x94f   : > { %3634 = vrot.lane.b32.xlu2 %v4732_v18, %s3942_s13 }
 0x955   : > { %v1654_v30 = vpop.f32.mrf.mxu2 }
 0x956   : > { %3441 = vmatmul.msk.f32.vlgmr.msrb.gmra.mxu1 %vm580_vm0, %v2213_v22 }
 0x95e   : > { %3442 = vmatmul.msk.f32.gmra.mxu1 %vm580_vm0, %v2215_v56 }
 0x970   : > { %v1417_v25 = vpop.xlane.xlu0 %1416 }
 0x971   : > { %3751 = vrcp.f32 %v1417_v25  ;;  %v1477_v43 = vand.u32 2147483648, %v1417_v25  ;;  %v1475_v54 = vand.u32 2147483647, %v1417_v25  ;;  %vm1471_vm12 = vweird.f32 %v1417_v25 }
 0x972   : > { %3753 = vrcp.f32 %v1615_v24 }
 0x973   : > { %v1478_v38 = vor.u32 1.1754944e-38, %v1477_v43  ;;  %vm1476_vm15 = vcmp.eq.f32.partialorder %v1475_v54, 8.507059e+37  ;;  %v4765_v43 = vld [vmem:[#allocation2 + $0x30] sm:$0xff]  ;;  %v4771_v54 = vld [vmem:[#allocation2 + $0x20] sm:$0xff] }
 0x977   : > { %v3752_v0 = vpop.eup %3751 }
 0x978   : > { %v1467_v27 = vmul.f32 %v3752_v0, %v1417_v25  ;;  %v4744_v28 = vpop.xlane.xlu0 %1617  ;;  %v3754_v31 = vpop.eup %3753  ;;  %vm1472_vm11 = vweird.f32 %v3752_v0 }
 0x979   : > { %3755 = vrcp.f32 %v4744_v28  ;;  %v1661_v55 = vmul.f32 %v3754_v31, %v1615_v24  ;;  %vm1473_vm13 = vmor %vm1471_vm12, %vm1472_vm11  ;;  %vm1666_vm4 = vweird.f32 %v3754_v31  ;;  %vm1679_vm9 = vweird.f32 %v4744_v28 }
 0x97a   : > { %v1468_v32 = vsub.f32 1.0, %v1467_v27  ;;  %vm1667_vm6 = vmor %vm1665_vm5, %vm1666_vm4  ;;  %v1683_v26 = vand.u32 2147483647, %v4744_v28 }
 0x97b   : > { %v1662_v4 = vsub.f32 1.0, %v1661_v55  ;;  %v1657_v55 = vpop.f32.mrf.mxu2 }
 0x97c   : > { %v1469_v57 = vmul.f32 %v3752_v0, %v1468_v32  ;;  %v4762_v32 = vld [vmem:[#allocation2 + $0x38] sm:$0xff]  ;;  %vm1684_vm11 = vcmp.eq.f32.partialorder %v1683_v26, 8.507059e+37 }
 0x97d   : > { %v1663_v49 = vmul.f32 %v3754_v31, %v1662_v4  ;;  %v4783_v4 = vld [vmem:[#allocation2 + $0x48] sm:$0xff] }
 0x97e   : > { %v1470_v9 = vadd.f32 %v3752_v0, %v1469_v57  ;;  %v4768_v57 = vld [vmem:[#allocation2 + $0x28] sm:$0xff] }
 0x97f   : > { %v3756_v11 = vpop.eup %3755  ;;  %v1664_v35 = vadd.f32 %v3754_v31, %v1663_v49 }
 0x980   : > { %v1474_v39 = vsel %vm1473_vm13, %v3752_v0, %v1470_v9  ;;  %v1675_v63 = vmul.f32 %v3756_v11, %v4744_v28  ;;  %vm1680_vm8 = vweird.f32 %v3756_v11  ;;  %v1685_v0 = vand.u32 2147483648, %v4744_v28  ;;  %v4777_v9 = vld [vmem:[#allocation2 + $0x58] sm:$0xff] }
 0x981   : > { %v1479_v59 = vsel %vm1476_vm15, %v1478_v38, %v1474_v39  ;;  %v1668_v22 = vsel %vm1667_vm6, %v3754_v31, %v1664_v35  ;;  %vm1681_vm10 = vmor %vm1679_vm9, %vm1680_vm8  ;;  %v4780_v38 = vld [vmem:[#allocation2 + $0x50] sm:$0xff] }
 0x982   : > { %v1494_v13 = vmul.f32 %v1479_v59, %v1460_v37  ;;  %v1676_v36 = vsub.f32 1.0, %v1675_v63  ;;  %v1673_v25 = vsel %vm1670_vm7, %v1672_v1, %v1668_v22  ;;  %v1686_v31 = vor.u32 1.1754944e-38, %v1685_v0  ;;  %v1785_v37 = vpop.xlane.xlu1 %1784 }
 0x983   : > { %v1688_v24 = vmul.f32 %v1673_v25, %v1654_v30  ;;  %3757 = vrcp.f32 %v1785_v37  ;;  %v1852_v26 = vand.u32 2147483648, %v1785_v37  ;;  %vm1846_vm2 = vweird.f32 %v1785_v37 }
 0x984   : > { %3390 = vmatmul.msk.f32.vlgmr.msra.gmra.mxu3 %vm580_vm0, %v1494_v13  ;;  %v1677_v56 = vmul.f32 %v3756_v11, %v1676_v36 }
 0x985   : > { %3417 = vmatpush.xpose.msk.msra.mxu3 %vm580_vm0, %v4591_v12 }
 0x986   : > { %v1678_v41 = vadd.f32 %v3756_v11, %v1677_v56 }
 0x988   : > { %v1682_v27 = vsel %vm1681_vm10, %v3756_v11, %v1678_v41 }
 0x989   : > { %3418 = vmatpush.xpose.msk.msra.mxu3 %vm580_vm0, %v4589_v61  ;;  %v1687_v33 = vsel %vm1684_vm11, %v1686_v31, %v1682_v27  ;;  %v3758_v11 = vpop.eup %3757  ;;  %v1850_v27 = vand.u32 2147483647, %v1785_v37 }
 0x98a   : > { %v1689_v28 = vmul.f32 %v1687_v33, %v1657_v55  ;;  %v1842_v60 = vmul.f32 %v3758_v11, %v1785_v37  ;;  %vm1847_vm1 = vweird.f32 %v3758_v11  ;;  %v4793_v33 = vld [vmem:[%s4241_s18 + $0x2] ss:$0 sm:$0xff]  ;;  %v1853_v55 = vor.u32 1.1754944e-38, %v1852_v26 }
 0x98b   : > { %vm1848_vm3 = vmor %vm1846_vm2, %vm1847_vm1  ;;  %vm1851_vm4 = vcmp.eq.f32.partialorder %v1850_v27, 8.507059e+37 }
 0x98c   : > { %3391 = vmatmul.msk.f32.gmra.mxu3 %vm580_vm0, %v1495_v20  ;;  %v1843_v42 = vsub.f32 1.0, %v1842_v60 }
 0x98d   : > { %3419 = vmatpush.xpose.msk.msra.mxu3 %vm580_vm0, %v4587_v48 }
 0x98e   : > { %v1844_v17 = vmul.f32 %v3758_v11, %v1843_v42 }
 0x991   : > { %3420 = vmatpush.xpose.msk.msra.mxu3 %vm580_vm0, %v4585_v47 }
 0x994   : > { %3402 = vmatmul.msk.f32.vlgmr.msrb.gmra.mxu3 %vm580_vm0, %v1688_v24  ;;  %v1845_v24 = vadd.f32 %v3758_v11, %v1844_v17 }
 0x995   : > { %2172 = vmatpush.msrb.mxu3 %v4762_v32 }
 0x996   : > { %v1849_v31 = vsel %vm1848_vm3, %v3758_v11, %v1845_v24 }
 0x997   : > { %2173 = vmatpush.msrb.mxu3 %v4765_v43 }
 0x999   : > { %2174 = vmatpush.msrb.mxu3 %v4768_v57 }
 0x99b   : > { %2175 = vmatpush.msrb.mxu3 %v4771_v54 }
 0x99c   : > { %3403 = vmatmul.msk.f32.gmra.mxu3 %vm580_vm0, %v1689_v28  ;;  %v1854_v28 = vsel %vm1851_vm4, %v1853_v55, %v1849_v31 }
 0x99f   : > { %v3640_v56 = vpop.permute.xlu0 %3639 }
 0x9a0   : > { %v3642_v25 = vunpack.i.h.bf16 %v3640_v56  ;;  %v3641_v41 = vunpack.i.l.bf16 %v3640_v56 }
 0x9a4   : > { %3421 = vmatmul.msk.f32.vlgmr.msra.gmra.mxu3 %vm580_vm0, %v4392_v50 }
 0x9a5   : > { %2366 = vmatpush.msra.mxu3 %v4777_v9 }
 0x9a7   : > { %2367 = vmatpush.msra.mxu3 %v4780_v38 }
 0x9a9   : > { %2368 = vmatpush.msra.mxu3 %v4783_v4 }
 0x9aa   : > { %v1782_v39 = vpop.xlane.xlu2 %1781 }
 0x9ab   : > { %3759 = vrcp.f32 %v1782_v39  ;;  %2369 = vmatpush.msra.mxu3 %v4786_v40  ;;  %v1838_v45 = vand.u32 2147483648, %v1782_v39  ;;  %v1836_v36 = vand.u32 2147483647, %v1782_v39  ;;  %vm1832_vm13 = vweird.f32 %v1782_v39 }
 0x9ac   : > { %3422 = vmatmul.msk.f32.gmra.mxu3 %vm580_vm0, %v4394_v51 }
 0x9ad   : > { %v1839_v20 = vor.u32 1.1754944e-38, %v1838_v45  ;;  %vm1837_vm15 = vcmp.eq.f32.partialorder %v1836_v36, 8.507059e+37 }
 0x9b1   : > { %v3760_v59 = vpop.eup %3759 }
 0x9b2   : > { %v1828_v13 = vmul.f32 %v3760_v59, %v1782_v39  ;;  %v3635_v14 = vpop.permute.xlu2 %3634  ;;  %vm1833_vm12 = vweird.f32 %v3760_v59 }
 0x9b3   : > { %v1821_v49 = vpop.f32.mrf.mxu1  ;;  %v3637_v63 = vunpack.i.h.bf16 %v3635_v14  ;;  %v3636_v15 = vunpack.i.l.bf16 %v3635_v14  ;;  %vm1834_vm14 = vmor %vm1832_vm13, %vm1833_vm12 }
 0x9b4   : > { %v1829_v34 = vsub.f32 1.0, %v1828_v13 }
 0x9b5   : > { %2113 = vmatpush.msra.mxu2 %v3636_v15 }
 0x9b6   : > { %v1830_v35 = vmul.f32 %v3760_v59, %v1829_v34 }
 0x9b7   : > { %2114 = vmatpush.msra.mxu2 %v3637_v63 }
 0x9b8   : > { %v1831_v2 = vadd.f32 %v3760_v59, %v1830_v35 }
 0x9b9   : > { %2115 = vmatpush.msra.mxu2 %v3641_v41 }
 0x9ba   : > { %v1835_v22 = vsel %vm1834_vm14, %v3760_v59, %v1831_v2 }
 0x9bb   : > { %v1840_v1 = vsel %vm1837_vm15, %v1839_v20, %v1835_v22  ;;  %v1824_v30 = vpop.f32.mrf.mxu1  ;;  %2116 = vmatpush.msra.mxu2 %v3642_v25 }
 0x9bc   : > { %v1855_v0 = vmul.f32 %v1840_v1, %v1821_v49  ;;  %v1856_v60 = vmul.f32 %v1854_v28, %v1824_v30 }
 0x9be   : > { %3412 = vmatmul.msk.f32.vlgmr.msrb.gmra.mxu2 %vm580_vm0, %v1855_v0 }
 0x9c3   : > { %v2055_v39 = vpop.f32.mrf.mxu1 }
 0x9c4   : > { %v2056_v59 = vadd.f32 %v4793_v33, %v2055_v39 }
 0x9c6   : > { %3413 = vmatmul.msk.f32.gmra.mxu2 %vm580_vm0, %v1856_v60  ;;  %v2061_v13 = vsel %vm580_vm0, %v2056_v59, -inf }
 0x9c7   : > { %2062 = vmax.xlane.f32.xlu0 %v2061_v13 }
 0x9cb   : > { %v2058_v37 = vpop.f32.mrf.mxu1 }
 0x9cc   : > { %v2059_v14 = vadd.f32 %v4793_v33, %v2058_v37 }
 0x9ce   : > { %v2064_v49 = vsel %vm580_vm0, %v2059_v14, -inf }
 0x9cf   : > { %2065 = vmax.xlane.f32.xlu1 %v2064_v49 }
 0x9d3   : > { %v2253_v11 = vpop.f32.mrf.mxu1 }
 0x9d4   : > { %v2254_v63 = vadd.f32 %v4793_v33, %v2253_v11 }
 0x9d6   : > { %v2259_v15 = vsel %vm580_vm0, %v2254_v63, -inf }
 0x9d7   : > { %2260 = vmax.xlane.f32.xlu1 %v2259_v15 }
 0x9db   : > { %3649 = vrot.lane.b32.xlu0 %v4723_v29, %s3943_s10  ;;  %v2256_v42 = vpop.f32.mrf.mxu1 }
 0x9dc   : > { %v2257_v34 = vadd.f32 %v4793_v33, %v2256_v42 }
 0x9de   : > { %v2262_v45 = vsel %vm580_vm0, %v2257_v34, -inf }
 0x9df   : > { %2263 = vmax.xlane.f32.xlu2 %v2262_v45 }
 0x9f0   : > { %3644 = vrot.lane.b32.xlu1 %v4732_v18, %s3943_s10 }
 0xa07   : > { %v1519_v35 = vpop.f32.mrf.mxu3 }
 0xa08   : > { %v1549_v41 = vadd.f32 %v4617_v7, %v1519_v35 }
 0xa0f   : > { %v1522_v36 = vpop.f32.mrf.mxu3 }
 0xa10   : > { %v1552_v39 = vadd.f32 %v4624_v10, %v1522_v36 }
 0xa17   : > { %v1713_v2 = vpop.f32.mrf.mxu3 }
 0xa18   : > { %v1719_v0 = vadd.f32 %v1713_v2, %v1549_v41 }
 0xa1f   : > { %v1716_v17 = vpop.f32.mrf.mxu3 }
 0xa27   : > { %v1931_v20 = vpop.f32.mrf.mxu3 }
 0xa28   : > { %v4809_v22 = vadd.f32 %v4793_v33, %v1931_v20 }
 0xa2a   : > { %v1937_v56 = vsel %vm580_vm0, %v4809_v22, -inf }
 0xa2b   : > { %1938 = vmax.xlane.f32.xlu1 %v1937_v56 }
 0xa2f   : > { %v1934_v42 = vpop.f32.mrf.mxu3 }
 0xa30   : > { %v4822_v10 = vadd.f32 %v4793_v33, %v1934_v42 }
 0xa3a   : > { %v2063_v1 = vpop.xlane.xlu0 %2062 }
 0xa3b   : > { %v2067_v30 = vsub.f32 %v2056_v59, %v2063_v1  ;;  %v1720_v59 = vadd.f32 %v1716_v17, %v1552_v39 }
 0xa3d   : > { %v2069_v25 = vmul.f32 1.442695, %v2067_v30 }
 0xa3f   : > { %3761 = vpow2.f32 %v2069_v25 }
 0xa41   : > { %v1880_v24 = vpop.f32.mrf.mxu2 }
 0xa42   : > { %v1886_v26 = vadd.f32 %v1880_v24, %v1719_v0  ;;  %v2066_v27 = vpop.xlane.xlu1 %2065  ;;  %v4829_v24 = vld [vmem:[#allocation2 + $0x78] sm:$0xff] }
 0xa43   : > { %v2068_v31 = vsub.f32 %v2059_v14, %v2066_v27  ;;  %v4835_v27 = vld [vmem:[#allocation2 + $0x68] sm:$0xff] }
 0xa44   : > { %3414 = vst [vmem:[%s4541_s20 + $0x10] sm:$0xff] %v1886_v26  ;;  %v4832_v26 = vld [vmem:[#allocation2 + $0x70] sm:$0xff] }
 0xa45   : > { %v3762_v55 = vpop.eup %3761  ;;  %v2071_v28 = vmul.f32 1.442695, %v2068_v31  ;;  %v4838_v31 = vld [vmem:[#allocation2 + $0x60] sm:$0xff] }
 0xa46   : > { %3431 = vmatmul.msk.f32.vlgmr.msra.gmra.mxu2 %vm580_vm0, %v3762_v55  ;;  %v2073_v60 = vsel %vm580_vm0, %v3762_v55, 0.0 }
 0xa47   : > { %3763 = vpow2.f32 %v2071_v28  ;;  %2074 = vadd.xlane.f32.xlu0 %v2073_v60 }
 0xa49   : > { %v1883_v7 = vpop.f32.mrf.mxu2 }
 0xa4a   : > { %v1887_v13 = vadd.f32 %v1883_v7, %v1720_v59  ;;  %v2261_v37 = vpop.xlane.xlu1 %2260 }
 0xa4b   : > { %v2265_v49 = vsub.f32 %v2254_v63, %v2261_v37  ;;  %v1940_v63 = vsel %vm580_vm0, %v4822_v10, -inf }
 0xa4c   : > { %3415 = vst [vmem:[%s4541_s20 + $0x18] sm:$0xff] %v1887_v13 }
 0xa4d   : > { %v3764_v11 = vpop.eup %3763  ;;  %v2267_v15 = vmul.f32 1.442695, %v2265_v49  ;;  %v3650_v25 = vpop.permute.xlu0 %3649 }
 0xa4e   : > { %3432 = vmatmul.msk.f32.gmra.mxu2 %vm580_vm0, %v3764_v11  ;;  %v2076_v14 = vsel %vm580_vm0, %v3764_v11, 0.0  ;;  %v3652_v0 = vunpack.i.h.bf16 %v3650_v25 }
 0xa4f   : > { %3765 = vpow2.f32 %v2267_v15  ;;  %2077 = vadd.xlane.f32.xlu2 %v2076_v14 }
 0xa52   : > { %v2264_v45 = vpop.xlane.xlu2 %2263 }
 0xa53   : > { %v2266_v35 = vsub.f32 %v2257_v34, %v2264_v45  ;;  %v3651_v34 = vunpack.i.l.bf16 %v3650_v25 }
 0xa55   : > { %v3766_v36 = vpop.eup %3765  ;;  %v2269_v2 = vmul.f32 1.442695, %v2266_v35 }
 0xa56   : > { %v2271_v17 = vsel %vm580_vm0, %v3766_v36, 0.0 }
 0xa57   : > { %3767 = vpow2.f32 %v2269_v2  ;;  %2272 = vadd.xlane.f32.xlu0 %v2271_v17  ;;  %1941 = vmax.xlane.f32.xlu2 %v1940_v63 }
 0xa5d   : > { %v3768_v20 = vpop.eup %3767 }
 0xa5e   : > { %v2274_v56 = vsel %vm580_vm0, %v3768_v20, 0.0 }
 0xa5f   : > { %2275 = vadd.xlane.f32.xlu2 %v2274_v56 }
 0xa62   : > { %v3645_v1 = vpop.permute.xlu1 %3644 }
 0xa63   : > { %v3646_v30 = vunpack.i.l.bf16 %v3645_v1  ;;  %v3647_v41 = vunpack.i.h.bf16 %v3645_v1 }
 0xa65   : > { %2307 = vmatpush.msrb.mxu2 %v3646_v30 }
 0xa67   : > { %2308 = vmatpush.msrb.mxu2 %v3647_v41 }
 0xa69   : > { %2309 = vmatpush.msrb.mxu2 %v3651_v34 }
 0xa6b   : > { %2310 = vmatpush.msrb.mxu2 %v3652_v0 }
 0xa6c   : > { %3443 = vmatmul.msk.f32.vlgmr.msrb.gmra.mxu2 %vm580_vm0, %v3766_v36 }
 0xa6d   : > { %2533 = vmatpush.msra.mxu2 %v4829_v24 }
 0xa6f   : > { %2534 = vmatpush.msra.mxu2 %v4832_v26 }
 0xa71   : > { %2535 = vmatpush.msra.mxu2 %v4835_v27 }
 0xa73   : > { %2536 = vmatpush.msra.mxu2 %v4838_v31 }
 0xa74   : > { %3444 = vmatmul.msk.f32.gmra.mxu2 %vm580_vm0, %v3768_v20 }
 0xa77   : > { %2389 = vrot.lane.b32.xlu2 %v4591_v12, %s3944_s11 }
 0xa7f   : > { %2383 = vrot.lane.b32.xlu2 %v4585_v47, %s3944_s11 }
 0xa9e   : > { %v1939_v55 = vpop.xlane.xlu1 %1938 }
 0xa9f   : > { %v1943_v28 = vsub.f32 %v4809_v22, %v1939_v55 }
 0xaa1   : > { %v1945_v39 = vmul.f32 1.442695, %v1943_v28 }
 0xaa3   : > { %3769 = vpow2.f32 %v1945_v39 }
 0xaa9   : > { %v3770_v60 = vpop.eup %3769 }
 0xaaa   : > { %3423 = vmatmul.msk.f32.vlgmr.msra.gmra.mxu0 %vm580_vm0, %v3770_v60  ;;  %v1949_v59 = vsel %vm580_vm0, %v3770_v60, 0.0 }
 0xaab   : > { %1950 = vadd.xlane.f32.xlu0 %v1949_v59 }
 0xaba   : > { %v2075_v7 = vpop.xlane.xlu0 %2074 }
 0xabb   : > { %3771 = vrcp.f32 %v2075_v7  ;;  %v2135_v49 = vand.u32 2147483648, %v2075_v7  ;;  %v2133_v11 = vand.u32 2147483647, %v2075_v7  ;;  %vm2129_vm6 = vweird.f32 %v2075_v7 }
 0xabd   : > { %v2136_v45 = vor.u32 1.1754944e-38, %v2135_v49  ;;  %vm2134_vm8 = vcmp.eq.f32.partialorder %v2133_v11, 8.507059e+37 }
 0xabf   : > { %2387 = vrot.lane.b32.xlu0 %v4589_v61, %s3944_s11 }
 0xac1   : > { %v3772_v12 = vpop.eup %3771 }
 0xac2   : > { %v2125_v13 = vmul.f32 %v3772_v12, %v2075_v7  ;;  %v2078_v37 = vpop.xlane.xlu2 %2077  ;;  %vm2130_vm5 = vweird.f32 %v3772_v12 }
 0xac3   : > { %3773 = vrcp.f32 %v2078_v37  ;;  %vm2131_vm7 = vmor %vm2129_vm6, %vm2130_vm5  ;;  %v2149_v1 = vand.u32 2147483648, %v2078_v37  ;;  %v2147_v30 = vand.u32 2147483647, %v2078_v37  ;;  %vm2143_vm10 = vweird.f32 %v2078_v37 }
 0xac4   : > { %v2126_v47 = vsub.f32 1.0, %v2125_v13 }
 0xac5   : > { %v2150_v34 = vor.u32 1.1754944e-38, %v2149_v1  ;;  %vm2148_vm12 = vcmp.eq.f32.partialorder %v2147_v30, 8.507059e+37 }
 0xac6   : > { %v2127_v22 = vmul.f32 %v3772_v12, %v2126_v47 }
 0xac7   : > { %2379 = vrot.lane.b32.xlu0 %v4392_v50, %s3944_s11 }
 0xac8   : > { %v2128_v15 = vadd.f32 %v3772_v12, %v2127_v22 }
 0xac9   : > { %v3774_v14 = vpop.eup %3773  ;;  %v2118_v42 = vpop.f32.mrf.mxu2 }
 0xaca   : > { %v2139_v35 = vmul.f32 %v3774_v14, %v2078_v37  ;;  %v2132_v61 = vsel %vm2131_vm7, %v3772_v12, %v2128_v15  ;;  %v1942_v36 = vpop.xlane.xlu2 %1941  ;;  %vm2144_vm9 = vweird.f32 %v3774_v14  ;;  %v2273_v25 = vpop.xlane.xlu0 %2272 }
 0xacb   : > { %v2137_v2 = vsel %vm2134_vm8, %v2136_v45, %v2132_v61  ;;  %v1944_v17 = vsub.f32 %v4822_v10, %v1942_v36  ;;  %vm2145_vm11 = vmor %vm2143_vm10, %vm2144_vm9  ;;  %vm2323_vm14 = vweird.f32 %v2273_v25 }
 0xacc   : > { %v2140_v63 = vsub.f32 1.0, %v2139_v35  ;;  %v2152_v20 = vmul.f32 %v2137_v2, %v2118_v42  ;;  %v2327_v42 = vand.u32 2147483647, %v2273_v25 }
 0xacd   : > { %v1947_v56 = vmul.f32 1.442695, %v1944_v17 }
 0xace   : > { %3433 = vmatmul.msk.f32.vlgmr.msrb.gmra.mxu3 %vm580_vm0, %v2152_v20  ;;  %v2141_v50 = vmul.f32 %v3774_v14, %v2140_v63  ;;  %vm2328_vm1 = vcmp.eq.f32.partialorder %v2327_v42, 8.507059e+37 }
 0xacf   : > { %3775 = vpow2.f32 %v1947_v56  ;;  %3460 = vmatpush.xpose.msk.msrb.mxu3 %vm580_vm0, %v4603_v3 }
 0xad0   : > { %v2142_v41 = vadd.f32 %v3774_v14, %v2141_v50  ;;  %3777 = vrcp.f32 %v2273_v25 }
 0xad1   : > { %v2121_v55 = vpop.f32.mrf.mxu2 }
 0xad2   : > { %v2146_v0 = vsel %vm2145_vm11, %v3774_v14, %v2142_v41  ;;  %v2276_v10 = vpop.xlane.xlu2 %2275  ;;  %v2329_v14 = vand.u32 2147483648, %v2273_v25 }
 0xad3   : > { %v2151_v28 = vsel %vm2148_vm12, %v2150_v34, %v2146_v0  ;;  %3461 = vmatpush.xpose.msk.msrb.mxu3 %vm580_vm0, %v4598_v44  ;;  %3779 = vrcp.f32 %v2276_v10  ;;  %v2343_v20 = vand.u32 2147483648, %v2276_v10  ;;  %vm2337_vm3 = vweird.f32 %v2276_v10 }
 0xad4   : > { %v2153_v39 = vmul.f32 %v2151_v28, %v2121_v55  ;;  %v2330_v61 = vor.u32 1.1754944e-38, %v2329_v14  ;;  %v2341_v56 = vand.u32 2147483647, %v2276_v10 }
 0xad5   : > { %v3776_v60 = vpop.eup %3775  ;;  %v2344_v50 = vor.u32 1.1754944e-38, %v2343_v20 }
 0xad6   : > { %3424 = vmatmul.msk.f32.gmra.mxu0 %vm580_vm0, %v3776_v60  ;;  %3434 = vmatmul.msk.f32.gmra.mxu3 %vm580_vm0, %v2153_v39  ;;  %v1952_v59 = vsel %vm580_vm0, %v3776_v60, 0.0  ;;  %v3778_v7 = vpop.eup %3777  ;;  %vm2342_vm5 = vcmp.eq.f32.partialorder %v2341_v56, 8.507059e+37 }
 0xad7   : > { %3462 = vmatpush.xpose.msk.msrb.mxu3 %vm580_vm0, %v4595_v8  ;;  %1953 = vadd.xlane.f32.xlu1 %v1952_v59  ;;  %v2319_v13 = vmul.f32 %v3778_v7, %v2273_v25  ;;  %vm2324_vm13 = vweird.f32 %v3778_v7 }
 0xad8   : > { %vm2325_vm15 = vmor %vm2323_vm14, %vm2324_vm13 }
 0xad9   : > { %v2320_v37 = vsub.f32 1.0, %v2319_v13  ;;  %v3780_v47 = vpop.eup %3779 }
 0xada   : > { %v2390_v12 = vpop.permute.xlu2 %2389  ;;  %v2333_v49 = vmul.f32 %v3780_v47, %v2276_v10  ;;  %vm2338_vm2 = vweird.f32 %v3780_v47 }
 0xadb   : > { %3463 = vmatpush.xpose.msk.msrb.mxu3 %vm580_vm0, %v4593_v5  ;;  %3447 = vmatpush.xpose.msk.msra.mxu0 %vm580_vm0, %v2390_v12  ;;  %v2321_v22 = vmul.f32 %v3778_v7, %v2320_v37  ;;  %vm2339_vm4 = vmor %vm2337_vm3, %vm2338_vm2 }
 0xadc   : > { %v2334_v11 = vsub.f32 1.0, %v2333_v49 }
 0xadd   : > { %v2322_v15 = vadd.f32 %v3778_v7, %v2321_v22 }
 0xade   : > { %v2335_v35 = vmul.f32 %v3780_v47, %v2334_v11 }
 0xadf   : > { %v2326_v45 = vsel %vm2325_vm15, %v3778_v7, %v2322_v15 }
 0xae0   : > { %v2331_v2 = vsel %vm2328_vm1, %v2330_v61, %v2326_v45  ;;  %v2336_v63 = vadd.f32 %v3780_v47, %v2335_v35 }
 0xae2   : > { %v2340_v1 = vsel %vm2339_vm4, %v3780_v47, %v2336_v63  ;;  %v2384_v45 = vpop.permute.xlu2 %2383  ;;  %v4905_v63 = vld [vmem:[%s4241_s18 + $0x3] ss:$0 sm:$0xff] }
 0xae3   : > { %v2345_v25 = vsel %vm2342_vm5, %v2344_v50, %v2340_v1 }
 0xaef   : > { %v2312_v36 = vpop.f32.mrf.mxu2 }
 0xaf0   : > { %v2346_v17 = vmul.f32 %v2331_v2, %v2312_v36  ;;  %2385 = vrot.lane.b32.xlu1 %v4587_v48, %s3944_s11 }
 0xaf2   : > { %3445 = vmatmul.msk.f32.vlgmr.msra.gmra.mxu3 %vm580_vm0, %v2346_v17 }
 0xaf3   : > { %2830 = vmatpush.msra.mxu3 %v4762_v32 }
 0xaf5   : > { %2831 = vmatpush.msra.mxu3 %v4765_v43 }
 0xaf7   : > { %v2315_v30 = vpop.f32.mrf.mxu2  ;;  %2832 = vmatpush.msra.mxu3 %v4768_v57 }
 0xaf8   : > { %v2347_v48 = vmul.f32 %v2345_v25, %v2315_v30  ;;  %2381 = vrot.lane.b32.xlu1 %v4394_v51, %s3944_s11 }
 0xaf9   : > { %2833 = vmatpush.msra.mxu3 %v4771_v54 }
 0xafa   : > { %3446 = vmatmul.msk.f32.gmra.mxu3 %vm580_vm0, %v2347_v48 }
 0xb02   : > { %3464 = vmatmul.msk.f32.vlgmr.msrb.gmra.mxu3 %vm580_vm0, %v4396_v52 }
 0xb03   : > { %3024 = vmatpush.msrb.mxu3 %v4777_v9 }
 0xb05   : > { %3025 = vmatpush.msrb.mxu3 %v4780_v38 }
 0xb07   : > { %3026 = vmatpush.msrb.mxu3 %v4783_v4 }
 0xb09   : > { %3027 = vmatpush.msrb.mxu3 %v4786_v40 }
 0xb0a   : > { %3465 = vmatmul.msk.f32.gmra.mxu3 %vm580_vm0, %v4398_v53 }
 0xb1e   : > { %v1951_v32 = vpop.xlane.xlu0 %1950 }
 0xb1f   : > { %3781 = vrcp.f32 %v1951_v32  ;;  %v1995_v54 = vand.u32 2147483648, %v1951_v32  ;;  %v1993_v34 = vand.u32 2147483647, %v1951_v32  ;;  %vm1989_vm7 = vweird.f32 %v1951_v32 }
 0xb21   : > { %v1996_v9 = vor.u32 1.1754944e-38, %v1995_v54  ;;  %vm1994_vm9 = vcmp.eq.f32.partialorder %v1993_v34, 8.507059e+37 }
 0xb25   : > { %v3782_v51 = vpop.eup %3781 }
 0xb26   : > { %v1985_v43 = vmul.f32 %v3782_v51, %v1951_v32  ;;  %vm1990_vm6 = vweird.f32 %v3782_v51 }
 0xb27   : > { %vm1991_vm8 = vmor %vm1989_vm7, %vm1990_vm6  ;;  %v1978_v4 = vpop.f32.mrf.mxu0 }
 0xb28   : > { %v1986_v57 = vsub.f32 1.0, %v1985_v43 }
 0xb2a   : > { %v1987_v41 = vmul.f32 %v3782_v51, %v1986_v57 }
 0xb2c   : > { %v1988_v0 = vadd.f32 %v3782_v51, %v1987_v41 }
 0xb2e   : > { %v1992_v38 = vsel %vm1991_vm8, %v3782_v51, %v1988_v0 }
 0xb2f   : > { %v1997_v40 = vsel %vm1994_vm9, %v1996_v9, %v1992_v38 }
 0xb30   : > { %v2012_v10 = vmul.f32 %v1997_v40, %v1978_v4 }
 0xb31   : > { %v2388_v55 = vpop.permute.xlu0 %2387 }
 0xb32   : > { %3435 = vmatmul.msk.f32.vlgmr.msrb.gmra.mxu0 %vm580_vm0, %v2012_v10 }
 0xb33   : > { %3448 = vmatpush.xpose.msk.msra.mxu0 %vm580_vm0, %v2388_v55 }
 0xb39   : > { %v2380_v35 = vpop.permute.xlu0 %2379 }
 0xb4a   : > { %v1954_v28 = vpop.xlane.xlu1 %1953 }
 0xb4b   : > { %3783 = vrcp.f32 %v1954_v28  ;;  %v2009_v7 = vand.u32 2147483648, %v1954_v28  ;;  %v2007_v13 = vand.u32 2147483647, %v1954_v28  ;;  %vm2003_vm11 = vweird.f32 %v1954_v28 }
 0xb4d   : > { %v2010_v47 = vor.u32 1.1754944e-38, %v2009_v7  ;;  %vm2008_vm13 = vcmp.eq.f32.partialorder %v2007_v13, 8.507059e+37 }
 0xb51   : > { %v3784_v39 = vpop.eup %3783  ;;  %v2177_v42 = vpop.f32.mrf.mxu3 }
 0xb52   : > { %v1999_v60 = vmul.f32 %v3784_v39, %v1954_v28  ;;  %vm2004_vm10 = vweird.f32 %v3784_v39 }
 0xb53   : > { %vm2005_vm12 = vmor %vm2003_vm11, %vm2004_vm10  ;;  %v1981_v22 = vpop.f32.mrf.mxu0 }
 0xb54   : > { %v2000_v59 = vsub.f32 1.0, %v1999_v60 }
 0xb56   : > { %v2001_v12 = vmul.f32 %v3784_v39, %v2000_v59 }
 0xb58   : > { %v2002_v37 = vadd.f32 %v3784_v39, %v2001_v12 }
 0xb59   : > { %v4893_v61 = vpop.f32.mrf.mxu3 }
 0xb5a   : > { %v2006_v49 = vsel %vm2005_vm12, %v3784_v39, %v2002_v37 }
 0xb5b   : > { %v2011_v11 = vsel %vm2008_vm13, %v2010_v47, %v2006_v49 }
 0xb5c   : > { %v2013_v15 = vmul.f32 %v2011_v11, %v1981_v22 }
 0xb5e   : > { %3436 = vmatmul.msk.f32.gmra.mxu0 %vm580_vm0, %v2013_v15 }
 0xb62   : > { %v2386_v14 = vpop.permute.xlu1 %2385 }
 0xb63   : > { %3449 = vmatpush.xpose.msk.msra.mxu0 %vm580_vm0, %v2386_v14 }
 0xb67   : > { %3450 = vmatpush.xpose.msk.msra.mxu0 %vm580_vm0, %v2384_v45 }
 0xb6a   : > { %3451 = vmatmul.msk.f32.vlgmr.msra.gmra.mxu0 %vm580_vm0, %v2380_v35  ;;  %v2382_v36 = vpop.permute.xlu1 %2381 }
 0xb6b   : > { %2631 = vmatpush.msrb.mxu0 %v4742_v62 }
 0xb6d   : > { %2632 = vmatpush.msrb.mxu0 %v4740_v23 }
 0xb6f   : > { %2633 = vmatpush.msrb.mxu0 %v4738_v58 }
 0xb71   : > { %2634 = vmatpush.msrb.mxu0 %v4728_v21 }
 0xb72   : > { %3452 = vmatmul.msk.f32.gmra.mxu0 %vm580_vm0, %v2382_v36 }
 0xb73   : > { %2859 = vmatpush.msra.mxu0 %v4676_v6 }
 0xb75   : > { %2860 = vmatpush.msra.mxu0 %v4679_v46  ;;  %v2371_v2 = vpop.f32.mrf.mxu3 }
 0xb77   : > { %2861 = vmatpush.msra.mxu0 %v4682_v16 }
 0xb79   : > { %2862 = vmatpush.msra.mxu0 %v4685_v19 }
 0xb7d   : > { %v4902_v17 = vpop.f32.mrf.mxu3 }
 0xb85   : > { %v2589_v20 = vpop.f32.mrf.mxu3 }
 0xb86   : > { %v2590_v56 = vadd.f32 %v4905_v63, %v2589_v20 }
 0xb88   : > { %v2595_v1 = vsel %vm580_vm0, %v2590_v56, -inf }
 0xb89   : > { %2596 = vmax.xlane.f32.xlu2 %v2595_v1 }
 0xb8d   : > { %v2592_v6 = vpop.f32.mrf.mxu3 }
 0xb8e   : > { %v2593_v50 = vadd.f32 %v4905_v63, %v2592_v6 }
 0xb90   : > { %v2598_v46 = vsel %vm580_vm0, %v2593_v50, -inf }
 0xb91   : > { %2599 = vmax.xlane.f32.xlu0 %v2598_v46 }
 0xba1   : > { %3654 = vrot.lane.b32.xlu2 %v4732_v18, %s3944_s11 }
 0xba9   : > { %2674 = vrot.lane.b32.xlu2 %v4398_v53, %s3942_s13 }
 0xbaf   : > { %v2206_v16 = vpop.f32.mrf.mxu0 }
 0xbb0   : > { %v2207_v19 = vadd.f32 %v2206_v16, %v2177_v42 }
 0xbb1   : > { %2870 = vrot.lane.b32.xlu2 %v4396_v52, %s3943_s10 }
 0xbb2   : > { %v4917_v30 = vadd.f32 %v2371_v2, %v2207_v19 }
 0xbdb   : > { %v4919_v25 = vpop.f32.mrf.mxu0 }
 0xbe7   : > { %v2420_v48 = vpop.f32.mrf.mxu0 }
 0xbe8   : > { %v2421_v32 = vadd.f32 %v4793_v33, %v2420_v48 }
 0xbea   : > { %v2426_v51 = vsel %vm580_vm0, %v2421_v32, -inf }
 0xbeb   : > { %2427 = vmax.xlane.f32.xlu1 %v2426_v51  ;;  %v4976_v51 = vpack.i.bf16 %v4740_v23, %v4742_v62 }
 0xbef   : > { %v2423_v43 = vpop.f32.mrf.mxu0 }
 0xbf0   : > { %v2424_v18 = vadd.f32 %v4793_v33, %v2423_v43 }
 0xbf2   : > { %v2429_v57 = vsel %vm580_vm0, %v2424_v18, -inf }
 0xbf3   : > { %2430 = vmax.xlane.f32.xlu0 %v2429_v57 }
 0xbfc   : > { %v2597_v54 = vpop.xlane.xlu2 %2596 }
 0xbfd   : > { %v2601_v41 = vsub.f32 %v2590_v56, %v2597_v54 }
 0xbff   : > { %v2603_v34 = vmul.f32 1.442695, %v2601_v41 }
 0xc01   : > { %3785 = vpow2.f32 %v2603_v34 }
 0xc04   : > { %v3655_v0 = vpop.permute.xlu2 %3654  ;;  %v2600_v9 = vpop.xlane.xlu0 %2599  ;;  %3659 = vrot.lane.b32.xlu1 %v4723_v29, %s3944_s11 }
 0xc05   : > { %v3656_v38 = vunpack.i.l.bf16 %v3655_v0  ;;  %v2602_v4 = vsub.f32 %v2593_v50, %v2600_v9  ;;  %v3657_v10 = vunpack.i.h.bf16 %v3655_v0 }
 0xc07   : > { %v3786_v40 = vpop.eup %3785  ;;  %v2605_v55 = vmul.f32 1.442695, %v2602_v4  ;;  %2474 = vmatpush.msra.mxu1 %v3656_v38  ;;  %2682 = vrot.lane.b32.xlu0 %v4603_v3, %s3942_s13 }
 0xc08   : > { %3466 = vmatmul.msk.f32.vlgmr.msrb.gmra.mxu0 %vm580_vm0, %v3786_v40  ;;  %v2607_v33 = vsel %vm580_vm0, %v3786_v40, 0.0 }
 0xc09   : > { %3787 = vpow2.f32 %v2605_v55  ;;  %2608 = vadd.xlane.f32.xlu2 %v2607_v33  ;;  %2475 = vmatpush.msra.mxu1 %v3657_v10 }
 0xc0c   : > { %2678 = vrot.lane.b32.xlu1 %v4595_v8, %s3942_s13  ;;  %v2675_v39 = vpop.permute.xlu2 %2674 }
 0xc0f   : > { %v3788_v29 = vpop.eup %3787  ;;  %2680 = vrot.lane.b32.xlu0 %v4598_v44, %s3942_s13 }
 0xc10   : > { %3467 = vmatmul.msk.f32.gmra.mxu0 %vm580_vm0, %v3788_v29  ;;  %v2610_v28 = vsel %vm580_vm0, %v3788_v29, 0.0 }
 0xc14   : > { %2676 = vrot.lane.b32.xlu1 %v4593_v5, %s3942_s13  ;;  %v2871_v13 = vpop.permute.xlu2 %2870 }
 0xc17   : > { %3047 = vrot.lane.b32.xlu0 %v4603_v3, %s3944_s11 }
 0xc1c   : > { %2672 = vrot.lane.b32.xlu1 %v4396_v52, %s3942_s13 }
 0xc21   : > { %3041 = vrot.lane.b32.xlu2 %v4593_v5, %s3944_s11 }
 0xc24   : > { %2880 = vrot.lane.b32.xlu1 %v4603_v3, %s3943_s10 }
 0xc29   : > { %3039 = vrot.lane.b32.xlu2 %v4398_v53, %s3944_s11 }
 0xc2c   : > { %2878 = vrot.lane.b32.xlu1 %v4598_v44, %s3943_s10 }
 0xc34   : > { %2876 = vrot.lane.b32.xlu1 %v4595_v8, %s3943_s10 }
 0xc3c   : > { %2874 = vrot.lane.b32.xlu1 %v4593_v5, %s3943_s10 }
 0xc41   : > { %2611 = vadd.xlane.f32.xlu0 %v2610_v28 }
 0xc44   : > { %3045 = vrot.lane.b32.xlu1 %v4598_v44, %s3944_s11 }
 0xc4c   : > { %3043 = vrot.lane.b32.xlu1 %v4595_v8, %s3944_s11 }
 0xc54   : > { %3037 = vrot.lane.b32.xlu1 %v4396_v52, %s3944_s11 }
 0xc55   : > { %2872 = vrot.lane.b32.xlu0 %v4398_v53, %s3943_s10 }
 0xc5e   : > { %v2428_v60 = vpop.xlane.xlu1 %2427 }
 0xc5f   : > { %v2432_v5 = vsub.f32 %v2421_v32, %v2428_v60 }
 0xc61   : > { %v2434_v12 = vmul.f32 1.442695, %v2432_v5 }
 0xc66   : > { %v2431_v3 = vpop.xlane.xlu0 %2430 }
 0xc67   : > { %v2433_v59 = vsub.f32 %v2424_v18, %v2431_v3 }
 0xc69   : > { %v2436_v7 = vmul.f32 1.442695, %v2433_v59 }
 0xc6b   : > { %3789 = vpow2.f32 %v2436_v7 }
 0xc6c   : > { %3791 = vpow2.f32 %v2434_v12 }
 0xc71   : > { %v3790_v49 = vpop.eup %3789 }
 0xc72   : > { %v3792_v52 = vpop.eup %3791  ;;  %v2441_v53 = vsel %vm580_vm0, %v3790_v49, 0.0 }
 0xc73   : > { %v2438_v15 = vsel %vm580_vm0, %v3792_v52, 0.0 }
 0xc76   : > { %v3660_v44 = vpop.permute.xlu1 %3659 }
 0xc77   : > { %v3661_v37 = vunpack.i.l.bf16 %v3660_v44  ;;  %v3662_v47 = vunpack.i.h.bf16 %v3660_v44 }
 0xc79   : > { %v2683_v8 = vpop.permute.xlu0 %2682  ;;  %2476 = vmatpush.msra.mxu1 %v3661_v37 }
 0xc7b   : > { %2477 = vmatpush.msra.mxu1 %v3662_v47 }
 0xc7c   : > { %v2609_v22 = vpop.xlane.xlu2 %2608  ;;  %3453 = vmatmul.msk.f32.vlgmr.msra.gmra.mxu1 %vm580_vm0, %v3792_v52 }
 0xc7d   : > { %3793 = vrcp.f32 %v2609_v22  ;;  %3468 = vmatpush.xpose.msk.msrb.mxu1 %vm580_vm0, %v2683_v8  ;;  %v2653_v2 = vand.u32 2147483648, %v2609_v22  ;;  %v2651_v56 = vand.u32 2147483647, %v2609_v22  ;;  %vm2647_vm15 = vweird.f32 %v2609_v22 }
 0xc7e   : > { %2442 = vadd.xlane.f32.xlu1 %v2441_v53  ;;  %v2679_v11 = vpop.permute.xlu1 %2678 }
 0xc7f   : > { %2439 = vadd.xlane.f32.xlu0 %v2438_v15  ;;  %v2654_v50 = vor.u32 1.1754944e-38, %v2653_v2  ;;  %vm2652_vm2 = vcmp.eq.f32.partialorder %v2651_v56, 8.507059e+37 }
 0xc81   : > { %v2681_v14 = vpop.permute.xlu0 %2680 }
 0xc82   : > { %3469 = vmatpush.xpose.msk.msrb.mxu1 %vm580_vm0, %v2681_v14 }
 0xc83   : > { %v3794_v42 = vpop.eup %3793 }
 0xc84   : > { %v2643_v45 = vmul.f32 %v3794_v42, %v2609_v22  ;;  %3454 = vmatmul.msk.f32.gmra.mxu1 %vm580_vm0, %v3790_v49  ;;  %vm2648_vm14 = vweird.f32 %v3794_v42  ;;  %v3042_v10 = vpop.permute.xlu2 %3041 }
 0xc85   : > { %vm2649_vm1 = vmor %vm2647_vm15, %vm2648_vm14  ;;  %v2636_v16 = vpop.f32.mrf.mxu0 }
 0xc86   : > { %v2644_v35 = vsub.f32 1.0, %v2643_v45  ;;  %v2677_v36 = vpop.permute.xlu1 %2676  ;;  %3470 = vmatpush.xpose.msk.msrb.mxu1 %vm580_vm0, %v2679_v11 }
 0xc88   : > { %v2645_v20 = vmul.f32 %v3794_v42, %v2644_v35 }
 0xc89   : > { %v3048_v1 = vpop.permute.xlu0 %3047 }
 0xc8a   : > { %v2646_v6 = vadd.f32 %v3794_v42, %v2645_v20  ;;  %3471 = vmatpush.xpose.msk.msrb.mxu1 %vm580_vm0, %v2677_v36  ;;  %3490 = vmatpush.xpose.msk.msrb.mxu0 %vm580_vm0, %v3048_v1 }
 0xc8c   : > { %v2650_v46 = vsel %vm2649_vm1, %v3794_v42, %v2646_v6  ;;  %v3040_v5 = vpop.permute.xlu2 %3039 }
 0xc8d   : > { %v2655_v19 = vsel %vm2652_vm2, %v2654_v50, %v2650_v46  ;;  %v2639_v28 = vpop.f32.mrf.mxu0 }
 0xc8e   : > { %v2670_v48 = vmul.f32 %v2655_v19, %v2636_v16  ;;  %v2673_v32 = vpop.permute.xlu1 %2672 }
 0xc8f   : > { %3472 = vmatmul.msk.f32.vlgmr.msrb.gmra.mxu1 %vm580_vm0, %v2673_v32 }
 0xc90   : > { %3478 = vmatmul.msk.f32.vlgmr.msra.gmra.mxu0 %vm580_vm0, %v2670_v48 }
 0xc93   : > { %3664 = vrot.lane.b32.xlu0 %v4976_v51, %s3942_s13 }
 0xc96   : > { %v2881_v43 = vpop.permute.xlu1 %2880 }
 0xc97   : > { %3473 = vmatmul.msk.f32.gmra.mxu1 %vm580_vm0, %v2675_v39 }
 0xc98   : > { %3480 = vmatpush.xpose.msk.msra.mxu1 %vm580_vm0, %v2881_v43 }
 0xc9b   : > { %3674 = vrot.lane.b32.xlu0 %v4976_v51, %s3943_s10 }
 0xc9e   : > { %v2879_v18 = vpop.permute.xlu1 %2878 }
 0xc9f   : > { %3481 = vmatpush.xpose.msk.msra.mxu1 %vm580_vm0, %v2879_v18 }
 0xca6   : > { %v2877_v57 = vpop.permute.xlu1 %2876 }
 0xca7   : > { %3482 = vmatpush.xpose.msk.msra.mxu1 %vm580_vm0, %v2877_v57 }
 0xcae   : > { %v2875_v54 = vpop.permute.xlu1 %2874 }
 0xcaf   : > { %3483 = vmatpush.xpose.msk.msra.mxu1 %vm580_vm0, %v2875_v54 }
 0xcb2   : > { %3484 = vmatmul.msk.f32.vlgmr.msra.gmra.mxu1 %vm580_vm0, %v2871_v13 }
 0xcb4   : > { %v2612_v23 = vpop.xlane.xlu0 %2611 }
 0xcb5   : > { %3795 = vrcp.f32 %v2612_v23  ;;  %v2667_v38 = vand.u32 2147483648, %v2612_v23  ;;  %v2665_v40 = vand.u32 2147483647, %v2612_v23  ;;  %vm2661_vm4 = vweird.f32 %v2612_v23 }
 0xcb6   : > { %v3046_v62 = vpop.permute.xlu1 %3045 }
 0xcb7   : > { %3491 = vmatpush.xpose.msk.msrb.mxu0 %vm580_vm0, %v3046_v62  ;;  %v2668_v33 = vor.u32 1.1754944e-38, %v2667_v38  ;;  %vm2666_vm6 = vcmp.eq.f32.partialorder %v2665_v40, 8.507059e+37 }
 0xcbb   : > { %v3796_v41 = vpop.eup %3795 }
 0xcbc   : > { %v2657_v34 = vmul.f32 %v3796_v41, %v2612_v23  ;;  %vm2662_vm3 = vweird.f32 %v3796_v41 }
 0xcbd   : > { %vm2663_vm5 = vmor %vm2661_vm4, %vm2662_vm3 }
 0xcbe   : > { %v2658_v0 = vsub.f32 1.0, %v2657_v34  ;;  %v3044_v9 = vpop.permute.xlu1 %3043 }
 0xcbf   : > { %3492 = vmatpush.xpose.msk.msrb.mxu0 %vm580_vm0, %v3044_v9 }
 0xcc0   : > { %v2659_v4 = vmul.f32 %v3796_v41, %v2658_v0 }
 0xcc2   : > { %v2660_v55 = vadd.f32 %v3796_v41, %v2659_v4 }
 0xcc3   : > { %3493 = vmatpush.xpose.msk.msrb.mxu0 %vm580_vm0, %v3042_v10 }
 0xcc4   : > { %v2664_v29 = vsel %vm2663_vm5, %v3796_v41, %v2660_v55  ;;  %v3668_v41 = vpack.i.bf16 %v4728_v21, %v4738_v58 }
 0xcc5   : > { %v2669_v3 = vsel %vm2666_vm6, %v2668_v33, %v2664_v29 }
 0xcc6   : > { %v2671_v39 = vmul.f32 %v2669_v3, %v2639_v28  ;;  %v3038_v59 = vpop.permute.xlu1 %3037 }
 0xcc7   : > { %v2873_v60 = vpop.permute.xlu0 %2872 }
 0xcc8   : > { %3479 = vmatmul.msk.f32.gmra.mxu0 %vm580_vm0, %v2671_v39  ;;  %3485 = vmatmul.msk.f32.gmra.mxu1 %vm580_vm0, %v2873_v60 }
 0xcd0   : > { %3494 = vmatmul.msk.f32.vlgmr.msrb.gmra.mxu0 %vm580_vm0, %v3038_v59 }
 0xcd8   : > { %3495 = vmatmul.msk.f32.gmra.mxu0 %vm580_vm0, %v3040_v5 }
 0xcf1   : > { %v2443_v7 = vpop.xlane.xlu1 %2442 }
 0xcf2   : > { %3797 = vrcp.f32 %v2443_v7  ;;  %v2440_v12 = vpop.xlane.xlu0 %2439  ;;  %v2510_v2 = vand.u32 2147483648, %v2443_v7  ;;  %vm2504_vm12 = vweird.f32 %v2443_v7  ;;  %v2508_v1 = vand.u32 2147483647, %v2443_v7 }
 0xcf3   : > { %3799 = vrcp.f32 %v2440_v12  ;;  %v2496_v22 = vand.u32 2147483648, %v2440_v12  ;;  %v2494_v11 = vand.u32 2147483647, %v2440_v12  ;;  %vm2490_vm8 = vweird.f32 %v2440_v12 }
 0xcf4   : > { %v2511_v16 = vor.u32 1.1754944e-38, %v2510_v2  ;;  %vm2509_vm14 = vcmp.eq.f32.partialorder %v2508_v1, 8.507059e+37 }
 0xcf5   : > { %v2497_v42 = vor.u32 1.1754944e-38, %v2496_v22  ;;  %vm2495_vm10 = vcmp.eq.f32.partialorder %v2494_v11, 8.507059e+37 }
 0xcf8   : > { %v3798_v13 = vpop.eup %3797 }
 0xcf9   : > { %v3800_v44 = vpop.eup %3799  ;;  %v2500_v37 = vmul.f32 %v3798_v13, %v2443_v7  ;;  %v2479_v8 = vpop.f32.mrf.mxu1  ;;  %vm2505_vm11 = vweird.f32 %v3798_v13 }
 0xcfa   : > { %v2486_v47 = vmul.f32 %v3800_v44, %v2440_v12  ;;  %vm2491_vm7 = vweird.f32 %v3800_v44  ;;  %vm2506_vm13 = vmor %vm2504_vm12, %vm2505_vm11 }
 0xcfb   : > { %v2501_v49 = vsub.f32 1.0, %v2500_v37  ;;  %vm2492_vm9 = vmor %vm2490_vm8, %vm2491_vm7 }
 0xcfc   : > { %v2487_v52 = vsub.f32 1.0, %v2486_v47 }
 0xcfd   : > { %v2502_v15 = vmul.f32 %v3798_v13, %v2501_v49 }
 0xcfe   : > { %v2488_v53 = vmul.f32 %v3800_v44, %v2487_v52 }
 0xcff   : > { %v2503_v35 = vadd.f32 %v3798_v13, %v2502_v15 }
 0xd00   : > { %v2489_v14 = vadd.f32 %v3800_v44, %v2488_v53 }
 0xd01   : > { %v2482_v56 = vpop.f32.mrf.mxu1  ;;  %v2507_v50 = vsel %vm2506_vm13, %v3798_v13, %v2503_v35 }
 0xd02   : > { %v2493_v45 = vsel %vm2492_vm9, %v3800_v44, %v2489_v14  ;;  %v2512_v48 = vsel %vm2509_vm14, %v2511_v16, %v2507_v50 }
 0xd03   : > { %v2498_v36 = vsel %vm2495_vm10, %v2497_v42, %v2493_v45  ;;  %v2514_v32 = vmul.f32 %v2512_v48, %v2482_v56 }
 0xd04   : > { %v2513_v20 = vmul.f32 %v2498_v36, %v2479_v8 }
 0xd05   : > { %v3665_v6 = vpop.permute.xlu0 %3664 }
 0xd06   : > { %v3666_v46 = vunpack.i.l.bf16 %v3665_v6  ;;  %3455 = vmatmul.msk.f32.vlgmr.msra.gmra.mxu2 %vm580_vm0, %v2513_v20  ;;  %v3667_v19 = vunpack.i.h.bf16 %v3665_v6 }
 0xd08   : > { %2771 = vmatpush.msrb.mxu2 %v3666_v46 }
 0xd0a   : > { %2772 = vmatpush.msrb.mxu2 %v3667_v19 }
 0xd0c   : > { %v2713_v43 = vpop.f32.mrf.mxu1 }
 0xd0d   : > { %v2714_v18 = vadd.f32 %v4905_v63, %v2713_v43  ;;  %v5008_v38 = vpop.f32.mrf.mxu0  ;;  %v3675_v37 = vpop.permute.xlu0 %3674 }
 0xd0e   : > { %3456 = vmatmul.msk.f32.gmra.mxu2 %vm580_vm0, %v2514_v32  ;;  %v3676_v52 = vunpack.i.l.bf16 %v3675_v37  ;;  %v3677_v53 = vunpack.i.h.bf16 %v3675_v37 }
 0xd0f   : > { %v2719_v57 = vsel %vm580_vm0, %v2714_v18, -inf }
 0xd10   : > { %2720 = vmax.xlane.f32.xlu2 %v2719_v57 }
 0xd14   : > { %v2716_v54 = vpop.f32.mrf.mxu1 }
 0xd15   : > { %v2717_v23 = vadd.f32 %v4905_v63, %v2716_v54 }
 0xd17   : > { %v2722_v62 = vsel %vm580_vm0, %v2717_v23, -inf }
 0xd18   : > { %2723 = vmax.xlane.f32.xlu1 %v2722_v62 }
 0xd28   : > { %3669 = vrot.lane.b32.xlu2 %v3668_v41, %s3942_s13  ;;  %s3885_s13 = sshra.s32 %s3224_s12, 4  ;;  %s3886_s13 = int_to_ptr.hbm [resolvable:$true] %s3885_s13 }
 0xd29   : > { %s3887_s15 = scalar_lea.hbm %s3886_s13, 64  ;;  %p3892_p3 = scmp.lt.s32.totalorder %s3886_s13, %s5096_s6 }
 0xd2a   : > { %p3888_p0 = scmp.ne.s32.totalorder %s3886_s13, %s3887_s15 }
 0xd2c   : > { %p3889_p1 = pnand %p3888_p0, %p4020_p5 }
 0xd2e   : > { %p3890_p2 = pneg %p3889_p1 }
 0xd2f   : > { %v2911_v34 = vpop.f32.mrf.mxu1 }
 0xd30   : > { %v2912_v0 = vadd.f32 %v4905_v63, %v2911_v34  ;;  %3684 = vrot.lane.b32.xlu2 %v4976_v51, %s3944_s11 }
 0xd32   : > { %v2917_v9 = vsel %vm580_vm0, %v2912_v0, -inf }
 0xd33   : > { %2918 = vmax.xlane.f32.xlu1 %v2917_v9 }
 0xd45   : > { %v5010_v4 = vpop.f32.mrf.mxu0  ;;  %v2914_v40 = vpop.f32.mrf.mxu1 }
 0xd46   : > { %v2915_v10 = vadd.f32 %v4905_v63, %v2914_v40 }
 0xd48   : > { %v2920_v21 = vsel %vm580_vm0, %v2915_v10, -inf }
 0xd49   : > { %2921 = vmax.xlane.f32.xlu1 %v2920_v21 }
 0xd4d   : > { %v3078_v58 = vpop.f32.mrf.mxu0 }
 0xd4e   : > { %v3079_v55 = vadd.f32 %v4905_v63, %v3078_v58 }
 0xd50   : > { %v3084_v33 = vsel %vm580_vm0, %v3079_v55, -inf }
 0xd51   : > { %3085 = vmax.xlane.f32.xlu0 %v3084_v33 }
 0xd55   : > { %v3081_v51 = vpop.f32.mrf.mxu0 }
 0xd56   : > { %v5017_v29 = vadd.f32 %v4905_v63, %v3081_v51  ;;  %v2210_v63 = vadd.f32 %v4919_v25, %v4893_v61 }
 0xd58   : > { %v3087_v28 = vsel %vm580_vm0, %v5017_v29, -inf  ;;  %v2378_v22 = vadd.f32 %v4902_v17, %v2210_v63 }
 0xd59   : > { %3088 = vmax.xlane.f32.xlu2 %v3087_v28 }
 0xd62   : > { %3679 = vrot.lane.b32.xlu1 %v3668_v41, %s3943_s10  ;;  %s3891_s10 = scalar_lea.hbm %s5096_s6, 128 }
 0xd63   : > { %p3893_p4 = scmp.lt.s32.totalorder %s3891_s10, %s3887_s15 }
 0xd65   : > { %p3894_p7 = por %p3893_p4, %p3892_p3 }
 0xd67   : > { %p3895_p8 = pnand %p3894_p7, %p3890_p2 }
 0xd6a   : > { %3689 = vrot.lane.b32.xlu1 %v3668_v41, %s3944_s11 }
 0xd83   : > { %v2721_v3 = vpop.xlane.xlu2 %2720 }
 0xd84   : > { %v2725_v39 = vsub.f32 %v2714_v18, %v2721_v3 }
 0xd86   : > { %v2727_v60 = vmul.f32 1.442695, %v2725_v39 }
 0xd88   : > { %3801 = vpow2.f32 %v2727_v60 }
 0xd89   : > { %v2538_v59 = vpop.f32.mrf.mxu2 }
 0xd8a   : > { %v2544_v5 = vadd.f32 %v2538_v59, %v4917_v30 }
 0xd8b   : > { %v2724_v7 = vpop.xlane.xlu1 %2723  ;;  %v3670_v12 = vpop.permute.xlu2 %3669 }
 0xd8c   : > { %3457 = vst [vmem:[%s4541_s20 + $0x20] sm:$0xff] %v2544_v5  ;;  %v2726_v13 = vsub.f32 %v2717_v23, %v2724_v7  ;;  %v3671_v44 = vunpack.i.l.bf16 %v3670_v12  ;;  %v3672_v8 = vunpack.i.h.bf16 %v3670_v12 }
 0xd8e   : > { %v2729_v47 = vmul.f32 1.442695, %v2726_v13  ;;  %2773 = vmatpush.msrb.mxu2 %v3671_v44  ;;  %v3802_v49 = vpop.eup %3801 }
 0xd8f   : > { %v2731_v25 = vsel %vm580_vm0, %v3802_v49, 0.0 }
 0xd90   : > { %3803 = vpow2.f32 %v2729_v47  ;;  %2774 = vmatpush.msrb.mxu2 %v3672_v8 }
 0xd91   : > { %v2541_v30 = vpop.f32.mrf.mxu2  ;;  %3474 = vmatmul.msk.f32.vlgmr.msrb.gmra.mxu2 %vm580_vm0, %v3802_v49 }
 0xd92   : > { %v2545_v11 = vadd.f32 %v2541_v30, %v2378_v22  ;;  %2965 = vmatpush.msra.mxu2 %v3676_v52 }
 0xd93   : > { %v3685_v61 = vpop.permute.xlu2 %3684 }
 0xd94   : > { %3458 = vst [vmem:[%s4541_s20 + $0x28] sm:$0xff] %v2545_v11  ;;  %v3686_v15 = vunpack.i.l.bf16 %v3685_v61  ;;  %2966 = vmatpush.msra.mxu2 %v3677_v53  ;;  %2732 = vadd.xlane.f32.xlu1 %v2731_v25  ;;  %v3687_v42 = vunpack.i.h.bf16 %v3685_v61 }
 0xd96   : > { %v3804_v14 = vpop.eup %3803  ;;  %3132 = vmatpush.msrb.mxu1 %v3686_v15 }
 0xd97   : > { %v2734_v45 = vsel %vm580_vm0, %v3804_v14, 0.0 }
 0xd98   : > { %2735 = vadd.xlane.f32.xlu0 %v2734_v45  ;;  %3133 = vmatpush.msrb.mxu1 %v3687_v42 }
 0xd99   : > { %3475 = vmatmul.msk.f32.gmra.mxu2 %vm580_vm0, %v3804_v14 }
 0xda6   : > { %v2919_v17 = vpop.xlane.xlu1 %2918 }
 0xda7   : > { %v2923_v35 = vsub.f32 %v2912_v0, %v2919_v17 }
 0xda9   : > { %v2925_v36 = vmul.f32 1.442695, %v2923_v35 }
 0xdab   : > { %3805 = vpow2.f32 %v2925_v36 }
 0xdb1   : > { %v3806_v2 = vpop.eup %3805 }
 0xdb2   : > { %v2929_v20 = vsel %vm580_vm0, %v3806_v2, 0.0 }
 0xdb3   : > { %2930 = vadd.xlane.f32.xlu2 %v2929_v20 }
 0xdbc   : > { %v2922_v56 = vpop.xlane.xlu1 %2921 }
 0xdbd   : > { %v2924_v1 = vsub.f32 %v2915_v10, %v2922_v56 }
 0xdbf   : > { %v2927_v6 = vmul.f32 1.442695, %v2924_v1 }
 0xdc1   : > { %3807 = vpow2.f32 %v2927_v6 }
 0xdc4   : > { %v3086_v50 = vpop.xlane.xlu0 %3085 }
 0xdc5   : > { %v3090_v46 = vsub.f32 %v3079_v55, %v3086_v50 }
 0xdc7   : > { %v3808_v16 = vpop.eup %3807  ;;  %v3092_v19 = vmul.f32 1.442695, %v3090_v46 }
 0xdc8   : > { %v2932_v48 = vsel %vm580_vm0, %v3808_v16, 0.0 }
 0xdc9   : > { %3809 = vpow2.f32 %v3092_v19  ;;  %2933 = vadd.xlane.f32.xlu2 %v2932_v48 }
 0xdcc   : > { %v3089_v32 = vpop.xlane.xlu2 %3088 }
 0xdcd   : > { %v3091_v43 = vsub.f32 %v5017_v29, %v3089_v32 }
 0xdcf   : > { %v3810_v18 = vpop.eup %3809  ;;  %v3094_v57 = vmul.f32 1.442695, %v3091_v43 }
 0xdd0   : > { %v3096_v54 = vsel %vm580_vm0, %v3810_v18, 0.0 }
 0xdd1   : > { %3811 = vpow2.f32 %v3094_v57  ;;  %3097 = vadd.xlane.f32.xlu0 %v3096_v54 }
 0xdd4   : > { %v3680_v23 = vpop.permute.xlu1 %3679 }
 0xdd5   : > { %v3681_v62 = vunpack.i.l.bf16 %v3680_v23  ;;  %v3682_v34 = vunpack.i.h.bf16 %v3680_v23 }
 0xdd7   : > { %v3812_v41 = vpop.eup %3811  ;;  %2967 = vmatpush.msra.mxu2 %v3681_v62 }
 0xdd8   : > { %v3099_v0 = vsel %vm580_vm0, %v3812_v41, 0.0 }
 0xdd9   : > { %3100 = vadd.xlane.f32.xlu0 %v3099_v0  ;;  %2968 = vmatpush.msra.mxu2 %v3682_v34 }
 0xdda   : > { %3486 = vmatmul.msk.f32.vlgmr.msra.gmra.mxu2 %vm580_vm0, %v3806_v2 }
 0xddb   : > { %3191 = vmatpush.msrb.mxu2 %v4829_v24 }
 0xddc   : > { %v3690_v9 = vpop.permute.xlu1 %3689 }
 0xddd   : > { %v3691_v40 = vunpack.i.l.bf16 %v3690_v9  ;;  %3192 = vmatpush.msrb.mxu2 %v4832_v26  ;;  %v3692_v10 = vunpack.i.h.bf16 %v3690_v9 }
 0xddf   : > { %3134 = vmatpush.msrb.mxu1 %v3691_v40  ;;  %3193 = vmatpush.msrb.mxu2 %v4835_v27 }
 0xde1   : > { %3135 = vmatpush.msrb.mxu1 %v3692_v10  ;;  %3194 = vmatpush.msrb.mxu2 %v4838_v31 }
 0xde2   : > { %3487 = vmatmul.msk.f32.gmra.mxu2 %vm580_vm0, %v3808_v16  ;;  %3496 = vmatmul.msk.f32.vlgmr.msrb.gmra.mxu1 %vm580_vm0, %v3810_v18 }
 0xdea   : > { %3497 = vmatmul.msk.f32.gmra.mxu1 %vm580_vm0, %v3812_v41 }
 0xe07   : > { %v2733_v21 = vpop.xlane.xlu1 %2732 }
 0xe08   : > { %3813 = vrcp.f32 %v2733_v21  ;;  %v2793_v51 = vand.u32 2147483648, %v2733_v21  ;;  %v2791_v28 = vand.u32 2147483647, %v2733_v21  ;;  %vm2787_vm1 = vweird.f32 %v2733_v21 }
 0xe0a   : > { %v2794_v60 = vor.u32 1.1754944e-38, %v2793_v51  ;;  %vm2792_vm3 = vcmp.eq.f32.partialorder %v2791_v28, 8.507059e+37 }
 0xe0b   : > { %v2736_v24 = vpop.xlane.xlu0 %2735 }
 0xe0c   : > { %3815 = vrcp.f32 %v2736_v24  ;;  %v2807_v12 = vand.u32 2147483648, %v2736_v24  ;;  %vm2801_vm5 = vweird.f32 %v2736_v24  ;;  %v2805_v44 = vand.u32 2147483647, %v2736_v24 }
 0xe0e   : > { %v3814_v58 = vpop.eup %3813  ;;  %v2808_v47 = vor.u32 1.1754944e-38, %v2807_v12  ;;  %vm2806_vm7 = vcmp.eq.f32.partialorder %v2805_v44, 8.507059e+37 }
 0xe0f   : > { %v2783_v55 = vmul.f32 %v3814_v58, %v2733_v21  ;;  %vm2788_vm15 = vweird.f32 %v3814_v58 }
 0xe10   : > { %vm2789_vm2 = vmor %vm2787_vm1, %vm2788_vm15 }
 0xe11   : > { %v2784_v26 = vsub.f32 1.0, %v2783_v55 }
 0xe12   : > { %v3816_v33 = vpop.eup %3815 }
 0xe13   : > { %v2785_v29 = vmul.f32 %v3814_v58, %v2784_v26  ;;  %v2797_v27 = vmul.f32 %v3816_v33, %v2736_v24  ;;  %vm2802_vm4 = vweird.f32 %v3816_v33 }
 0xe14   : > { %v2776_v31 = vpop.f32.mrf.mxu2  ;;  %vm2803_vm6 = vmor %vm2801_vm5, %vm2802_vm4 }
 0xe15   : > { %v2798_v3 = vsub.f32 1.0, %v2797_v27  ;;  %v2786_v39 = vadd.f32 %v3814_v58, %v2785_v29 }
 0xe17   : > { %v2790_v59 = vsel %vm2789_vm2, %v3814_v58, %v2786_v39  ;;  %v2799_v5 = vmul.f32 %v3816_v33, %v2798_v3 }
 0xe18   : > { %v2795_v7 = vsel %vm2792_vm3, %v2794_v60, %v2790_v59 }
 0xe19   : > { %v2810_v63 = vmul.f32 %v2795_v7, %v2776_v31  ;;  %v2800_v13 = vadd.f32 %v3816_v33, %v2799_v5 }
 0xe1b   : > { %3476 = vmatmul.msk.f32.vlgmr.msra.gmra.mxu3 %vm580_vm0, %v2810_v63  ;;  %v2804_v37 = vsel %vm2803_vm6, %v3816_v33, %v2800_v13 }
 0xe1c   : > { %v2779_v8 = vpop.f32.mrf.mxu2  ;;  %v2809_v49 = vsel %vm2806_vm7, %v2808_v47, %v2804_v37 }
 0xe1d   : > { %v2811_v52 = vmul.f32 %v2809_v49, %v2779_v8 }
 0xe23   : > { %3477 = vmatmul.msk.f32.gmra.mxu3 %vm580_vm0, %v2811_v52 }
 0xe26   : > { %v2931_v22 = vpop.xlane.xlu2 %2930 }
 0xe27   : > { %3817 = vrcp.f32 %v2931_v22  ;;  %vm2981_vm9 = vweird.f32 %v2931_v22  ;;  %v2987_v50 = vand.u32 2147483648, %v2931_v22  ;;  %v2985_v16 = vand.u32 2147483647, %v2931_v22 }
 0xe29   : > { %v2988_v57 = vor.u32 1.1754944e-38, %v2987_v50  ;;  %vm2986_vm14 = vcmp.eq.f32.partialorder %v2985_v16, 8.507059e+37 }
 0xe2d   : > { %v3818_v11 = vpop.eup %3817 }
 0xe2e   : > { %v2977_v61 = vmul.f32 %v3818_v11, %v2931_v22  ;;  %vm2982_vm8 = vweird.f32 %v3818_v11 }
 0xe2f   : > { %vm2983_vm11 = vmor %vm2981_vm9, %vm2982_vm8 }
 0xe30   : > { %v2978_v42 = vsub.f32 1.0, %v2977_v61 }
 0xe32   : > { %v2979_v36 = vmul.f32 %v3818_v11, %v2978_v42 }
 0xe34   : > { %v2980_v6 = vadd.f32 %v3818_v11, %v2979_v36 }
 0xe36   : > { %v2984_v43 = vsel %vm2983_vm11, %v3818_v11, %v2980_v6 }
 0xe37   : > { %v2989_v41 = vsel %vm2986_vm14, %v2988_v57, %v2984_v43 }
 0xe3c   : > { %v2934_v53 = vpop.xlane.xlu2 %2933 }
 0xe3d   : > { %vm2995_vm2 = vweird.f32 %v2934_v53  ;;  %v3001_v40 = vand.u32 2147483648, %v2934_v53  ;;  %v2999_v58 = vand.u32 2147483647, %v2934_v53 }
 0xe3f   : > { %v3002_v29 = vor.u32 1.1754944e-38, %v3001_v40  ;;  %vm3000_vm7 = vcmp.eq.f32.partialorder %v2999_v58, 8.507059e+37 }
 0xe44   : > { %v3098_v30 = vpop.xlane.xlu0 %3097 }
 0xe45   : > { %3819 = vrcp.f32 %v3098_v30  ;;  %v3154_v48 = vand.u32 2147483648, %v3098_v30  ;;  %vm3148_vm12 = vweird.f32 %v3098_v30  ;;  %v3152_v18 = vand.u32 2147483647, %v3098_v30 }
 0xe46   : > { %3821 = vrcp.f32 %v2934_v53 }
 0xe47   : > { %v3155_v34 = vor.u32 1.1754944e-38, %v3154_v48  ;;  %vm3153_vm15 = vcmp.eq.f32.partialorder %v3152_v18, 8.507059e+37 }
 0xe4b   : > { %v3820_v25 = vpop.eup %3819 }
 0xe4c   : > { %v3144_v15 = vmul.f32 %v3820_v25, %v3098_v30  ;;  %v3101_v14 = vpop.xlane.xlu0 %3100  ;;  %v3822_v45 = vpop.eup %3821  ;;  %vm3149_vm10 = vweird.f32 %v3820_v25 }
 0xe4d   : > { %3823 = vrcp.f32 %v3101_v14  ;;  %v2991_v35 = vmul.f32 %v3822_v45, %v2934_v53  ;;  %vm3150_vm13 = vmor %vm3148_vm12, %vm3149_vm10  ;;  %vm2996_vm1 = vweird.f32 %v3822_v45  ;;  %v3168_v26 = vand.u32 2147483648, %v3101_v14 }
 0xe4e   : > { %v3145_v17 = vsub.f32 1.0, %v3144_v15  ;;  %vm2997_vm4 = vmor %vm2995_vm2, %vm2996_vm1  ;;  %vm3162_vm5 = vweird.f32 %v3101_v14  ;;  %v3166_v51 = vand.u32 2147483647, %v3101_v14 }
 0xe4f   : > { %v2992_v1 = vsub.f32 1.0, %v2991_v35  ;;  %v3169_v3 = vor.u32 1.1754944e-38, %v3168_v26 }
 0xe50   : > { %v3146_v56 = vmul.f32 %v3820_v25, %v3145_v17  ;;  %vm3167_vm8 = vcmp.eq.f32.partialorder %v3166_v51, 8.507059e+37 }
 0xe51   : > { %v2993_v32 = vmul.f32 %v3822_v45, %v2992_v1 }
 0xe52   : > { %v3147_v19 = vadd.f32 %v3820_v25, %v3146_v56 }
 0xe53   : > { %v3824_v2 = vpop.eup %3823  ;;  %v2994_v9 = vadd.f32 %v3822_v45, %v2993_v32 }
 0xe54   : > { %v3158_v20 = vmul.f32 %v3824_v2, %v3101_v14  ;;  %v3151_v23 = vsel %vm3150_vm13, %v3820_v25, %v3147_v19  ;;  %vm3163_vm3 = vweird.f32 %v3824_v2 }
 0xe55   : > { %v3156_v21 = vsel %vm3153_vm15, %v3155_v34, %v3151_v23  ;;  %v2998_v33 = vsel %vm2997_vm4, %v3822_v45, %v2994_v9  ;;  %vm3164_vm6 = vmor %vm3162_vm5, %vm3163_vm3 }
 0xe56   : > { %v3159_v46 = vsub.f32 1.0, %v3158_v20  ;;  %v3003_v31 = vsel %vm3000_vm7, %v3002_v29, %v2998_v33 }
 0xe58   : > { %v3160_v54 = vmul.f32 %v3824_v2, %v3159_v46 }
 0xe5a   : > { %v3161_v55 = vadd.f32 %v3824_v2, %v3160_v54 }
 0xe5c   : > { %v3165_v27 = vsel %vm3164_vm6, %v3824_v2, %v3161_v55 }
 0xe5d   : > { %v2970_v62 = vpop.f32.mrf.mxu2  ;;  %v3170_v59 = vsel %vm3167_vm8, %v3169_v3, %v3165_v27 }
 0xe5e   : > { %v3004_v0 = vmul.f32 %v2989_v41, %v2970_v62 }
 0xe5f   : > { %v3137_v10 = vpop.f32.mrf.mxu1 }
 0xe60   : > { %v3171_v24 = vmul.f32 %v3156_v21, %v3137_v10  ;;  %3488 = vmatmul.msk.f32.vlgmr.msrb.gmra.mxu3 %vm580_vm0, %v3004_v0 }
 0xe62   : > { %3498 = vmatmul.msk.f32.vlgmr.msrb.gmra.mxu2 %vm580_vm0, %v3171_v24 }
 0xe65   : > { %v2973_v28 = vpop.f32.mrf.mxu2 }
 0xe66   : > { %v3005_v39 = vmul.f32 %v3003_v31, %v2973_v28 }
 0xe67   : > { %v3140_v60 = vpop.f32.mrf.mxu1 }
 0xe68   : > { %v3172_v5 = vmul.f32 %v3170_v59, %v3140_v60  ;;  %3489 = vmatmul.msk.f32.gmra.mxu3 %vm580_vm0, %v3005_v39 }
 0xe6a   : > { %3499 = vmatmul.msk.f32.gmra.mxu2 %vm580_vm0, %v3172_v5 }
 0xe9e   : > { %v2835_v7 = vpop.f32.mrf.mxu3 }
 0xe9f   : > { %v2865_v63 = vadd.f32 %v5008_v38, %v2835_v7 }
 0xea6   : > { %v2838_v12 = vpop.f32.mrf.mxu3 }
 0xea7   : > { %v2868_v8 = vadd.f32 %v5010_v4, %v2838_v12 }
 0xee3   : > { %v3029_v13 = vpop.f32.mrf.mxu3 }
 0xee4   : > { %v3035_v44 = vadd.f32 %v3029_v13, %v2865_v63 }
 0xee5   : > { %v3196_v37 = vpop.f32.mrf.mxu2 }
 0xee6   : > { %v3202_v47 = vadd.f32 %v3196_v37, %v3035_v44 }
 0xee8   : > { %3500 = vst [vmem:[%s4541_s20 + $0x30] sm:$0xff] %v3202_v47 }
 0xeeb   : > { %v3032_v49 = vpop.f32.mrf.mxu3 }
 0xeec   : > { %v3036_v52 = vadd.f32 %v3032_v49, %v2868_v8 }
 0xeed   : > { %v3199_v38 = vpop.f32.mrf.mxu2 }
 0xeee   : > { %v3203_v22 = vadd.f32 %v3199_v38, %v3036_v52 }
 0xef0   : > { %3501 = vst [vmem:[%s4541_s20 + $0x38] sm:$0xff] %v3203_v22 }
 0xef1   : > { %3898 = shalt.err (!%p3895_p8)
}
 0xef2   : > { %s3945_s17 = smov 128   ;;  %s3946_s20 = smov 8  }
 0xef3   : > { %3520 = dma.vmem_to_hbm [thread:$0]  (%p4020_p5), %s3222_s9, 1024, %s3224_s12, %s3208_s25, %s3945_s17, %s3945_s17, %s3946_s20  }
 0xef4 PF: > { %p3532_p9 = scmp.ge.s32.totalorder %s3937_s24, 2  ;;  %s3238_s14 = sand.u32 1, %s3925_s21  }
 0xef5   : > { %s3239_s26 = scalar_lea.sflag [#allocation4], %s3238_s14 }
 0xef6   : > { %p3527_p10 = pnand %p3532_p9, %p4024_p6 }
 0xef8   : > { %p3528_p11 = pneg %p3527_p10 }
 0xefa   : > { %3920 = dma.done.wait (%p3528_p11), %s3239_s26, 1024  }
 0xefb   : > { %3922 = vsyncadd (%p3528_p11), %s3239_s26, 4294966272  ;;  %p17_p12 = scmp.ge.s32.totalorder %s4007_s27, 4   ;;  %s5099_s21 = smov %s3929_s22 }
 0xefc   : > { %s5100_s22 = smov %s3933_s23  ;;  %s5101_s23 = smov %s4018_s30 }
 0xefd   : > { %s5102_s24 = smov %s4007_s27  ;;  %19 = sbr.rel (!%p17_p12) target bundleno = 4 (0x4), region = 96 }
 0xf02   :  { %3245 = vsyncpa [#allocation3], 1 }
 0xf03   :  { %3247 = vsyncpa [#allocation3 + $0x1], 1 }
 0xf04   :  { %3248 = vsyncpa [#allocation4], 1 }
 0xf05   :  { %3250 = vsyncpa [#allocation4 + $0x1], 1 }

</bundles_post_ra>
